<compile_context>
chip_gen: v7x
topology: tpu7x:2x2x1
jax: 0.10.0
libtpu: 0.0.40
codegen_flags: <defaults>
</compile_context>

<pallas_src>
import functools

import jax
import jax.numpy as jnp
from jax import lax
from jax.experimental import pallas as pl
from jax.experimental.pallas import tpu as pltpu


NXP = 128   # lane-padded feature width: [ x (nx) | 1.0 bias lane | zeros ]
GB = 128    # per-gate lane block: each RNN gate lives in its own 128-lane block


# --------------------------------------------------------------------------------------
# Parameters (deterministic synthetic init; PyTorch Linear/RNN convention: W is (out, in))
# --------------------------------------------------------------------------------------

def init_params(key, nx, nh_rnn, nz, nk, nh_mlp, nh_mlp_dlow, nh_rnn_dlow):
    def nrm(k, shape, scale=0.1):
        return scale * jax.random.normal(k, shape, dtype=jnp.float32)

    keys = iter(jax.random.split(key, 64))
    ny_dlow = nh_rnn                     # DLow is built with nz=nh_rnn in the wrapper
    p = {}

    # ---- DLow -----------------------------------------------------------------------
    Hd = nh_rnn_dlow
    p['dlow_gru_wih'] = nrm(next(keys), (3 * Hd, nx))
    p['dlow_gru_bih'] = nrm(next(keys), (3 * Hd,))
    p['dlow_gru_whh'] = nrm(next(keys), (3 * Hd, Hd))
    p['dlow_gru_bhh'] = nrm(next(keys), (3 * Hd,))
    p['dlow_mlp_w1'] = nrm(next(keys), (nh_mlp_dlow[0], Hd))
    p['dlow_mlp_b1'] = nrm(next(keys), (nh_mlp_dlow[0],))
    p['dlow_mlp_w2'] = nrm(next(keys), (nh_mlp_dlow[1], nh_mlp_dlow[0]))
    p['dlow_mlp_b2'] = nrm(next(keys), (nh_mlp_dlow[1],))
    p['dlow_headA_w'] = nrm(next(keys), (ny_dlow * nk, nh_mlp_dlow[1]))
    p['dlow_headA_b'] = nrm(next(keys), (ny_dlow * nk,))
    p['dlow_headb_w'] = nrm(next(keys), (ny_dlow * nk, nh_mlp_dlow[1]))
    p['dlow_headb_b'] = nrm(next(keys), (ny_dlow * nk,))

    # ---- VAE ------------------------------------------------------------------------
    H = nh_rnn
    p['vae_xrnn_wih'] = nrm(next(keys), (4 * H, nx))
    p['vae_xrnn_bih'] = nrm(next(keys), (4 * H,))
    p['vae_xrnn_whh'] = nrm(next(keys), (4 * H, H))
    p['vae_xrnn_bhh'] = nrm(next(keys), (4 * H,))
    d_in = nx + nz + H                    # cat([h_x, z, y_p])
    p['vae_drnn_wih'] = nrm(next(keys), (4 * H, d_in))
    p['vae_drnn_bih'] = nrm(next(keys), (4 * H,))
    p['vae_drnn_whh'] = nrm(next(keys), (4 * H, H))
    p['vae_drnn_bhh'] = nrm(next(keys), (4 * H,))
    p['vae_dmlp_w1'] = nrm(next(keys), (nh_mlp[0], H))
    p['vae_dmlp_b1'] = nrm(next(keys), (nh_mlp[0],))
    p['vae_dmlp_w2'] = nrm(next(keys), (nh_mlp[1], nh_mlp[0]))
    p['vae_dmlp_b2'] = nrm(next(keys), (nh_mlp[1],))
    p['vae_dout_w'] = nrm(next(keys), (nx, nh_mlp[1]))
    p['vae_dout_b'] = nrm(next(keys), (nx,))
    return p


# --------------------------------------------------------------------------------------
# Packing helpers (plain JAX, run in the wrapper)
# --------------------------------------------------------------------------------------

def _gate_block_cols(w, unit, n_gates):
    """(rows, n_gates*unit) -> (rows, n_gates*GB): gate g moves to lanes [g*GB, g*GB+unit)."""
    out = jnp.zeros((w.shape[0], n_gates * GB), w.dtype)
    for g in range(n_gates):
        out = out.at[:, g * GB:g * GB + unit].set(w[:, g * unit:(g + 1) * unit])
    return out


def _pack_rows(mats, width):
    """Row-concatenate 2-D mats, each lane-padded to `width`. Returns (packed, row_offsets)."""
    offs, rows, off = [], [], 0
    for m in mats:
        offs.append(off)
        rows.append(jnp.pad(m, ((0, 0), (0, width - m.shape[1]))))
        off += m.shape[0]
    return jnp.concatenate(rows, axis=0), offs


# --------------------------------------------------------------------------------------
# Wrapper: parameter packing in plain JAX, full hot path in one Pallas kernel
# --------------------------------------------------------------------------------------

def dlow_wrapper_forward(x, z_noise, params, *, nk, obs_length, pred_length,
                         n_features, n_landmarks, nh_rnn, nz, nh_rnn_dlow,
                         nh_mlp, nh_mlp_dlow):
    """Equivalent of DLowWrapper.forward(x, y, nk) (y is unused by the PyTorch forward)."""
    del obs_length, n_features, n_landmarks          # implied by x.shape
    B, T, P, L, F = x.shape
    nx = P * L * F
    H = nh_rnn
    Hd = nh_rnn_dlow
    ny = nh_rnn                                      # DLow latent dim == VAE nz (module wiring)
    assert nz == ny, "DLowWrapper wiring requires VAE nz == nh_rnn"
    assert nx + 1 <= NXP and H <= GB and Hd <= GB
    M1d, M2d = nh_mlp_dlow
    M1v, M2v = nh_mlp
    assert M1v <= GB and M2v <= NXP
    G3B = 3 * GB                                     # GRU gates r|u|n, one lane block each
    L4B = 4 * GB                                     # LSTM gates i|f|g|o, one lane block each
    NKNY = nk * ny
    BN = B * nk
    TB = T * B
    assert B + BN <= NXP
    W_ENC = G3B + L4B
    W_DEC = L4B + GB
    W_MLP = -(-max(M1d, M2d, 2 * NKNY, M2v) // 128) * 128
    W_AUX = -(-max(G3B, L4B, 2 * NKNY, NXP, M1d, M2d, M1v, M2v) // 128) * 128

    f32 = jnp.float32
    hp = lax.Precision.HIGHEST
    Tw = lambda w: jnp.asarray(w, f32).T             # (out, in) -> (in, out)

    # ---- activations: (B,T,P,L,F) -> (T*B, NXP) with a ones-lane at index nx; z, the
    #      nk-replication matrix and a BN identity ride along as extra rows (one DMA). -------
    x_tb = jnp.transpose(x.reshape(B, T, nx), (1, 0, 2)).astype(f32).reshape(TB, nx)
    x_aug = jnp.zeros((TB, NXP), f32).at[:, :nx].set(x_tb).at[:, nx].set(1.0)
    z_row = jnp.zeros((B, NXP), f32).at[:, :ny].set(z_noise.astype(f32))
    rep_row = (jnp.zeros((BN, NXP), f32)
               .at[:, :B].set(jnp.tile(jnp.eye(B, dtype=f32), (nk, 1)))  # row k*B+b selects b
               .at[:, B:B + BN].set(jnp.eye(BN, dtype=f32)))             # Z_g row placement
    x_pack = jnp.concatenate([x_aug, z_row, rep_row], axis=0)

    # ---- encoder weights: x-projections (input biases folded into the ones lane) and the two
    #      h-recurrences, all gate-blocked so every gate slice is vreg-aligned. ---------------
    g_wih = (jnp.zeros((NXP, 3 * Hd), f32)
             .at[:nx, :].set(Tw(params['dlow_gru_wih']))
             .at[nx, :].set(jnp.asarray(params['dlow_gru_bih'], f32)))
    e_wih = (jnp.zeros((NXP, 4 * H), f32)
             .at[:nx, :].set(Tw(params['vae_xrnn_wih']))
             .at[nx, :].set(jnp.asarray(params['vae_xrnn_bih'] + params['vae_xrnn_bhh'], f32)))
    w_xproj = jnp.concatenate([_gate_block_cols(g_wih, Hd, 3),
                               _gate_block_cols(e_wih, H, 4)], axis=1)    # (NXP, W_ENC)
    g_whh_blk = _gate_block_cols(Tw(params['dlow_gru_whh']), Hd, 3)       # (Hd, G3B)
    e_whh_blk = _gate_block_cols(Tw(params['vae_xrnn_whh']), H, 4)        # (H, L4B)
    w_enc, (OFF_XPROJ, OFF_GWHH, OFF_EWHH) = _pack_rows(
        [w_xproj, g_whh_blk, e_whh_blk], W_ENC)

    # ---- decoder weights. Output projection folded into the y-feedback path:
    #      y_prev @ W_y == m2_prev @ (o_w @ W_y) + (o_b @ W_y + b_ih + b_hh). ----------------
    d_wih_t = Tw(params['vae_drnn_wih'])                       # (H + nz + nx, 4H)
    d_wih_h, d_wih_z, d_wih_y = d_wih_t[:H], d_wih_t[H:H + nz], d_wih_t[H + nz:]
    d_bias = jnp.asarray(params['vae_drnn_bih'] + params['vae_drnn_bhh'], f32)
    o_w = Tw(params['vae_dout_w'])                             # (M2v, nx)
    o_b = jnp.asarray(params['vae_dout_b'], f32)               # (nx,)

    w_dh_blk = _gate_block_cols(d_wih_h, H, 4)                                   # (H, L4B)
    w_dz_blk = _gate_block_cols(d_wih_z, H, 4)                                   # (nz, L4B)
    w_fold_blk = _gate_block_cols(jnp.dot(o_w, d_wih_y, precision=hp), H, 4)     # (M2v, L4B)
    const_fold = _gate_block_cols(
        (jnp.dot(o_b, d_wih_y, precision=hp) + d_bias)[None, :], H, 4)           # (1, L4B)
    # fused hd weight: [ W_hh (gate-blocked) | d_mlp_w1 (lane-padded) ] -> one MXU push/step
    w_hd_fused = jnp.concatenate(
        [_gate_block_cols(Tw(params['vae_drnn_whh']), H, 4),
         jnp.zeros((H, GB), f32).at[:, :M1v].set(Tw(params['vae_dmlp_w1']))], axis=1)
    o_w_pad = jnp.zeros((M2v, NXP), f32).at[:, :nx].set(o_w)
    w_dec, (OFF_DH, OFF_DZ, OFF_HDF, OFF_FOLD, OFF_OW) = _pack_rows(
        [w_dh_blk, w_dz_blk, w_hd_fused, w_fold_blk, o_w_pad], W_DEC)

    # ---- small MLP / head weights (one DMA) -------------------------------------------------
    w_ab = jnp.concatenate([Tw(params['dlow_headA_w']),
                            Tw(params['dlow_headb_w'])], axis=1)          # (M2d, 2*NKNY)
    w_mlp, (OFF_DW1, OFF_DW2, OFF_WAB, OFF_VW2) = _pack_rows(
        [Tw(params['dlow_mlp_w1']), Tw(params['dlow_mlp_w2']), w_ab,
         Tw(params['vae_dmlp_w2'])], W_MLP)

    # ---- biases, folded constant and the precomputed step-0 decoder gate contribution -------
    d_wih_y_aug = jnp.zeros((NXP, 4 * H), f32).at[:nx, :].set(d_wih_y).at[nx, :].set(d_bias)
    y0_gates = _gate_block_cols(
        jnp.dot(x_aug[(T - 1) * B:TB], d_wih_y_aug, precision=hp), H, 4)  # (B, L4B)
    o_b_pad = jnp.zeros((1, NXP), f32).at[0, :nx].set(o_b)

    def row(v):
        v2 = jnp.asarray(v, f32).reshape(1, -1)
        return jnp.pad(v2, ((0, 0), (0, W_AUX - v2.shape[1])))

    aux_pack = jnp.concatenate([
        row(_gate_block_cols(jnp.asarray(params['dlow_gru_bhh'], f32)[None, :], Hd, 3)),  # 0
        row(params['dlow_mlp_b1']),                                                       # 1
        row(params['dlow_mlp_b2']),                                                       # 2
        row(jnp.concatenate([jnp.asarray(params['dlow_headA_b'], f32),
                             jnp.asarray(params['dlow_headb_b'], f32)])),                 # 3
        row(params['vae_dmlp_b1']),                                                       # 4
        row(params['vae_dmlp_b2']),                                                       # 5
        row(o_b_pad),                                                                     # 6
        row(const_fold),                                                                  # 7
        jnp.pad(y0_gates, ((0, 0), (0, W_AUX - L4B))),                                    # 8..8+B
    ], axis=0)

    # -------------------------------- fused Pallas kernel -----------------------------------
    def kernel(xp_ref, wenc_ref, wdec_ref, wmlp_ref, aux_ref, y_ref, proj_s):
        # prologue: ONE matmul projects every timestep's input for both encoders (biases via
        # the ones lane), dense-stored once off the recurrence critical path.
        proj_s[...] = jnp.dot(xp_ref[0:TB, :], wenc_ref[OFF_XPROJ:OFF_XPROJ + NXP, :],
                              preferred_element_type=f32)

        zz = xp_ref[TB:TB + B, :ny]                          # (B, ny)
        rep = xp_ref[TB + B:TB + B + BN, :B]                 # (BN, B) replication (row k*B+b)

        # hoisted weight views / bias broadcasts (computed once, outside every loop)
        g_whh_w = wenc_ref[OFF_GWHH:OFF_GWHH + Hd, :G3B]
        e_whh_w = wenc_ref[OFF_EWHH:OFF_EWHH + H, :L4B]
        g_bhh_b = jnp.broadcast_to(aux_ref[0:1, :G3B], (B, G3B))

        # ---- interleaved recurrences: DLow GRU + VAE x-LSTM, width B -----------------------
        def enc_step(t, carry):
            hg, hl, cl = carry
            prow = proj_s[pl.ds(t * B, B), :]
            gx = prow[:, :G3B]
            ex = prow[:, G3B:]

            gh = jnp.dot(hg, g_whh_w, preferred_element_type=f32) + g_bhh_b
            r = jax.nn.sigmoid(gx[:, 0:Hd] + gh[:, 0:Hd])
            u = jax.nn.sigmoid(gx[:, GB:GB + Hd] + gh[:, GB:GB + Hd])
            n = jnp.tanh(gx[:, 2 * GB:2 * GB + Hd] + r * gh[:, 2 * GB:2 * GB + Hd])
            hg = (1.0 - u) * n + u * hg

            gl = ex + jnp.dot(hl, e_whh_w, preferred_element_type=f32)
            i_g = jax.nn.sigmoid(gl[:, 0:H])
            f_g = jax.nn.sigmoid(gl[:, GB:GB + H])
            c_g = jnp.tanh(gl[:, 2 * GB:2 * GB + H])
            o_g = jax.nn.sigmoid(gl[:, 3 * GB:3 * GB + H])
            cl = f_g * cl + i_g * c_g
            hl = o_g * jnp.tanh(cl)
            return hg, hl, cl

        hg0 = jnp.zeros((B, Hd), f32)
        hl0 = jnp.zeros((B, H), f32)
        hg, hl, _ = lax.fori_loop(0, T, enc_step, (hg0, hl0, hl0), unroll=True)

        # ---- DLow MLP + fused A/b heads; Z_g built in-register (k-major rows k*B+b) ---------
        h1 = jnp.tanh(jnp.dot(hg, wmlp_ref[OFF_DW1:OFF_DW1 + Hd, :M1d],
                              preferred_element_type=f32) + aux_ref[1:2, :M1d])
        h2 = jnp.tanh(jnp.dot(h1, wmlp_ref[OFF_DW2:OFF_DW2 + M1d, :M2d],
                              preferred_element_type=f32) + aux_ref[2:3, :M2d])
        ab = (jnp.dot(h2, wmlp_ref[OFF_WAB:OFF_WAB + M2d, :2 * NKNY],
                      preferred_element_type=f32) + aux_ref[3:4, :2 * NKNY])
        a_all = ab[:, :NKNY]
        b_all = ab[:, NKNY:2 * NKNY]
        # row placement via identity-column matmuls (no scratch round trip, no ragged concat)
        zg = jnp.zeros((BN, ny), f32)
        for k in range(nk):
            sel_k = xp_ref[TB + B:TB + B + BN, B + k * B:B + (k + 1) * B]   # (BN, B)
            chunk = a_all[:, k * ny:(k + 1) * ny] * zz + b_all[:, k * ny:(k + 1) * ny]
            zg = zg + jnp.dot(sel_k, chunk, preferred_element_type=f32)

        # ---- decoder: loop-invariant gate contributions precomputed once --------------------
        w_dh = wdec_ref[OFF_DH:OFF_DH + H, :L4B]
        w_dz = wdec_ref[OFF_DZ:OFF_DZ + nz, :L4B]
        w_hdf = wdec_ref[OFF_HDF:OFF_HDF + H, :]             # (H, L4B + GB) fused [W_hh | vw1]
        w_fold = wdec_ref[OFF_FOLD:OFF_FOLD + M2v, :L4B]
        w_ow = wdec_ref[OFF_OW:OFF_OW + M2v, :NXP]
        vw2 = wmlp_ref[OFF_VW2:OFF_VW2 + M1v, :M2v]
        vb1_b = jnp.broadcast_to(aux_ref[4:5, :M1v], (BN, M1v))
        vb2_b = jnp.broadcast_to(aux_ref[5:6, :M2v], (BN, M2v))

        base = (jnp.dot(rep, jnp.dot(hl, w_dh, preferred_element_type=f32),
                        preferred_element_type=f32)
                + jnp.dot(zg, w_dz, preferred_element_type=f32))            # (BN, L4B)
        base0 = base + jnp.dot(rep, aux_ref[8:8 + B, :L4B],
                               preferred_element_type=f32)    # step 0: x_last @ W_y (+biases)
        base_r = base + aux_ref[7:8, :L4B]                    # steps>0: folded o_b/bias term

        def lstm_gates(g, cc):
            i_g = jax.nn.sigmoid(g[:, 0:H])
            f_g = jax.nn.sigmoid(g[:, GB:GB + H])
            c_g = jnp.tanh(g[:, 2 * GB:2 * GB + H])
            o_g = jax.nn.sigmoid(g[:, 3 * GB:3 * GB + H])
            cc = f_g * cc + i_g * c_g
            return o_g * jnp.tanh(cc), cc

        # TODO(synk): switch to lax.fori_loop(..., unroll=True) with pl.ds stores if
        #             pred_length grows beyond a handful of steps.
        cd = jnp.zeros((BN, H), f32)
        g = base0                                             # hd == 0 at step 0
        m2s = []
        for i in range(pred_length):
            hd, cd = lstm_gates(g, cd)
            fused = jnp.dot(hd, w_hdf, preferred_element_type=f32)          # (BN, L4B + GB)
            m1 = jnp.tanh(fused[:, L4B:L4B + M1v] + vb1_b)
            m2 = jnp.tanh(jnp.dot(m1, vw2, preferred_element_type=f32) + vb2_b)
            m2s.append(m2)
            if i + 1 < pred_length:
                g = (base_r + fused[:, :L4B]
                     + jnp.dot(m2, w_fold, preferred_element_type=f32))

        # deferred output projection: ONE batched matmul + one dense lane-wide store
        m2_all = jnp.concatenate(m2s, axis=0)                               # (pred*BN, M2v)
        o_b_b = jnp.broadcast_to(aux_ref[6:7, :NXP], (pred_length * BN, NXP))
        y_ref[...] = jnp.dot(m2_all, w_ow, preferred_element_type=f32) + o_b_b

    inputs = (x_pack, w_enc, w_dec, w_mlp, aux_pack)
    y_pad = pl.pallas_call(
        kernel,
        out_shape=jax.ShapeDtypeStruct((pred_length * BN, NXP), f32),
        in_specs=[pl.BlockSpec(memory_space=pltpu.MemorySpace.VMEM) for _ in inputs],
        out_specs=pl.BlockSpec(memory_space=pltpu.MemorySpace.VMEM),
        scratch_shapes=[pltpu.VMEM((TB, W_ENC), f32)],        # hoisted x-projections
    )(*inputs)

    # (pred*BN, NXP) -> drop lane padding -> (B, nk, pred, P, L, F)
    Y = y_pad.reshape(pred_length, BN, NXP)[:, :, :nx]
    Y = jnp.transpose(Y, (1, 0, 2)).reshape(nk, B, pred_length, P, L, F)
    return jnp.transpose(Y, (1, 0, 2, 3, 4, 5))


# --------------------------------------------------------------------------------------
# Pure-JAX reference (same math, no Pallas) for a sanity check
# --------------------------------------------------------------------------------------

def _ref_forward(x, z_noise, p, *, nk, pred_length, nh_rnn, nz):
    B, T_obs, P, L, F = x.shape
    nx = P * L * F
    xt = jnp.transpose(x.reshape(B, T_obs, nx), (1, 0, 2)).astype(jnp.float32)

    Hd = p['dlow_gru_whh'].shape[1]
    h = jnp.zeros((B, Hd), jnp.float32)
    for t in range(T_obs):
        gx = xt[t] @ p['dlow_gru_wih'].T + p['dlow_gru_bih']
        gh = h @ p['dlow_gru_whh'].T + p['dlow_gru_bhh']
        r = jax.nn.sigmoid(gx[:, :Hd] + gh[:, :Hd])
        u = jax.nn.sigmoid(gx[:, Hd:2 * Hd] + gh[:, Hd:2 * Hd])
        n = jnp.tanh(gx[:, 2 * Hd:] + r * gh[:, 2 * Hd:])
        h = (1 - u) * n + u * h
    h1 = jnp.tanh(h @ p['dlow_mlp_w1'].T + p['dlow_mlp_b1'])
    h2 = jnp.tanh(h1 @ p['dlow_mlp_w2'].T + p['dlow_mlp_b2'])
    a = (h2 @ p['dlow_headA_w'].T + p['dlow_headA_b']).reshape(-1, nh_rnn)
    b = (h2 @ p['dlow_headb_w'].T + p['dlow_headb_b']).reshape(-1, nh_rnn)
    z_rep = jnp.repeat(z_noise, nk, axis=0)
    Z_g = a * z_rep + b

    X = jnp.repeat(xt, nk, axis=1)
    H = nh_rnn
    BN = B * nk

    def lstm(xin, hh, cc, wih, bih, whh, bhh):
        g = xin @ wih.T + bih + hh @ whh.T + bhh
        i = jax.nn.sigmoid(g[:, :H]); f = jax.nn.sigmoid(g[:, H:2 * H])
        gg = jnp.tanh(g[:, 2 * H:3 * H]); o = jax.nn.sigmoid(g[:, 3 * H:])
        cc = f * cc + i * gg
        return o * jnp.tanh(cc), cc

    hh = cc = jnp.zeros((BN, H), jnp.float32)
    for t in range(T_obs):
        hh, cc = lstm(X[t], hh, cc, p['vae_xrnn_wih'], p['vae_xrnn_bih'],
                      p['vae_xrnn_whh'], p['vae_xrnn_bhh'])
    h_x = hh
    hd = cd = jnp.zeros((BN, H), jnp.float32)
    y_prev = X[-1]
    ys = []
    for _ in range(pred_length):
        rnn_in = jnp.concatenate([h_x, Z_g, y_prev], axis=1)
        hd, cd = lstm(rnn_in, hd, cd, p['vae_drnn_wih'], p['vae_drnn_bih'],
                      p['vae_drnn_whh'], p['vae_drnn_bhh'])
        m1 = jnp.tanh(hd @ p['vae_dmlp_w1'].T + p['vae_dmlp_b1'])
        m2 = jnp.tanh(m1 @ p['vae_dmlp_w2'].T + p['vae_dmlp_b2'])
        y_i = m2 @ p['vae_dout_w'].T + p['vae_dout_b']
        ys.append(y_i)
        y_prev = y_i
    Y = jnp.stack(ys)
    return jnp.transpose(Y, (1, 0, 2)).reshape(B, nk, pred_length, P, L, F)


# --------------------------------------------------------------------------------------
# Main
# --------------------------------------------------------------------------------------

if __name__ == "__main__":
    # Small config consistent with the module
    n_features, n_landmarks, participants = 3, 4, 1
    obs_length, pred_length = 8, 4
    nk = 4
    nh_rnn = 32          # VAE rnn hidden == DLow output dim ny
    nz = 32              # VAE latent dim (must equal nh_rnn, as in the wrapper wiring)
    nh_mlp = [48, 32]
    nh_mlp_dlow = [48, 32]
    nh_rnn_dlow = 32
    batch = 2
    nx = n_features * n_landmarks * participants

    key = jax.random.PRNGKey(0)
    k_x, k_y, k_z, k_p = jax.random.split(key, 4)
    x = jax.random.normal(k_x, (batch, obs_length, participants, n_landmarks, n_features),
                          dtype=jnp.float32)
    y = jax.random.normal(k_y, (batch, pred_length, participants, n_landmarks, n_features),
                          dtype=jnp.float32)   # unused by forward (kept for signature parity)
    z_noise = jax.random.normal(k_z, (batch, nh_rnn), dtype=jnp.float32)

    params = init_params(k_p, nx, nh_rnn, nz, nk, nh_mlp, nh_mlp_dlow, nh_rnn_dlow)

    fwd = functools.partial(dlow_wrapper_forward, nk=nk, obs_length=obs_length,
                            pred_length=pred_length, n_features=n_features,
                            n_landmarks=n_landmarks, nh_rnn=nh_rnn, nz=nz,
                            nh_rnn_dlow=nh_rnn_dlow, nh_mlp=nh_mlp,
                            nh_mlp_dlow=nh_mlp_dlow)
    out = jax.jit(fwd)(x, z_noise, params)
    out = jax.block_until_ready(out)

    ref = _ref_forward(x, z_noise, params, nk=nk, pred_length=pred_length,
                       nh_rnn=nh_rnn, nz=nz)
    assert out.shape == (batch, nk, pred_length, participants, n_landmarks, n_features)
    assert jnp.allclose(out, ref, atol=1e-3, rtol=1e-3), "Pallas output mismatch vs JAX reference"

    print("KERNEL_OK")
</pallas_src>

<mosaic_0001>
module attributes {stable_mosaic.version = 11 : i64} {
  func.func @kernel(%arg0: memref<26x128xf32, #tpu.memory_space<vmem>>, %arg1: memref<192x896xf32, #tpu.memory_space<vmem>>, %arg2: memref<160x640xf32, #tpu.memory_space<vmem>>, %arg3: memref<160x256xf32, #tpu.memory_space<vmem>>, %arg4: memref<10x512xf32, #tpu.memory_space<vmem>>, %arg5: memref<32x128xf32, #tpu.memory_space<vmem>>, %arg6: memref<16x896xf32, #tpu.memory_space<vmem>>) attributes {dimension_semantics = [], scalar_prefetch = 0 : i64, scratch_operands = 1 : i64, tpu.core_type = #tpu.core_type<tc>} {
    %c0 = arith.constant 0 : index
    %c0_0 = arith.constant 0 : index
    %0 = vector.load %arg0[%c0, %c0_0] : memref<26x128xf32, #tpu.memory_space<vmem>>, vector<16x128xf32>
    %c0_1 = arith.constant 0 : index
    %c0_2 = arith.constant 0 : index
    %1 = vector.load %arg1[%c0_1, %c0_2] : memref<192x896xf32, #tpu.memory_space<vmem>>, vector<128x896xf32>
    %cst = arith.constant dense<0.000000e+00> : vector<16x896xf32>
    %2 = tpu.matmul %0, %1, %cst {dimension_numbers = #tpu.dot_dimension_numbers<[1], [0], [0], [1], [0, 0, 1, 1], [], []>} : vector<16x128xf32>, vector<128x896xf32>, vector<16x896xf32> -> vector<16x896xf32>
    %c0_3 = arith.constant 0 : index
    %c0_4 = arith.constant 0 : index
    %3 = vector.load %arg6[%c0_3, %c0_4] : memref<16x896xf32, #tpu.memory_space<vmem>>, vector<16x896xf32>
    tpu.vector_store %arg6[%c0_3, %c0_4], %2 {strides = array<i32>} : memref<16x896xf32, #tpu.memory_space<vmem>>, vector<16x896xf32>,
    %c16 = arith.constant 16 : index
    %c0_5 = arith.constant 0 : index
    %4 = vector.load %arg0[%c16, %c0_5] : memref<26x128xf32, #tpu.memory_space<vmem>>, vector<2x32xf32>
    %c18 = arith.constant 18 : index
    %c0_6 = arith.constant 0 : index
    %5 = vector.load %arg0[%c18, %c0_6] : memref<26x128xf32, #tpu.memory_space<vmem>>, vector<8x2xf32>
    %c128 = arith.constant 128 : index
    %c0_7 = arith.constant 0 : index
    %6 = vector.load %arg1[%c128, %c0_7] : memref<192x896xf32, #tpu.memory_space<vmem>>, vector<32x384xf32>
    %c160 = arith.constant 160 : index
    %c0_8 = arith.constant 0 : index
    %7 = vector.load %arg1[%c160, %c0_8] : memref<192x896xf32, #tpu.memory_space<vmem>>, vector<32x512xf32>
    %c0_9 = arith.constant 0 : index
    %c0_10 = arith.constant 0 : index
    %8 = vector.load %arg4[%c0_9, %c0_10] : memref<10x512xf32, #tpu.memory_space<vmem>>, vector<1x384xf32>
    %9 = vector.shape_cast %8 : vector<1x384xf32> to vector<1x384xf32>
    %10 = vector.broadcast %9 : vector<1x384xf32> to vector<2x384xf32>
    %cst_11 = arith.constant 0.000000e+00 : f32
    %11 = vector.broadcast %cst_11 : f32 to vector<2x32xf32>
    %cst_12 = arith.constant 0.000000e+00 : f32
    %12 = vector.broadcast %cst_12 : f32 to vector<2x32xf32>
    %c0_i32 = arith.constant 0 : i32
    %c2_i32 = arith.constant 2 : i32
    %13 = arith.muli %c0_i32, %c2_i32 : i32
    %14 = arith.index_cast %13 : i32 to index
    %c0_13 = arith.constant 0 : index
    %15 = vector.load %arg6[%14, %c0_13] : memref<16x896xf32, #tpu.memory_space<vmem>>, vector<2x896xf32>
    %16 = vector.extract_strided_slice %15 {offsets = [0, 0], sizes = [2, 384], strides = [1, 1]} : vector<2x896xf32> to vector<2x384xf32>
    %17 = vector.extract_strided_slice %15 {offsets = [0, 384], sizes = [2, 512], strides = [1, 1]} : vector<2x896xf32> to vector<2x512xf32>
    %cst_14 = arith.constant dense<0.000000e+00> : vector<2x384xf32>
    %18 = tpu.matmul %11, %6, %cst_14 {dimension_numbers = #tpu.dot_dimension_numbers<[1], [0], [0], [1], [0, 0, 1, 1], [], []>} : vector<2x32xf32>, vector<32x384xf32>, vector<2x384xf32> -> vector<2x384xf32>
    %19 = arith.addf %18, %10 : vector<2x384xf32>
    %20 = vector.extract_strided_slice %16 {offsets = [0, 0], sizes = [2, 32], strides = [1, 1]} : vector<2x384xf32> to vector<2x32xf32>
    %21 = vector.extract_strided_slice %19 {offsets = [0, 0], sizes = [2, 32], strides = [1, 1]} : vector<2x384xf32> to vector<2x32xf32>
    %22 = arith.addf %20, %21 : vector<2x32xf32>
    %23 = arith.negf %22 : vector<2x32xf32>
    %24 = math.exp %23 : vector<2x32xf32>
    %cst_15 = arith.constant 1.000000e+00 : f32
    %25 = vector.broadcast %cst_15 : f32 to vector<2x32xf32>
    %26 = arith.addf %25, %24 : vector<2x32xf32>
    %27 = arith.divf %25, %26 : vector<2x32xf32>
    %28 = vector.extract_strided_slice %16 {offsets = [0, 128], sizes = [2, 32], strides = [1, 1]} : vector<2x384xf32> to vector<2x32xf32>
    %29 = vector.extract_strided_slice %19 {offsets = [0, 128], sizes = [2, 32], strides = [1, 1]} : vector<2x384xf32> to vector<2x32xf32>
    %30 = arith.addf %28, %29 : vector<2x32xf32>
    %31 = arith.negf %30 : vector<2x32xf32>
    %32 = math.exp %31 : vector<2x32xf32>
    %cst_16 = arith.constant 1.000000e+00 : f32
    %33 = vector.broadcast %cst_16 : f32 to vector<2x32xf32>
    %34 = arith.addf %33, %32 : vector<2x32xf32>
    %35 = arith.divf %33, %34 : vector<2x32xf32>
    %36 = vector.extract_strided_slice %16 {offsets = [0, 256], sizes = [2, 32], strides = [1, 1]} : vector<2x384xf32> to vector<2x32xf32>
    %37 = vector.extract_strided_slice %19 {offsets = [0, 256], sizes = [2, 32], strides = [1, 1]} : vector<2x384xf32> to vector<2x32xf32>
    %38 = arith.mulf %27, %37 : vector<2x32xf32>
    %39 = arith.addf %36, %38 : vector<2x32xf32>
    %40 = math.tanh %39 : vector<2x32xf32>
    %cst_17 = arith.constant 1.000000e+00 : f32
    %41 = vector.broadcast %cst_17 : f32 to vector<2x32xf32>
    %42 = arith.subf %41, %35 : vector<2x32xf32>
    %43 = arith.mulf %42, %40 : vector<2x32xf32>
    %44 = arith.mulf %35, %11 : vector<2x32xf32>
    %45 = arith.addf %43, %44 : vector<2x32xf32>
    %cst_18 = arith.constant dense<0.000000e+00> : vector<2x512xf32>
    %46 = tpu.matmul %12, %7, %cst_18 {dimension_numbers = #tpu.dot_dimension_numbers<[1], [0], [0], [1], [0, 0, 1, 1], [], []>} : vector<2x32xf32>, vector<32x512xf32>, vector<2x512xf32> -> vector<2x512xf32>
    %47 = arith.addf %17, %46 : vector<2x512xf32>
    %48 = vector.extract_strided_slice %47 {offsets = [0, 0], sizes = [2, 32], strides = [1, 1]} : vector<2x512xf32> to vector<2x32xf32>
    %49 = arith.negf %48 : vector<2x32xf32>
    %50 = math.exp %49 : vector<2x32xf32>
    %cst_19 = arith.constant 1.000000e+00 : f32
    %51 = vector.broadcast %cst_19 : f32 to vector<2x32xf32>
    %52 = arith.addf %51, %50 : vector<2x32xf32>
    %53 = arith.divf %51, %52 : vector<2x32xf32>
    %54 = vector.extract_strided_slice %47 {offsets = [0, 128], sizes = [2, 32], strides = [1, 1]} : vector<2x512xf32> to vector<2x32xf32>
    %55 = arith.negf %54 : vector<2x32xf32>
    %56 = math.exp %55 : vector<2x32xf32>
    %cst_20 = arith.constant 1.000000e+00 : f32
    %57 = vector.broadcast %cst_20 : f32 to vector<2x32xf32>
    %58 = arith.addf %57, %56 : vector<2x32xf32>
    %59 = arith.divf %57, %58 : vector<2x32xf32>
    %60 = vector.extract_strided_slice %47 {offsets = [0, 256], sizes = [2, 32], strides = [1, 1]} : vector<2x512xf32> to vector<2x32xf32>
    %61 = math.tanh %60 : vector<2x32xf32>
    %62 = vector.extract_strided_slice %47 {offsets = [0, 384], sizes = [2, 32], strides = [1, 1]} : vector<2x512xf32> to vector<2x32xf32>
    %63 = arith.negf %62 : vector<2x32xf32>
    %64 = math.exp %63 : vector<2x32xf32>
    %cst_21 = arith.constant 1.000000e+00 : f32
    %65 = vector.broadcast %cst_21 : f32 to vector<2x32xf32>
    %66 = arith.addf %65, %64 : vector<2x32xf32>
    %67 = arith.divf %65, %66 : vector<2x32xf32>
    %68 = arith.mulf %59, %12 : vector<2x32xf32>
    %69 = arith.mulf %53, %61 : vector<2x32xf32>
    %70 = arith.addf %68, %69 : vector<2x32xf32>
    %71 = math.tanh %70 : vector<2x32xf32>
    %72 = arith.mulf %67, %71 : vector<2x32xf32>
    %c1_i32 = arith.constant 1 : i32
    %c2_i32_22 = arith.constant 2 : i32
    %73 = arith.muli %c1_i32, %c2_i32_22 : i32
    %74 = arith.index_cast %73 : i32 to index
    %c0_23 = arith.constant 0 : index
    %75 = vector.load %arg6[%74, %c0_23] : memref<16x896xf32, #tpu.memory_space<vmem>>, vector<2x896xf32>
    %76 = vector.extract_strided_slice %75 {offsets = [0, 0], sizes = [2, 384], strides = [1, 1]} : vector<2x896xf32> to vector<2x384xf32>
    %77 = vector.extract_strided_slice %75 {offsets = [0, 384], sizes = [2, 512], strides = [1, 1]} : vector<2x896xf32> to vector<2x512xf32>
    %cst_24 = arith.constant dense<0.000000e+00> : vector<2x384xf32>
    %78 = tpu.matmul %45, %6, %cst_24 {dimension_numbers = #tpu.dot_dimension_numbers<[1], [0], [0], [1], [0, 0, 1, 1], [], []>} : vector<2x32xf32>, vector<32x384xf32>, vector<2x384xf32> -> vector<2x384xf32>
    %79 = arith.addf %78, %10 : vector<2x384xf32>
    %80 = vector.extract_strided_slice %76 {offsets = [0, 0], sizes = [2, 32], strides = [1, 1]} : vector<2x384xf32> to vector<2x32xf32>
    %81 = vector.extract_strided_slice %79 {offsets = [0, 0], sizes = [2, 32], strides = [1, 1]} : vector<2x384xf32> to vector<2x32xf32>
    %82 = arith.addf %80, %81 : vector<2x32xf32>
    %83 = arith.negf %82 : vector<2x32xf32>
    %84 = math.exp %83 : vector<2x32xf32>
    %cst_25 = arith.constant 1.000000e+00 : f32
    %85 = vector.broadcast %cst_25 : f32 to vector<2x32xf32>
    %86 = arith.addf %85, %84 : vector<2x32xf32>
    %87 = arith.divf %85, %86 : vector<2x32xf32>
    %88 = vector.extract_strided_slice %76 {offsets = [0, 128], sizes = [2, 32], strides = [1, 1]} : vector<2x384xf32> to vector<2x32xf32>
    %89 = vector.extract_strided_slice %79 {offsets = [0, 128], sizes = [2, 32], strides = [1, 1]} : vector<2x384xf32> to vector<2x32xf32>
    %90 = arith.addf %88, %89 : vector<2x32xf32>
    %91 = arith.negf %90 : vector<2x32xf32>
    %92 = math.exp %91 : vector<2x32xf32>
    %cst_26 = arith.constant 1.000000e+00 : f32
    %93 = vector.broadcast %cst_26 : f32 to vector<2x32xf32>
    %94 = arith.addf %93, %92 : vector<2x32xf32>
    %95 = arith.divf %93, %94 : vector<2x32xf32>
    %96 = vector.extract_strided_slice %76 {offsets = [0, 256], sizes = [2, 32], strides = [1, 1]} : vector<2x384xf32> to vector<2x32xf32>
    %97 = vector.extract_strided_slice %79 {offsets = [0, 256], sizes = [2, 32], strides = [1, 1]} : vector<2x384xf32> to vector<2x32xf32>
    %98 = arith.mulf %87, %97 : vector<2x32xf32>
    %99 = arith.addf %96, %98 : vector<2x32xf32>
    %100 = math.tanh %99 : vector<2x32xf32>
    %cst_27 = arith.constant 1.000000e+00 : f32
    %101 = vector.broadcast %cst_27 : f32 to vector<2x32xf32>
    %102 = arith.subf %101, %95 : vector<2x32xf32>
    %103 = arith.mulf %102, %100 : vector<2x32xf32>
    %104 = arith.mulf %95, %45 : vector<2x32xf32>
    %105 = arith.addf %103, %104 : vector<2x32xf32>
    %cst_28 = arith.constant dense<0.000000e+00> : vector<2x512xf32>
    %106 = tpu.matmul %72, %7, %cst_28 {dimension_numbers = #tpu.dot_dimension_numbers<[1], [0], [0], [1], [0, 0, 1, 1], [], []>} : vector<2x32xf32>, vector<32x512xf32>, vector<2x512xf32> -> vector<2x512xf32>
    %107 = arith.addf %77, %106 : vector<2x512xf32>
    %108 = vector.extract_strided_slice %107 {offsets = [0, 0], sizes = [2, 32], strides = [1, 1]} : vector<2x512xf32> to vector<2x32xf32>
    %109 = arith.negf %108 : vector<2x32xf32>
    %110 = math.exp %109 : vector<2x32xf32>
    %cst_29 = arith.constant 1.000000e+00 : f32
    %111 = vector.broadcast %cst_29 : f32 to vector<2x32xf32>
    %112 = arith.addf %111, %110 : vector<2x32xf32>
    %113 = arith.divf %111, %112 : vector<2x32xf32>
    %114 = vector.extract_strided_slice %107 {offsets = [0, 128], sizes = [2, 32], strides = [1, 1]} : vector<2x512xf32> to vector<2x32xf32>
    %115 = arith.negf %114 : vector<2x32xf32>
    %116 = math.exp %115 : vector<2x32xf32>
    %cst_30 = arith.constant 1.000000e+00 : f32
    %117 = vector.broadcast %cst_30 : f32 to vector<2x32xf32>
    %118 = arith.addf %117, %116 : vector<2x32xf32>
    %119 = arith.divf %117, %118 : vector<2x32xf32>
    %120 = vector.extract_strided_slice %107 {offsets = [0, 256], sizes = [2, 32], strides = [1, 1]} : vector<2x512xf32> to vector<2x32xf32>
    %121 = math.tanh %120 : vector<2x32xf32>
    %122 = vector.extract_strided_slice %107 {offsets = [0, 384], sizes = [2, 32], strides = [1, 1]} : vector<2x512xf32> to vector<2x32xf32>
    %123 = arith.negf %122 : vector<2x32xf32>
    %124 = math.exp %123 : vector<2x32xf32>
    %cst_31 = arith.constant 1.000000e+00 : f32
    %125 = vector.broadcast %cst_31 : f32 to vector<2x32xf32>
    %126 = arith.addf %125, %124 : vector<2x32xf32>
    %127 = arith.divf %125, %126 : vector<2x32xf32>
    %128 = arith.mulf %119, %70 : vector<2x32xf32>
    %129 = arith.mulf %113, %121 : vector<2x32xf32>
    %130 = arith.addf %128, %129 : vector<2x32xf32>
    %131 = math.tanh %130 : vector<2x32xf32>
    %132 = arith.mulf %127, %131 : vector<2x32xf32>
    %c2_i32_32 = arith.constant 2 : i32
    %c2_i32_33 = arith.constant 2 : i32
    %133 = arith.muli %c2_i32_32, %c2_i32_33 : i32
    %134 = arith.index_cast %133 : i32 to index
    %c0_34 = arith.constant 0 : index
    %135 = vector.load %arg6[%134, %c0_34] : memref<16x896xf32, #tpu.memory_space<vmem>>, vector<2x896xf32>
    %136 = vector.extract_strided_slice %135 {offsets = [0, 0], sizes = [2, 384], strides = [1, 1]} : vector<2x896xf32> to vector<2x384xf32>
    %137 = vector.extract_strided_slice %135 {offsets = [0, 384], sizes = [2, 512], strides = [1, 1]} : vector<2x896xf32> to vector<2x512xf32>
    %cst_35 = arith.constant dense<0.000000e+00> : vector<2x384xf32>
    %138 = tpu.matmul %105, %6, %cst_35 {dimension_numbers = #tpu.dot_dimension_numbers<[1], [0], [0], [1], [0, 0, 1, 1], [], []>} : vector<2x32xf32>, vector<32x384xf32>, vector<2x384xf32> -> vector<2x384xf32>
    %139 = arith.addf %138, %10 : vector<2x384xf32>
    %140 = vector.extract_strided_slice %136 {offsets = [0, 0], sizes = [2, 32], strides = [1, 1]} : vector<2x384xf32> to vector<2x32xf32>
    %141 = vector.extract_strided_slice %139 {offsets = [0, 0], sizes = [2, 32], strides = [1, 1]} : vector<2x384xf32> to vector<2x32xf32>
    %142 = arith.addf %140, %141 : vector<2x32xf32>
    %143 = arith.negf %142 : vector<2x32xf32>
    %144 = math.exp %143 : vector<2x32xf32>
    %cst_36 = arith.constant 1.000000e+00 : f32
    %145 = vector.broadcast %cst_36 : f32 to vector<2x32xf32>
    %146 = arith.addf %145, %144 : vector<2x32xf32>
    %147 = arith.divf %145, %146 : vector<2x32xf32>
    %148 = vector.extract_strided_slice %136 {offsets = [0, 128], sizes = [2, 32], strides = [1, 1]} : vector<2x384xf32> to vector<2x32xf32>
    %149 = vector.extract_strided_slice %139 {offsets = [0, 128], sizes = [2, 32], strides = [1, 1]} : vector<2x384xf32> to vector<2x32xf32>
    %150 = arith.addf %148, %149 : vector<2x32xf32>
    %151 = arith.negf %150 : vector<2x32xf32>
    %152 = math.exp %151 : vector<2x32xf32>
    %cst_37 = arith.constant 1.000000e+00 : f32
    %153 = vector.broadcast %cst_37 : f32 to vector<2x32xf32>
    %154 = arith.addf %153, %152 : vector<2x32xf32>
    %155 = arith.divf %153, %154 : vector<2x32xf32>
    %156 = vector.extract_strided_slice %136 {offsets = [0, 256], sizes = [2, 32], strides = [1, 1]} : vector<2x384xf32> to vector<2x32xf32>
    %157 = vector.extract_strided_slice %139 {offsets = [0, 256], sizes = [2, 32], strides = [1, 1]} : vector<2x384xf32> to vector<2x32xf32>
    %158 = arith.mulf %147, %157 : vector<2x32xf32>
    %159 = arith.addf %156, %158 : vector<2x32xf32>
    %160 = math.tanh %159 : vector<2x32xf32>
    %cst_38 = arith.constant 1.000000e+00 : f32
    %161 = vector.broadcast %cst_38 : f32 to vector<2x32xf32>
    %162 = arith.subf %161, %155 : vector<2x32xf32>
    %163 = arith.mulf %162, %160 : vector<2x32xf32>
    %164 = arith.mulf %155, %105 : vector<2x32xf32>
    %165 = arith.addf %163, %164 : vector<2x32xf32>
    %cst_39 = arith.constant dense<0.000000e+00> : vector<2x512xf32>
    %166 = tpu.matmul %132, %7, %cst_39 {dimension_numbers = #tpu.dot_dimension_numbers<[1], [0], [0], [1], [0, 0, 1, 1], [], []>} : vector<2x32xf32>, vector<32x512xf32>, vector<2x512xf32> -> vector<2x512xf32>
    %167 = arith.addf %137, %166 : vector<2x512xf32>
    %168 = vector.extract_strided_slice %167 {offsets = [0, 0], sizes = [2, 32], strides = [1, 1]} : vector<2x512xf32> to vector<2x32xf32>
    %169 = arith.negf %168 : vector<2x32xf32>
    %170 = math.exp %169 : vector<2x32xf32>
    %cst_40 = arith.constant 1.000000e+00 : f32
    %171 = vector.broadcast %cst_40 : f32 to vector<2x32xf32>
    %172 = arith.addf %171, %170 : vector<2x32xf32>
    %173 = arith.divf %171, %172 : vector<2x32xf32>
    %174 = vector.extract_strided_slice %167 {offsets = [0, 128], sizes = [2, 32], strides = [1, 1]} : vector<2x512xf32> to vector<2x32xf32>
    %175 = arith.negf %174 : vector<2x32xf32>
    %176 = math.exp %175 : vector<2x32xf32>
    %cst_41 = arith.constant 1.000000e+00 : f32
    %177 = vector.broadcast %cst_41 : f32 to vector<2x32xf32>
    %178 = arith.addf %177, %176 : vector<2x32xf32>
    %179 = arith.divf %177, %178 : vector<2x32xf32>
    %180 = vector.extract_strided_slice %167 {offsets = [0, 256], sizes = [2, 32], strides = [1, 1]} : vector<2x512xf32> to vector<2x32xf32>
    %181 = math.tanh %180 : vector<2x32xf32>
    %182 = vector.extract_strided_slice %167 {offsets = [0, 384], sizes = [2, 32], strides = [1, 1]} : vector<2x512xf32> to vector<2x32xf32>
    %183 = arith.negf %182 : vector<2x32xf32>
    %184 = math.exp %183 : vector<2x32xf32>
    %cst_42 = arith.constant 1.000000e+00 : f32
    %185 = vector.broadcast %cst_42 : f32 to vector<2x32xf32>
    %186 = arith.addf %185, %184 : vector<2x32xf32>
    %187 = arith.divf %185, %186 : vector<2x32xf32>
    %188 = arith.mulf %179, %130 : vector<2x32xf32>
    %189 = arith.mulf %173, %181 : vector<2x32xf32>
    %190 = arith.addf %188, %189 : vector<2x32xf32>
    %191 = math.tanh %190 : vector<2x32xf32>
    %192 = arith.mulf %187, %191 : vector<2x32xf32>
    %c3_i32 = arith.constant 3 : i32
    %c2_i32_43 = arith.constant 2 : i32
    %193 = arith.muli %c3_i32, %c2_i32_43 : i32
    %194 = arith.index_cast %193 : i32 to index
    %c0_44 = arith.constant 0 : index
    %195 = vector.load %arg6[%194, %c0_44] : memref<16x896xf32, #tpu.memory_space<vmem>>, vector<2x896xf32>
    %196 = vector.extract_strided_slice %195 {offsets = [0, 0], sizes = [2, 384], strides = [1, 1]} : vector<2x896xf32> to vector<2x384xf32>
    %197 = vector.extract_strided_slice %195 {offsets = [0, 384], sizes = [2, 512], strides = [1, 1]} : vector<2x896xf32> to vector<2x512xf32>
    %cst_45 = arith.constant dense<0.000000e+00> : vector<2x384xf32>
    %198 = tpu.matmul %165, %6, %cst_45 {dimension_numbers = #tpu.dot_dimension_numbers<[1], [0], [0], [1], [0, 0, 1, 1], [], []>} : vector<2x32xf32>, vector<32x384xf32>, vector<2x384xf32> -> vector<2x384xf32>
    %199 = arith.addf %198, %10 : vector<2x384xf32>
    %200 = vector.extract_strided_slice %196 {offsets = [0, 0], sizes = [2, 32], strides = [1, 1]} : vector<2x384xf32> to vector<2x32xf32>
    %201 = vector.extract_strided_slice %199 {offsets = [0, 0], sizes = [2, 32], strides = [1, 1]} : vector<2x384xf32> to vector<2x32xf32>
    %202 = arith.addf %200, %201 : vector<2x32xf32>
    %203 = arith.negf %202 : vector<2x32xf32>
    %204 = math.exp %203 : vector<2x32xf32>
    %cst_46 = arith.constant 1.000000e+00 : f32
    %205 = vector.broadcast %cst_46 : f32 to vector<2x32xf32>
    %206 = arith.addf %205, %204 : vector<2x32xf32>
    %207 = arith.divf %205, %206 : vector<2x32xf32>
    %208 = vector.extract_strided_slice %196 {offsets = [0, 128], sizes = [2, 32], strides = [1, 1]} : vector<2x384xf32> to vector<2x32xf32>
    %209 = vector.extract_strided_slice %199 {offsets = [0, 128], sizes = [2, 32], strides = [1, 1]} : vector<2x384xf32> to vector<2x32xf32>
    %210 = arith.addf %208, %209 : vector<2x32xf32>
    %211 = arith.negf %210 : vector<2x32xf32>
    %212 = math.exp %211 : vector<2x32xf32>
    %cst_47 = arith.constant 1.000000e+00 : f32
    %213 = vector.broadcast %cst_47 : f32 to vector<2x32xf32>
    %214 = arith.addf %213, %212 : vector<2x32xf32>
    %215 = arith.divf %213, %214 : vector<2x32xf32>
    %216 = vector.extract_strided_slice %196 {offsets = [0, 256], sizes = [2, 32], strides = [1, 1]} : vector<2x384xf32> to vector<2x32xf32>
    %217 = vector.extract_strided_slice %199 {offsets = [0, 256], sizes = [2, 32], strides = [1, 1]} : vector<2x384xf32> to vector<2x32xf32>
    %218 = arith.mulf %207, %217 : vector<2x32xf32>
    %219 = arith.addf %216, %218 : vector<2x32xf32>
    %220 = math.tanh %219 : vector<2x32xf32>
    %cst_48 = arith.constant 1.000000e+00 : f32
    %221 = vector.broadcast %cst_48 : f32 to vector<2x32xf32>
    %222 = arith.subf %221, %215 : vector<2x32xf32>
    %223 = arith.mulf %222, %220 : vector<2x32xf32>
    %224 = arith.mulf %215, %165 : vector<2x32xf32>
    %225 = arith.addf %223, %224 : vector<2x32xf32>
    %cst_49 = arith.constant dense<0.000000e+00> : vector<2x512xf32>
    %226 = tpu.matmul %192, %7, %cst_49 {dimension_numbers = #tpu.dot_dimension_numbers<[1], [0], [0], [1], [0, 0, 1, 1], [], []>} : vector<2x32xf32>, vector<32x512xf32>, vector<2x512xf32> -> vector<2x512xf32>
    %227 = arith.addf %197, %226 : vector<2x512xf32>
    %228 = vector.extract_strided_slice %227 {offsets = [0, 0], sizes = [2, 32], strides = [1, 1]} : vector<2x512xf32> to vector<2x32xf32>
    %229 = arith.negf %228 : vector<2x32xf32>
    %230 = math.exp %229 : vector<2x32xf32>
    %cst_50 = arith.constant 1.000000e+00 : f32
    %231 = vector.broadcast %cst_50 : f32 to vector<2x32xf32>
    %232 = arith.addf %231, %230 : vector<2x32xf32>
    %233 = arith.divf %231, %232 : vector<2x32xf32>
    %234 = vector.extract_strided_slice %227 {offsets = [0, 128], sizes = [2, 32], strides = [1, 1]} : vector<2x512xf32> to vector<2x32xf32>
    %235 = arith.negf %234 : vector<2x32xf32>
    %236 = math.exp %235 : vector<2x32xf32>
    %cst_51 = arith.constant 1.000000e+00 : f32
    %237 = vector.broadcast %cst_51 : f32 to vector<2x32xf32>
    %238 = arith.addf %237, %236 : vector<2x32xf32>
    %239 = arith.divf %237, %238 : vector<2x32xf32>
    %240 = vector.extract_strided_slice %227 {offsets = [0, 256], sizes = [2, 32], strides = [1, 1]} : vector<2x512xf32> to vector<2x32xf32>
    %241 = math.tanh %240 : vector<2x32xf32>
    %242 = vector.extract_strided_slice %227 {offsets = [0, 384], sizes = [2, 32], strides = [1, 1]} : vector<2x512xf32> to vector<2x32xf32>
    %243 = arith.negf %242 : vector<2x32xf32>
    %244 = math.exp %243 : vector<2x32xf32>
    %cst_52 = arith.constant 1.000000e+00 : f32
    %245 = vector.broadcast %cst_52 : f32 to vector<2x32xf32>
    %246 = arith.addf %245, %244 : vector<2x32xf32>
    %247 = arith.divf %245, %246 : vector<2x32xf32>
    %248 = arith.mulf %239, %190 : vector<2x32xf32>
    %249 = arith.mulf %233, %241 : vector<2x32xf32>
    %250 = arith.addf %248, %249 : vector<2x32xf32>
    %251 = math.tanh %250 : vector<2x32xf32>
    %252 = arith.mulf %247, %251 : vector<2x32xf32>
    %c4_i32 = arith.constant 4 : i32
    %c2_i32_53 = arith.constant 2 : i32
    %253 = arith.muli %c4_i32, %c2_i32_53 : i32
    %254 = arith.index_cast %253 : i32 to index
    %c0_54 = arith.constant 0 : index
    %255 = vector.load %arg6[%254, %c0_54] : memref<16x896xf32, #tpu.memory_space<vmem>>, vector<2x896xf32>
    %256 = vector.extract_strided_slice %255 {offsets = [0, 0], sizes = [2, 384], strides = [1, 1]} : vector<2x896xf32> to vector<2x384xf32>
    %257 = vector.extract_strided_slice %255 {offsets = [0, 384], sizes = [2, 512], strides = [1, 1]} : vector<2x896xf32> to vector<2x512xf32>
    %cst_55 = arith.constant dense<0.000000e+00> : vector<2x384xf32>
    %258 = tpu.matmul %225, %6, %cst_55 {dimension_numbers = #tpu.dot_dimension_numbers<[1], [0], [0], [1], [0, 0, 1, 1], [], []>} : vector<2x32xf32>, vector<32x384xf32>, vector<2x384xf32> -> vector<2x384xf32>
    %259 = arith.addf %258, %10 : vector<2x384xf32>
    %260 = vector.extract_strided_slice %256 {offsets = [0, 0], sizes = [2, 32], strides = [1, 1]} : vector<2x384xf32> to vector<2x32xf32>
    %261 = vector.extract_strided_slice %259 {offsets = [0, 0], sizes = [2, 32], strides = [1, 1]} : vector<2x384xf32> to vector<2x32xf32>
    %262 = arith.addf %260, %261 : vector<2x32xf32>
    %263 = arith.negf %262 : vector<2x32xf32>
    %264 = math.exp %263 : vector<2x32xf32>
    %cst_56 = arith.constant 1.000000e+00 : f32
    %265 = vector.broadcast %cst_56 : f32 to vector<2x32xf32>
    %266 = arith.addf %265, %264 : vector<2x32xf32>
    %267 = arith.divf %265, %266 : vector<2x32xf32>
    %268 = vector.extract_strided_slice %256 {offsets = [0, 128], sizes = [2, 32], strides = [1, 1]} : vector<2x384xf32> to vector<2x32xf32>
    %269 = vector.extract_strided_slice %259 {offsets = [0, 128], sizes = [2, 32], strides = [1, 1]} : vector<2x384xf32> to vector<2x32xf32>
    %270 = arith.addf %268, %269 : vector<2x32xf32>
    %271 = arith.negf %270 : vector<2x32xf32>
    %272 = math.exp %271 : vector<2x32xf32>
    %cst_57 = arith.constant 1.000000e+00 : f32
    %273 = vector.broadcast %cst_57 : f32 to vector<2x32xf32>
    %274 = arith.addf %273, %272 : vector<2x32xf32>
    %275 = arith.divf %273, %274 : vector<2x32xf32>
    %276 = vector.extract_strided_slice %256 {offsets = [0, 256], sizes = [2, 32], strides = [1, 1]} : vector<2x384xf32> to vector<2x32xf32>
    %277 = vector.extract_strided_slice %259 {offsets = [0, 256], sizes = [2, 32], strides = [1, 1]} : vector<2x384xf32> to vector<2x32xf32>
    %278 = arith.mulf %267, %277 : vector<2x32xf32>
    %279 = arith.addf %276, %278 : vector<2x32xf32>
    %280 = math.tanh %279 : vector<2x32xf32>
    %cst_58 = arith.constant 1.000000e+00 : f32
    %281 = vector.broadcast %cst_58 : f32 to vector<2x32xf32>
    %282 = arith.subf %281, %275 : vector<2x32xf32>
    %283 = arith.mulf %282, %280 : vector<2x32xf32>
    %284 = arith.mulf %275, %225 : vector<2x32xf32>
    %285 = arith.addf %283, %284 : vector<2x32xf32>
    %cst_59 = arith.constant dense<0.000000e+00> : vector<2x512xf32>
    %286 = tpu.matmul %252, %7, %cst_59 {dimension_numbers = #tpu.dot_dimension_numbers<[1], [0], [0], [1], [0, 0, 1, 1], [], []>} : vector<2x32xf32>, vector<32x512xf32>, vector<2x512xf32> -> vector<2x512xf32>
    %287 = arith.addf %257, %286 : vector<2x512xf32>
    %288 = vector.extract_strided_slice %287 {offsets = [0, 0], sizes = [2, 32], strides = [1, 1]} : vector<2x512xf32> to vector<2x32xf32>
    %289 = arith.negf %288 : vector<2x32xf32>
    %290 = math.exp %289 : vector<2x32xf32>
    %cst_60 = arith.constant 1.000000e+00 : f32
    %291 = vector.broadcast %cst_60 : f32 to vector<2x32xf32>
    %292 = arith.addf %291, %290 : vector<2x32xf32>
    %293 = arith.divf %291, %292 : vector<2x32xf32>
    %294 = vector.extract_strided_slice %287 {offsets = [0, 128], sizes = [2, 32], strides = [1, 1]} : vector<2x512xf32> to vector<2x32xf32>
    %295 = arith.negf %294 : vector<2x32xf32>
    %296 = math.exp %295 : vector<2x32xf32>
    %cst_61 = arith.constant 1.000000e+00 : f32
    %297 = vector.broadcast %cst_61 : f32 to vector<2x32xf32>
    %298 = arith.addf %297, %296 : vector<2x32xf32>
    %299 = arith.divf %297, %298 : vector<2x32xf32>
    %300 = vector.extract_strided_slice %287 {offsets = [0, 256], sizes = [2, 32], strides = [1, 1]} : vector<2x512xf32> to vector<2x32xf32>
    %301 = math.tanh %300 : vector<2x32xf32>
    %302 = vector.extract_strided_slice %287 {offsets = [0, 384], sizes = [2, 32], strides = [1, 1]} : vector<2x512xf32> to vector<2x32xf32>
    %303 = arith.negf %302 : vector<2x32xf32>
    %304 = math.exp %303 : vector<2x32xf32>
    %cst_62 = arith.constant 1.000000e+00 : f32
    %305 = vector.broadcast %cst_62 : f32 to vector<2x32xf32>
    %306 = arith.addf %305, %304 : vector<2x32xf32>
    %307 = arith.divf %305, %306 : vector<2x32xf32>
    %308 = arith.mulf %299, %250 : vector<2x32xf32>
    %309 = arith.mulf %293, %301 : vector<2x32xf32>
    %310 = arith.addf %308, %309 : vector<2x32xf32>
    %311 = math.tanh %310 : vector<2x32xf32>
    %312 = arith.mulf %307, %311 : vector<2x32xf32>
    %c5_i32 = arith.constant 5 : i32
    %c2_i32_63 = arith.constant 2 : i32
    %313 = arith.muli %c5_i32, %c2_i32_63 : i32
    %314 = arith.index_cast %313 : i32 to index
    %c0_64 = arith.constant 0 : index
    %315 = vector.load %arg6[%314, %c0_64] : memref<16x896xf32, #tpu.memory_space<vmem>>, vector<2x896xf32>
    %316 = vector.extract_strided_slice %315 {offsets = [0, 0], sizes = [2, 384], strides = [1, 1]} : vector<2x896xf32> to vector<2x384xf32>
    %317 = vector.extract_strided_slice %315 {offsets = [0, 384], sizes = [2, 512], strides = [1, 1]} : vector<2x896xf32> to vector<2x512xf32>
    %cst_65 = arith.constant dense<0.000000e+00> : vector<2x384xf32>
    %318 = tpu.matmul %285, %6, %cst_65 {dimension_numbers = #tpu.dot_dimension_numbers<[1], [0], [0], [1], [0, 0, 1, 1], [], []>} : vector<2x32xf32>, vector<32x384xf32>, vector<2x384xf32> -> vector<2x384xf32>
    %319 = arith.addf %318, %10 : vector<2x384xf32>
    %320 = vector.extract_strided_slice %316 {offsets = [0, 0], sizes = [2, 32], strides = [1, 1]} : vector<2x384xf32> to vector<2x32xf32>
    %321 = vector.extract_strided_slice %319 {offsets = [0, 0], sizes = [2, 32], strides = [1, 1]} : vector<2x384xf32> to vector<2x32xf32>
    %322 = arith.addf %320, %321 : vector<2x32xf32>
    %323 = arith.negf %322 : vector<2x32xf32>
    %324 = math.exp %323 : vector<2x32xf32>
    %cst_66 = arith.constant 1.000000e+00 : f32
    %325 = vector.broadcast %cst_66 : f32 to vector<2x32xf32>
    %326 = arith.addf %325, %324 : vector<2x32xf32>
    %327 = arith.divf %325, %326 : vector<2x32xf32>
    %328 = vector.extract_strided_slice %316 {offsets = [0, 128], sizes = [2, 32], strides = [1, 1]} : vector<2x384xf32> to vector<2x32xf32>
    %329 = vector.extract_strided_slice %319 {offsets = [0, 128], sizes = [2, 32], strides = [1, 1]} : vector<2x384xf32> to vector<2x32xf32>
    %330 = arith.addf %328, %329 : vector<2x32xf32>
    %331 = arith.negf %330 : vector<2x32xf32>
    %332 = math.exp %331 : vector<2x32xf32>
    %cst_67 = arith.constant 1.000000e+00 : f32
    %333 = vector.broadcast %cst_67 : f32 to vector<2x32xf32>
    %334 = arith.addf %333, %332 : vector<2x32xf32>
    %335 = arith.divf %333, %334 : vector<2x32xf32>
    %336 = vector.extract_strided_slice %316 {offsets = [0, 256], sizes = [2, 32], strides = [1, 1]} : vector<2x384xf32> to vector<2x32xf32>
    %337 = vector.extract_strided_slice %319 {offsets = [0, 256], sizes = [2, 32], strides = [1, 1]} : vector<2x384xf32> to vector<2x32xf32>
    %338 = arith.mulf %327, %337 : vector<2x32xf32>
    %339 = arith.addf %336, %338 : vector<2x32xf32>
    %340 = math.tanh %339 : vector<2x32xf32>
    %cst_68 = arith.constant 1.000000e+00 : f32
    %341 = vector.broadcast %cst_68 : f32 to vector<2x32xf32>
    %342 = arith.subf %341, %335 : vector<2x32xf32>
    %343 = arith.mulf %342, %340 : vector<2x32xf32>
    %344 = arith.mulf %335, %285 : vector<2x32xf32>
    %345 = arith.addf %343, %344 : vector<2x32xf32>
    %cst_69 = arith.constant dense<0.000000e+00> : vector<2x512xf32>
    %346 = tpu.matmul %312, %7, %cst_69 {dimension_numbers = #tpu.dot_dimension_numbers<[1], [0], [0], [1], [0, 0, 1, 1], [], []>} : vector<2x32xf32>, vector<32x512xf32>, vector<2x512xf32> -> vector<2x512xf32>
    %347 = arith.addf %317, %346 : vector<2x512xf32>
    %348 = vector.extract_strided_slice %347 {offsets = [0, 0], sizes = [2, 32], strides = [1, 1]} : vector<2x512xf32> to vector<2x32xf32>
    %349 = arith.negf %348 : vector<2x32xf32>
    %350 = math.exp %349 : vector<2x32xf32>
    %cst_70 = arith.constant 1.000000e+00 : f32
    %351 = vector.broadcast %cst_70 : f32 to vector<2x32xf32>
    %352 = arith.addf %351, %350 : vector<2x32xf32>
    %353 = arith.divf %351, %352 : vector<2x32xf32>
    %354 = vector.extract_strided_slice %347 {offsets = [0, 128], sizes = [2, 32], strides = [1, 1]} : vector<2x512xf32> to vector<2x32xf32>
    %355 = arith.negf %354 : vector<2x32xf32>
    %356 = math.exp %355 : vector<2x32xf32>
    %cst_71 = arith.constant 1.000000e+00 : f32
    %357 = vector.broadcast %cst_71 : f32 to vector<2x32xf32>
    %358 = arith.addf %357, %356 : vector<2x32xf32>
    %359 = arith.divf %357, %358 : vector<2x32xf32>
    %360 = vector.extract_strided_slice %347 {offsets = [0, 256], sizes = [2, 32], strides = [1, 1]} : vector<2x512xf32> to vector<2x32xf32>
    %361 = math.tanh %360 : vector<2x32xf32>
    %362 = vector.extract_strided_slice %347 {offsets = [0, 384], sizes = [2, 32], strides = [1, 1]} : vector<2x512xf32> to vector<2x32xf32>
    %363 = arith.negf %362 : vector<2x32xf32>
    %364 = math.exp %363 : vector<2x32xf32>
    %cst_72 = arith.constant 1.000000e+00 : f32
    %365 = vector.broadcast %cst_72 : f32 to vector<2x32xf32>
    %366 = arith.addf %365, %364 : vector<2x32xf32>
    %367 = arith.divf %365, %366 : vector<2x32xf32>
    %368 = arith.mulf %359, %310 : vector<2x32xf32>
    %369 = arith.mulf %353, %361 : vector<2x32xf32>
    %370 = arith.addf %368, %369 : vector<2x32xf32>
    %371 = math.tanh %370 : vector<2x32xf32>
    %372 = arith.mulf %367, %371 : vector<2x32xf32>
    %c6_i32 = arith.constant 6 : i32
    %c2_i32_73 = arith.constant 2 : i32
    %373 = arith.muli %c6_i32, %c2_i32_73 : i32
    %374 = arith.index_cast %373 : i32 to index
    %c0_74 = arith.constant 0 : index
    %375 = vector.load %arg6[%374, %c0_74] : memref<16x896xf32, #tpu.memory_space<vmem>>, vector<2x896xf32>
    %376 = vector.extract_strided_slice %375 {offsets = [0, 0], sizes = [2, 384], strides = [1, 1]} : vector<2x896xf32> to vector<2x384xf32>
    %377 = vector.extract_strided_slice %375 {offsets = [0, 384], sizes = [2, 512], strides = [1, 1]} : vector<2x896xf32> to vector<2x512xf32>
    %cst_75 = arith.constant dense<0.000000e+00> : vector<2x384xf32>
    %378 = tpu.matmul %345, %6, %cst_75 {dimension_numbers = #tpu.dot_dimension_numbers<[1], [0], [0], [1], [0, 0, 1, 1], [], []>} : vector<2x32xf32>, vector<32x384xf32>, vector<2x384xf32> -> vector<2x384xf32>
    %379 = arith.addf %378, %10 : vector<2x384xf32>
    %380 = vector.extract_strided_slice %376 {offsets = [0, 0], sizes = [2, 32], strides = [1, 1]} : vector<2x384xf32> to vector<2x32xf32>
    %381 = vector.extract_strided_slice %379 {offsets = [0, 0], sizes = [2, 32], strides = [1, 1]} : vector<2x384xf32> to vector<2x32xf32>
    %382 = arith.addf %380, %381 : vector<2x32xf32>
    %383 = arith.negf %382 : vector<2x32xf32>
    %384 = math.exp %383 : vector<2x32xf32>
    %cst_76 = arith.constant 1.000000e+00 : f32
    %385 = vector.broadcast %cst_76 : f32 to vector<2x32xf32>
    %386 = arith.addf %385, %384 : vector<2x32xf32>
    %387 = arith.divf %385, %386 : vector<2x32xf32>
    %388 = vector.extract_strided_slice %376 {offsets = [0, 128], sizes = [2, 32], strides = [1, 1]} : vector<2x384xf32> to vector<2x32xf32>
    %389 = vector.extract_strided_slice %379 {offsets = [0, 128], sizes = [2, 32], strides = [1, 1]} : vector<2x384xf32> to vector<2x32xf32>
    %390 = arith.addf %388, %389 : vector<2x32xf32>
    %391 = arith.negf %390 : vector<2x32xf32>
    %392 = math.exp %391 : vector<2x32xf32>
    %cst_77 = arith.constant 1.000000e+00 : f32
    %393 = vector.broadcast %cst_77 : f32 to vector<2x32xf32>
    %394 = arith.addf %393, %392 : vector<2x32xf32>
    %395 = arith.divf %393, %394 : vector<2x32xf32>
    %396 = vector.extract_strided_slice %376 {offsets = [0, 256], sizes = [2, 32], strides = [1, 1]} : vector<2x384xf32> to vector<2x32xf32>
    %397 = vector.extract_strided_slice %379 {offsets = [0, 256], sizes = [2, 32], strides = [1, 1]} : vector<2x384xf32> to vector<2x32xf32>
    %398 = arith.mulf %387, %397 : vector<2x32xf32>
    %399 = arith.addf %396, %398 : vector<2x32xf32>
    %400 = math.tanh %399 : vector<2x32xf32>
    %cst_78 = arith.constant 1.000000e+00 : f32
    %401 = vector.broadcast %cst_78 : f32 to vector<2x32xf32>
    %402 = arith.subf %401, %395 : vector<2x32xf32>
    %403 = arith.mulf %402, %400 : vector<2x32xf32>
    %404 = arith.mulf %395, %345 : vector<2x32xf32>
    %405 = arith.addf %403, %404 : vector<2x32xf32>
    %cst_79 = arith.constant dense<0.000000e+00> : vector<2x512xf32>
    %406 = tpu.matmul %372, %7, %cst_79 {dimension_numbers = #tpu.dot_dimension_numbers<[1], [0], [0], [1], [0, 0, 1, 1], [], []>} : vector<2x32xf32>, vector<32x512xf32>, vector<2x512xf32> -> vector<2x512xf32>
    %407 = arith.addf %377, %406 : vector<2x512xf32>
    %408 = vector.extract_strided_slice %407 {offsets = [0, 0], sizes = [2, 32], strides = [1, 1]} : vector<2x512xf32> to vector<2x32xf32>
    %409 = arith.negf %408 : vector<2x32xf32>
    %410 = math.exp %409 : vector<2x32xf32>
    %cst_80 = arith.constant 1.000000e+00 : f32
    %411 = vector.broadcast %cst_80 : f32 to vector<2x32xf32>
    %412 = arith.addf %411, %410 : vector<2x32xf32>
    %413 = arith.divf %411, %412 : vector<2x32xf32>
    %414 = vector.extract_strided_slice %407 {offsets = [0, 128], sizes = [2, 32], strides = [1, 1]} : vector<2x512xf32> to vector<2x32xf32>
    %415 = arith.negf %414 : vector<2x32xf32>
    %416 = math.exp %415 : vector<2x32xf32>
    %cst_81 = arith.constant 1.000000e+00 : f32
    %417 = vector.broadcast %cst_81 : f32 to vector<2x32xf32>
    %418 = arith.addf %417, %416 : vector<2x32xf32>
    %419 = arith.divf %417, %418 : vector<2x32xf32>
    %420 = vector.extract_strided_slice %407 {offsets = [0, 256], sizes = [2, 32], strides = [1, 1]} : vector<2x512xf32> to vector<2x32xf32>
    %421 = math.tanh %420 : vector<2x32xf32>
    %422 = vector.extract_strided_slice %407 {offsets = [0, 384], sizes = [2, 32], strides = [1, 1]} : vector<2x512xf32> to vector<2x32xf32>
    %423 = arith.negf %422 : vector<2x32xf32>
    %424 = math.exp %423 : vector<2x32xf32>
    %cst_82 = arith.constant 1.000000e+00 : f32
    %425 = vector.broadcast %cst_82 : f32 to vector<2x32xf32>
    %426 = arith.addf %425, %424 : vector<2x32xf32>
    %427 = arith.divf %425, %426 : vector<2x32xf32>
    %428 = arith.mulf %419, %370 : vector<2x32xf32>
    %429 = arith.mulf %413, %421 : vector<2x32xf32>
    %430 = arith.addf %428, %429 : vector<2x32xf32>
    %431 = math.tanh %430 : vector<2x32xf32>
    %432 = arith.mulf %427, %431 : vector<2x32xf32>
    %c7_i32 = arith.constant 7 : i32
    %c2_i32_83 = arith.constant 2 : i32
    %433 = arith.muli %c7_i32, %c2_i32_83 : i32
    %434 = arith.index_cast %433 : i32 to index
    %c0_84 = arith.constant 0 : index
    %435 = vector.load %arg6[%434, %c0_84] : memref<16x896xf32, #tpu.memory_space<vmem>>, vector<2x896xf32>
    %436 = vector.extract_strided_slice %435 {offsets = [0, 0], sizes = [2, 384], strides = [1, 1]} : vector<2x896xf32> to vector<2x384xf32>
    %437 = vector.extract_strided_slice %435 {offsets = [0, 384], sizes = [2, 512], strides = [1, 1]} : vector<2x896xf32> to vector<2x512xf32>
    %cst_85 = arith.constant dense<0.000000e+00> : vector<2x384xf32>
    %438 = tpu.matmul %405, %6, %cst_85 {dimension_numbers = #tpu.dot_dimension_numbers<[1], [0], [0], [1], [0, 0, 1, 1], [], []>} : vector<2x32xf32>, vector<32x384xf32>, vector<2x384xf32> -> vector<2x384xf32>
    %439 = arith.addf %438, %10 : vector<2x384xf32>
    %440 = vector.extract_strided_slice %436 {offsets = [0, 0], sizes = [2, 32], strides = [1, 1]} : vector<2x384xf32> to vector<2x32xf32>
    %441 = vector.extract_strided_slice %439 {offsets = [0, 0], sizes = [2, 32], strides = [1, 1]} : vector<2x384xf32> to vector<2x32xf32>
    %442 = arith.addf %440, %441 : vector<2x32xf32>
    %443 = arith.negf %442 : vector<2x32xf32>
    %444 = math.exp %443 : vector<2x32xf32>
    %cst_86 = arith.constant 1.000000e+00 : f32
    %445 = vector.broadcast %cst_86 : f32 to vector<2x32xf32>
    %446 = arith.addf %445, %444 : vector<2x32xf32>
    %447 = arith.divf %445, %446 : vector<2x32xf32>
    %448 = vector.extract_strided_slice %436 {offsets = [0, 128], sizes = [2, 32], strides = [1, 1]} : vector<2x384xf32> to vector<2x32xf32>
    %449 = vector.extract_strided_slice %439 {offsets = [0, 128], sizes = [2, 32], strides = [1, 1]} : vector<2x384xf32> to vector<2x32xf32>
    %450 = arith.addf %448, %449 : vector<2x32xf32>
    %451 = arith.negf %450 : vector<2x32xf32>
    %452 = math.exp %451 : vector<2x32xf32>
    %cst_87 = arith.constant 1.000000e+00 : f32
    %453 = vector.broadcast %cst_87 : f32 to vector<2x32xf32>
    %454 = arith.addf %453, %452 : vector<2x32xf32>
    %455 = arith.divf %453, %454 : vector<2x32xf32>
    %456 = vector.extract_strided_slice %436 {offsets = [0, 256], sizes = [2, 32], strides = [1, 1]} : vector<2x384xf32> to vector<2x32xf32>
    %457 = vector.extract_strided_slice %439 {offsets = [0, 256], sizes = [2, 32], strides = [1, 1]} : vector<2x384xf32> to vector<2x32xf32>
    %458 = arith.mulf %447, %457 : vector<2x32xf32>
    %459 = arith.addf %456, %458 : vector<2x32xf32>
    %460 = math.tanh %459 : vector<2x32xf32>
    %cst_88 = arith.constant 1.000000e+00 : f32
    %461 = vector.broadcast %cst_88 : f32 to vector<2x32xf32>
    %462 = arith.subf %461, %455 : vector<2x32xf32>
    %463 = arith.mulf %462, %460 : vector<2x32xf32>
    %464 = arith.mulf %455, %405 : vector<2x32xf32>
    %465 = arith.addf %463, %464 : vector<2x32xf32>
    %cst_89 = arith.constant dense<0.000000e+00> : vector<2x512xf32>
    %466 = tpu.matmul %432, %7, %cst_89 {dimension_numbers = #tpu.dot_dimension_numbers<[1], [0], [0], [1], [0, 0, 1, 1], [], []>} : vector<2x32xf32>, vector<32x512xf32>, vector<2x512xf32> -> vector<2x512xf32>
    %467 = arith.addf %437, %466 : vector<2x512xf32>
    %468 = vector.extract_strided_slice %467 {offsets = [0, 0], sizes = [2, 32], strides = [1, 1]} : vector<2x512xf32> to vector<2x32xf32>
    %469 = arith.negf %468 : vector<2x32xf32>
    %470 = math.exp %469 : vector<2x32xf32>
    %cst_90 = arith.constant 1.000000e+00 : f32
    %471 = vector.broadcast %cst_90 : f32 to vector<2x32xf32>
    %472 = arith.addf %471, %470 : vector<2x32xf32>
    %473 = arith.divf %471, %472 : vector<2x32xf32>
    %474 = vector.extract_strided_slice %467 {offsets = [0, 128], sizes = [2, 32], strides = [1, 1]} : vector<2x512xf32> to vector<2x32xf32>
    %475 = arith.negf %474 : vector<2x32xf32>
    %476 = math.exp %475 : vector<2x32xf32>
    %cst_91 = arith.constant 1.000000e+00 : f32
    %477 = vector.broadcast %cst_91 : f32 to vector<2x32xf32>
    %478 = arith.addf %477, %476 : vector<2x32xf32>
    %479 = arith.divf %477, %478 : vector<2x32xf32>
    %480 = vector.extract_strided_slice %467 {offsets = [0, 256], sizes = [2, 32], strides = [1, 1]} : vector<2x512xf32> to vector<2x32xf32>
    %481 = math.tanh %480 : vector<2x32xf32>
    %482 = vector.extract_strided_slice %467 {offsets = [0, 384], sizes = [2, 32], strides = [1, 1]} : vector<2x512xf32> to vector<2x32xf32>
    %483 = arith.negf %482 : vector<2x32xf32>
    %484 = math.exp %483 : vector<2x32xf32>
    %cst_92 = arith.constant 1.000000e+00 : f32
    %485 = vector.broadcast %cst_92 : f32 to vector<2x32xf32>
    %486 = arith.addf %485, %484 : vector<2x32xf32>
    %487 = arith.divf %485, %486 : vector<2x32xf32>
    %488 = arith.mulf %479, %430 : vector<2x32xf32>
    %489 = arith.mulf %473, %481 : vector<2x32xf32>
    %490 = arith.addf %488, %489 : vector<2x32xf32>
    %491 = math.tanh %490 : vector<2x32xf32>
    %492 = arith.mulf %487, %491 : vector<2x32xf32>
    %c8_i32 = arith.constant 8 : i32
    %c0_93 = arith.constant 0 : index
    %c0_94 = arith.constant 0 : index
    %493 = vector.load %arg3[%c0_93, %c0_94] : memref<160x256xf32, #tpu.memory_space<vmem>>, vector<32x48xf32>
    %cst_95 = arith.constant dense<0.000000e+00> : vector<2x48xf32>
    %494 = tpu.matmul %465, %493, %cst_95 {dimension_numbers = #tpu.dot_dimension_numbers<[1], [0], [0], [1], [0, 0, 1, 1], [], []>} : vector<2x32xf32>, vector<32x48xf32>, vector<2x48xf32> -> vector<2x48xf32>
    %c1 = arith.constant 1 : index
    %c0_96 = arith.constant 0 : index
    %495 = vector.load %arg4[%c1, %c0_96] : memref<10x512xf32, #tpu.memory_space<vmem>>, vector<1x48xf32>
    %496 = vector.broadcast %495 : vector<1x48xf32> to vector<2x48xf32>
    %497 = arith.addf %494, %496 : vector<2x48xf32>
    %498 = math.tanh %497 : vector<2x48xf32>
    %c32 = arith.constant 32 : index
    %c0_97 = arith.constant 0 : index
    %499 = vector.load %arg3[%c32, %c0_97] : memref<160x256xf32, #tpu.memory_space<vmem>>, vector<48x32xf32>
    %cst_98 = arith.constant dense<0.000000e+00> : vector<2x32xf32>
    %500 = tpu.matmul %498, %499, %cst_98 {dimension_numbers = #tpu.dot_dimension_numbers<[1], [0], [0], [1], [0, 0, 1, 1], [], []>} : vector<2x48xf32>, vector<48x32xf32>, vector<2x32xf32> -> vector<2x32xf32>
    %c2 = arith.constant 2 : index
    %c0_99 = arith.constant 0 : index
    %501 = vector.load %arg4[%c2, %c0_99] : memref<10x512xf32, #tpu.memory_space<vmem>>, vector<1x32xf32>
    %502 = vector.broadcast %501 : vector<1x32xf32> to vector<2x32xf32>
    %503 = arith.addf %500, %502 : vector<2x32xf32>
    %504 = math.tanh %503 : vector<2x32xf32>
    %c80 = arith.constant 80 : index
    %c0_100 = arith.constant 0 : index
    %505 = vector.load %arg3[%c80, %c0_100] : memref<160x256xf32, #tpu.memory_space<vmem>>, vector<32x256xf32>
    %cst_101 = arith.constant dense<0.000000e+00> : vector<2x256xf32>
    %506 = tpu.matmul %504, %505, %cst_101 {dimension_numbers = #tpu.dot_dimension_numbers<[1], [0], [0], [1], [0, 0, 1, 1], [], []>} : vector<2x32xf32>, vector<32x256xf32>, vector<2x256xf32> -> vector<2x256xf32>
    %c3 = arith.constant 3 : index
    %c0_102 = arith.constant 0 : index
    %507 = vector.load %arg4[%c3, %c0_102] : memref<10x512xf32, #tpu.memory_space<vmem>>, vector<1x256xf32>
    %508 = vector.broadcast %507 : vector<1x256xf32> to vector<2x256xf32>
    %509 = arith.addf %506, %508 : vector<2x256xf32>
    %510 = vector.extract_strided_slice %509 {offsets = [0, 0], sizes = [2, 128], strides = [1, 1]} : vector<2x256xf32> to vector<2x128xf32>
    %511 = vector.extract_strided_slice %509 {offsets = [0, 128], sizes = [2, 128], strides = [1, 1]} : vector<2x256xf32> to vector<2x128xf32>
    %cst_103 = arith.constant 0.000000e+00 : f32
    %512 = vector.broadcast %cst_103 : f32 to vector<8x32xf32>
    %c18_104 = arith.constant 18 : index
    %c2_105 = arith.constant 2 : index
    %513 = vector.load %arg0[%c18_104, %c2_105] : memref<26x128xf32, #tpu.memory_space<vmem>>, vector<8x2xf32>
    %514 = vector.extract_strided_slice %510 {offsets = [0, 0], sizes = [2, 32], strides = [1, 1]} : vector<2x128xf32> to vector<2x32xf32>
    %515 = arith.mulf %514, %4 : vector<2x32xf32>
    %516 = vector.extract_strided_slice %511 {offsets = [0, 0], sizes = [2, 32], strides = [1, 1]} : vector<2x128xf32> to vector<2x32xf32>
    %517 = arith.addf %515, %516 : vector<2x32xf32>
    %cst_106 = arith.constant dense<0.000000e+00> : vector<8x32xf32>
    %518 = tpu.matmul %513, %517, %cst_106 {dimension_numbers = #tpu.dot_dimension_numbers<[1], [0], [0], [1], [0, 0, 1, 1], [], []>} : vector<8x2xf32>, vector<2x32xf32>, vector<8x32xf32> -> vector<8x32xf32>
    %519 = arith.addf %512, %518 : vector<8x32xf32>
    %c18_107 = arith.constant 18 : index
    %c4 = arith.constant 4 : index
    %520 = vector.load %arg0[%c18_107, %c4] : memref<26x128xf32, #tpu.memory_space<vmem>>, vector<8x2xf32>
    %521 = vector.extract_strided_slice %510 {offsets = [0, 32], sizes = [2, 32], strides = [1, 1]} : vector<2x128xf32> to vector<2x32xf32>
    %522 = arith.mulf %521, %4 : vector<2x32xf32>
    %523 = vector.extract_strided_slice %511 {offsets = [0, 32], sizes = [2, 32], strides = [1, 1]} : vector<2x128xf32> to vector<2x32xf32>
    %524 = arith.addf %522, %523 : vector<2x32xf32>
    %cst_108 = arith.constant dense<0.000000e+00> : vector<8x32xf32>
    %525 = tpu.matmul %520, %524, %cst_108 {dimension_numbers = #tpu.dot_dimension_numbers<[1], [0], [0], [1], [0, 0, 1, 1], [], []>} : vector<8x2xf32>, vector<2x32xf32>, vector<8x32xf32> -> vector<8x32xf32>
    %526 = arith.addf %519, %525 : vector<8x32xf32>
    %c18_109 = arith.constant 18 : index
    %c6 = arith.constant 6 : index
    %527 = vector.load %arg0[%c18_109, %c6] : memref<26x128xf32, #tpu.memory_space<vmem>>, vector<8x2xf32>
    %528 = vector.extract_strided_slice %510 {offsets = [0, 64], sizes = [2, 32], strides = [1, 1]} : vector<2x128xf32> to vector<2x32xf32>
    %529 = arith.mulf %528, %4 : vector<2x32xf32>
    %530 = vector.extract_strided_slice %511 {offsets = [0, 64], sizes = [2, 32], strides = [1, 1]} : vector<2x128xf32> to vector<2x32xf32>
    %531 = arith.addf %529, %530 : vector<2x32xf32>
    %cst_110 = arith.constant dense<0.000000e+00> : vector<8x32xf32>
    %532 = tpu.matmul %527, %531, %cst_110 {dimension_numbers = #tpu.dot_dimension_numbers<[1], [0], [0], [1], [0, 0, 1, 1], [], []>} : vector<8x2xf32>, vector<2x32xf32>, vector<8x32xf32> -> vector<8x32xf32>
    %533 = arith.addf %526, %532 : vector<8x32xf32>
    %c18_111 = arith.constant 18 : index
    %c8 = arith.constant 8 : index
    %534 = vector.load %arg0[%c18_111, %c8] : memref<26x128xf32, #tpu.memory_space<vmem>>, vector<8x2xf32>
    %535 = vector.extract_strided_slice %510 {offsets = [0, 96], sizes = [2, 32], strides = [1, 1]} : vector<2x128xf32> to vector<2x32xf32>
    %536 = arith.mulf %535, %4 : vector<2x32xf32>
    %537 = vector.extract_strided_slice %511 {offsets = [0, 96], sizes = [2, 32], strides = [1, 1]} : vector<2x128xf32> to vector<2x32xf32>
    %538 = arith.addf %536, %537 : vector<2x32xf32>
    %cst_112 = arith.constant dense<0.000000e+00> : vector<8x32xf32>
    %539 = tpu.matmul %534, %538, %cst_112 {dimension_numbers = #tpu.dot_dimension_numbers<[1], [0], [0], [1], [0, 0, 1, 1], [], []>} : vector<8x2xf32>, vector<2x32xf32>, vector<8x32xf32> -> vector<8x32xf32>
    %540 = arith.addf %533, %539 : vector<8x32xf32>
    %c0_113 = arith.constant 0 : index
    %c0_114 = arith.constant 0 : index
    %541 = vector.load %arg2[%c0_113, %c0_114] : memref<160x640xf32, #tpu.memory_space<vmem>>, vector<32x512xf32>
    %c32_115 = arith.constant 32 : index
    %c0_116 = arith.constant 0 : index
    %542 = vector.load %arg2[%c32_115, %c0_116] : memref<160x640xf32, #tpu.memory_space<vmem>>, vector<32x512xf32>
    %c64 = arith.constant 64 : index
    %c0_117 = arith.constant 0 : index
    %543 = vector.load %arg2[%c64, %c0_117] : memref<160x640xf32, #tpu.memory_space<vmem>>, vector<32x640xf32>
    %c96 = arith.constant 96 : index
    %c0_118 = arith.constant 0 : index
    %544 = vector.load %arg2[%c96, %c0_118] : memref<160x640xf32, #tpu.memory_space<vmem>>, vector<32x512xf32>
    %c128_119 = arith.constant 128 : index
    %c0_120 = arith.constant 0 : index
    %545 = vector.load %arg2[%c128_119, %c0_120] : memref<160x640xf32, #tpu.memory_space<vmem>>, vector<32x128xf32>
    %c112 = arith.constant 112 : index
    %c0_121 = arith.constant 0 : index
    %546 = vector.load %arg3[%c112, %c0_121] : memref<160x256xf32, #tpu.memory_space<vmem>>, vector<48x32xf32>
    %c4_122 = arith.constant 4 : index
    %c0_123 = arith.constant 0 : index
    %547 = vector.load %arg4[%c4_122, %c0_123] : memref<10x512xf32, #tpu.memory_space<vmem>>, vector<1x48xf32>
    %548 = vector.shape_cast %547 : vector<1x48xf32> to vector<1x48xf32>
    %549 = vector.broadcast %548 : vector<1x48xf32> to vector<8x48xf32>
    %c5 = arith.constant 5 : index
    %c0_124 = arith.constant 0 : index
    %550 = vector.load %arg4[%c5, %c0_124] : memref<10x512xf32, #tpu.memory_space<vmem>>, vector<1x32xf32>
    %551 = vector.shape_cast %550 : vector<1x32xf32> to vector<1x32xf32>
    %552 = vector.broadcast %551 : vector<1x32xf32> to vector<8x32xf32>
    %cst_125 = arith.constant dense<0.000000e+00> : vector<2x512xf32>
    %553 = tpu.matmul %492, %541, %cst_125 {dimension_numbers = #tpu.dot_dimension_numbers<[1], [0], [0], [1], [0, 0, 1, 1], [], []>} : vector<2x32xf32>, vector<32x512xf32>, vector<2x512xf32> -> vector<2x512xf32>
    %cst_126 = arith.constant dense<0.000000e+00> : vector<8x512xf32>
    %554 = tpu.matmul %5, %553, %cst_126 {dimension_numbers = #tpu.dot_dimension_numbers<[1], [0], [0], [1], [0, 0, 1, 1], [], []>} : vector<8x2xf32>, vector<2x512xf32>, vector<8x512xf32> -> vector<8x512xf32>
    %cst_127 = arith.constant dense<0.000000e+00> : vector<8x512xf32>
    %555 = tpu.matmul %540, %542, %cst_127 {dimension_numbers = #tpu.dot_dimension_numbers<[1], [0], [0], [1], [0, 0, 1, 1], [], []>} : vector<8x32xf32>, vector<32x512xf32>, vector<8x512xf32> -> vector<8x512xf32>
    %556 = arith.addf %554, %555 : vector<8x512xf32>
    %c8_128 = arith.constant 8 : index
    %c0_129 = arith.constant 0 : index
    %557 = vector.load %arg4[%c8_128, %c0_129] : memref<10x512xf32, #tpu.memory_space<vmem>>, vector<2x512xf32>
    %cst_130 = arith.constant dense<0.000000e+00> : vector<8x512xf32>
    %558 = tpu.matmul %5, %557, %cst_130 {dimension_numbers = #tpu.dot_dimension_numbers<[1], [0], [0], [1], [0, 0, 1, 1], [], []>} : vector<8x2xf32>, vector<2x512xf32>, vector<8x512xf32> -> vector<8x512xf32>
    %559 = arith.addf %556, %558 : vector<8x512xf32>
    %c7 = arith.constant 7 : index
    %c0_131 = arith.constant 0 : index
    %560 = vector.load %arg4[%c7, %c0_131] : memref<10x512xf32, #tpu.memory_space<vmem>>, vector<1x512xf32>
    %561 = vector.broadcast %560 : vector<1x512xf32> to vector<8x512xf32>
    %562 = arith.addf %556, %561 : vector<8x512xf32>
    %cst_132 = arith.constant 0.000000e+00 : f32
    %563 = vector.broadcast %cst_132 : f32 to vector<8x32xf32>
    %564 = vector.extract_strided_slice %559 {offsets = [0, 0], sizes = [8, 32], strides = [1, 1]} : vector<8x512xf32> to vector<8x32xf32>
    %565 = arith.negf %564 : vector<8x32xf32>
    %566 = math.exp %565 : vector<8x32xf32>
    %cst_133 = arith.constant 1.000000e+00 : f32
    %567 = vector.broadcast %cst_133 : f32 to vector<8x32xf32>
    %568 = arith.addf %567, %566 : vector<8x32xf32>
    %569 = arith.divf %567, %568 : vector<8x32xf32>
    %570 = vector.extract_strided_slice %559 {offsets = [0, 128], sizes = [8, 32], strides = [1, 1]} : vector<8x512xf32> to vector<8x32xf32>
    %571 = arith.negf %570 : vector<8x32xf32>
    %572 = math.exp %571 : vector<8x32xf32>
    %cst_134 = arith.constant 1.000000e+00 : f32
    %573 = vector.broadcast %cst_134 : f32 to vector<8x32xf32>
    %574 = arith.addf %573, %572 : vector<8x32xf32>
    %575 = arith.divf %573, %574 : vector<8x32xf32>
    %576 = vector.extract_strided_slice %559 {offsets = [0, 256], sizes = [8, 32], strides = [1, 1]} : vector<8x512xf32> to vector<8x32xf32>
    %577 = math.tanh %576 : vector<8x32xf32>
    %578 = vector.extract_strided_slice %559 {offsets = [0, 384], sizes = [8, 32], strides = [1, 1]} : vector<8x512xf32> to vector<8x32xf32>
    %579 = arith.negf %578 : vector<8x32xf32>
    %580 = math.exp %579 : vector<8x32xf32>
    %cst_135 = arith.constant 1.000000e+00 : f32
    %581 = vector.broadcast %cst_135 : f32 to vector<8x32xf32>
    %582 = arith.addf %581, %580 : vector<8x32xf32>
    %583 = arith.divf %581, %582 : vector<8x32xf32>
    %584 = arith.mulf %575, %563 : vector<8x32xf32>
    %585 = arith.mulf %569, %577 : vector<8x32xf32>
    %586 = arith.addf %584, %585 : vector<8x32xf32>
    %587 = math.tanh %586 : vector<8x32xf32>
    %588 = arith.mulf %583, %587 : vector<8x32xf32>
    %cst_136 = arith.constant dense<0.000000e+00> : vector<8x640xf32>
    %589 = tpu.matmul %588, %543, %cst_136 {dimension_numbers = #tpu.dot_dimension_numbers<[1], [0], [0], [1], [0, 0, 1, 1], [], []>} : vector<8x32xf32>, vector<32x640xf32>, vector<8x640xf32> -> vector<8x640xf32>
    %590 = vector.extract_strided_slice %589 {offsets = [0, 512], sizes = [8, 48], strides = [1, 1]} : vector<8x640xf32> to vector<8x48xf32>
    %591 = arith.addf %590, %549 : vector<8x48xf32>
    %592 = math.tanh %591 : vector<8x48xf32>
    %cst_137 = arith.constant dense<0.000000e+00> : vector<8x32xf32>
    %593 = tpu.matmul %592, %546, %cst_137 {dimension_numbers = #tpu.dot_dimension_numbers<[1], [0], [0], [1], [0, 0, 1, 1], [], []>} : vector<8x48xf32>, vector<48x32xf32>, vector<8x32xf32> -> vector<8x32xf32>
    %594 = arith.addf %593, %552 : vector<8x32xf32>
    %595 = math.tanh %594 : vector<8x32xf32>
    %596 = vector.extract_strided_slice %589 {offsets = [0, 0], sizes = [8, 512], strides = [1, 1]} : vector<8x640xf32> to vector<8x512xf32>
    %597 = arith.addf %562, %596 : vector<8x512xf32>
    %cst_138 = arith.constant dense<0.000000e+00> : vector<8x512xf32>
    %598 = tpu.matmul %595, %544, %cst_138 {dimension_numbers = #tpu.dot_dimension_numbers<[1], [0], [0], [1], [0, 0, 1, 1], [], []>} : vector<8x32xf32>, vector<32x512xf32>, vector<8x512xf32> -> vector<8x512xf32>
    %599 = arith.addf %597, %598 : vector<8x512xf32>
    %600 = vector.extract_strided_slice %599 {offsets = [0, 0], sizes = [8, 32], strides = [1, 1]} : vector<8x512xf32> to vector<8x32xf32>
    %601 = arith.negf %600 : vector<8x32xf32>
    %602 = math.exp %601 : vector<8x32xf32>
    %cst_139 = arith.constant 1.000000e+00 : f32
    %603 = vector.broadcast %cst_139 : f32 to vector<8x32xf32>
    %604 = arith.addf %603, %602 : vector<8x32xf32>
    %605 = arith.divf %603, %604 : vector<8x32xf32>
    %606 = vector.extract_strided_slice %599 {offsets = [0, 128], sizes = [8, 32], strides = [1, 1]} : vector<8x512xf32> to vector<8x32xf32>
    %607 = arith.negf %606 : vector<8x32xf32>
    %608 = math.exp %607 : vector<8x32xf32>
    %cst_140 = arith.constant 1.000000e+00 : f32
    %609 = vector.broadcast %cst_140 : f32 to vector<8x32xf32>
    %610 = arith.addf %609, %608 : vector<8x32xf32>
    %611 = arith.divf %609, %610 : vector<8x32xf32>
    %612 = vector.extract_strided_slice %599 {offsets = [0, 256], sizes = [8, 32], strides = [1, 1]} : vector<8x512xf32> to vector<8x32xf32>
    %613 = math.tanh %612 : vector<8x32xf32>
    %614 = vector.extract_strided_slice %599 {offsets = [0, 384], sizes = [8, 32], strides = [1, 1]} : vector<8x512xf32> to vector<8x32xf32>
    %615 = arith.negf %614 : vector<8x32xf32>
    %616 = math.exp %615 : vector<8x32xf32>
    %cst_141 = arith.constant 1.000000e+00 : f32
    %617 = vector.broadcast %cst_141 : f32 to vector<8x32xf32>
    %618 = arith.addf %617, %616 : vector<8x32xf32>
    %619 = arith.divf %617, %618 : vector<8x32xf32>
    %620 = arith.mulf %611, %586 : vector<8x32xf32>
    %621 = arith.mulf %605, %613 : vector<8x32xf32>
    %622 = arith.addf %620, %621 : vector<8x32xf32>
    %623 = math.tanh %622 : vector<8x32xf32>
    %624 = arith.mulf %619, %623 : vector<8x32xf32>
    %cst_142 = arith.constant dense<0.000000e+00> : vector<8x640xf32>
    %625 = tpu.matmul %624, %543, %cst_142 {dimension_numbers = #tpu.dot_dimension_numbers<[1], [0], [0], [1], [0, 0, 1, 1], [], []>} : vector<8x32xf32>, vector<32x640xf32>, vector<8x640xf32> -> vector<8x640xf32>
    %626 = vector.extract_strided_slice %625 {offsets = [0, 512], sizes = [8, 48], strides = [1, 1]} : vector<8x640xf32> to vector<8x48xf32>
    %627 = arith.addf %626, %549 : vector<8x48xf32>
    %628 = math.tanh %627 : vector<8x48xf32>
    %cst_143 = arith.constant dense<0.000000e+00> : vector<8x32xf32>
    %629 = tpu.matmul %628, %546, %cst_143 {dimension_numbers = #tpu.dot_dimension_numbers<[1], [0], [0], [1], [0, 0, 1, 1], [], []>} : vector<8x48xf32>, vector<48x32xf32>, vector<8x32xf32> -> vector<8x32xf32>
    %630 = arith.addf %629, %552 : vector<8x32xf32>
    %631 = math.tanh %630 : vector<8x32xf32>
    %632 = vector.extract_strided_slice %625 {offsets = [0, 0], sizes = [8, 512], strides = [1, 1]} : vector<8x640xf32> to vector<8x512xf32>
    %633 = arith.addf %562, %632 : vector<8x512xf32>
    %cst_144 = arith.constant dense<0.000000e+00> : vector<8x512xf32>
    %634 = tpu.matmul %631, %544, %cst_144 {dimension_numbers = #tpu.dot_dimension_numbers<[1], [0], [0], [1], [0, 0, 1, 1], [], []>} : vector<8x32xf32>, vector<32x512xf32>, vector<8x512xf32> -> vector<8x512xf32>
    %635 = arith.addf %633, %634 : vector<8x512xf32>
    %636 = vector.extract_strided_slice %635 {offsets = [0, 0], sizes = [8, 32], strides = [1, 1]} : vector<8x512xf32> to vector<8x32xf32>
    %637 = arith.negf %636 : vector<8x32xf32>
    %638 = math.exp %637 : vector<8x32xf32>
    %cst_145 = arith.constant 1.000000e+00 : f32
    %639 = vector.broadcast %cst_145 : f32 to vector<8x32xf32>
    %640 = arith.addf %639, %638 : vector<8x32xf32>
    %641 = arith.divf %639, %640 : vector<8x32xf32>
    %642 = vector.extract_strided_slice %635 {offsets = [0, 128], sizes = [8, 32], strides = [1, 1]} : vector<8x512xf32> to vector<8x32xf32>
    %643 = arith.negf %642 : vector<8x32xf32>
    %644 = math.exp %643 : vector<8x32xf32>
    %cst_146 = arith.constant 1.000000e+00 : f32
    %645 = vector.broadcast %cst_146 : f32 to vector<8x32xf32>
    %646 = arith.addf %645, %644 : vector<8x32xf32>
    %647 = arith.divf %645, %646 : vector<8x32xf32>
    %648 = vector.extract_strided_slice %635 {offsets = [0, 256], sizes = [8, 32], strides = [1, 1]} : vector<8x512xf32> to vector<8x32xf32>
    %649 = math.tanh %648 : vector<8x32xf32>
    %650 = vector.extract_strided_slice %635 {offsets = [0, 384], sizes = [8, 32], strides = [1, 1]} : vector<8x512xf32> to vector<8x32xf32>
    %651 = arith.negf %650 : vector<8x32xf32>
    %652 = math.exp %651 : vector<8x32xf32>
    %cst_147 = arith.constant 1.000000e+00 : f32
    %653 = vector.broadcast %cst_147 : f32 to vector<8x32xf32>
    %654 = arith.addf %653, %652 : vector<8x32xf32>
    %655 = arith.divf %653, %654 : vector<8x32xf32>
    %656 = arith.mulf %647, %622 : vector<8x32xf32>
    %657 = arith.mulf %641, %649 : vector<8x32xf32>
    %658 = arith.addf %656, %657 : vector<8x32xf32>
    %659 = math.tanh %658 : vector<8x32xf32>
    %660 = arith.mulf %655, %659 : vector<8x32xf32>
    %cst_148 = arith.constant dense<0.000000e+00> : vector<8x640xf32>
    %661 = tpu.matmul %660, %543, %cst_148 {dimension_numbers = #tpu.dot_dimension_numbers<[1], [0], [0], [1], [0, 0, 1, 1], [], []>} : vector<8x32xf32>, vector<32x640xf32>, vector<8x640xf32> -> vector<8x640xf32>
    %662 = vector.extract_strided_slice %661 {offsets = [0, 512], sizes = [8, 48], strides = [1, 1]} : vector<8x640xf32> to vector<8x48xf32>
    %663 = arith.addf %662, %549 : vector<8x48xf32>
    %664 = math.tanh %663 : vector<8x48xf32>
    %cst_149 = arith.constant dense<0.000000e+00> : vector<8x32xf32>
    %665 = tpu.matmul %664, %546, %cst_149 {dimension_numbers = #tpu.dot_dimension_numbers<[1], [0], [0], [1], [0, 0, 1, 1], [], []>} : vector<8x48xf32>, vector<48x32xf32>, vector<8x32xf32> -> vector<8x32xf32>
    %666 = arith.addf %665, %552 : vector<8x32xf32>
    %667 = math.tanh %666 : vector<8x32xf32>
    %668 = vector.extract_strided_slice %661 {offsets = [0, 0], sizes = [8, 512], strides = [1, 1]} : vector<8x640xf32> to vector<8x512xf32>
    %669 = arith.addf %562, %668 : vector<8x512xf32>
    %cst_150 = arith.constant dense<0.000000e+00> : vector<8x512xf32>
    %670 = tpu.matmul %667, %544, %cst_150 {dimension_numbers = #tpu.dot_dimension_numbers<[1], [0], [0], [1], [0, 0, 1, 1], [], []>} : vector<8x32xf32>, vector<32x512xf32>, vector<8x512xf32> -> vector<8x512xf32>
    %671 = arith.addf %669, %670 : vector<8x512xf32>
    %672 = vector.extract_strided_slice %671 {offsets = [0, 0], sizes = [8, 32], strides = [1, 1]} : vector<8x512xf32> to vector<8x32xf32>
    %673 = arith.negf %672 : vector<8x32xf32>
    %674 = math.exp %673 : vector<8x32xf32>
    %cst_151 = arith.constant 1.000000e+00 : f32
    %675 = vector.broadcast %cst_151 : f32 to vector<8x32xf32>
    %676 = arith.addf %675, %674 : vector<8x32xf32>
    %677 = arith.divf %675, %676 : vector<8x32xf32>
    %678 = vector.extract_strided_slice %671 {offsets = [0, 128], sizes = [8, 32], strides = [1, 1]} : vector<8x512xf32> to vector<8x32xf32>
    %679 = arith.negf %678 : vector<8x32xf32>
    %680 = math.exp %679 : vector<8x32xf32>
    %cst_152 = arith.constant 1.000000e+00 : f32
    %681 = vector.broadcast %cst_152 : f32 to vector<8x32xf32>
    %682 = arith.addf %681, %680 : vector<8x32xf32>
    %683 = arith.divf %681, %682 : vector<8x32xf32>
    %684 = vector.extract_strided_slice %671 {offsets = [0, 256], sizes = [8, 32], strides = [1, 1]} : vector<8x512xf32> to vector<8x32xf32>
    %685 = math.tanh %684 : vector<8x32xf32>
    %686 = vector.extract_strided_slice %671 {offsets = [0, 384], sizes = [8, 32], strides = [1, 1]} : vector<8x512xf32> to vector<8x32xf32>
    %687 = arith.negf %686 : vector<8x32xf32>
    %688 = math.exp %687 : vector<8x32xf32>
    %cst_153 = arith.constant 1.000000e+00 : f32
    %689 = vector.broadcast %cst_153 : f32 to vector<8x32xf32>
    %690 = arith.addf %689, %688 : vector<8x32xf32>
    %691 = arith.divf %689, %690 : vector<8x32xf32>
    %692 = arith.mulf %683, %658 : vector<8x32xf32>
    %693 = arith.mulf %677, %685 : vector<8x32xf32>
    %694 = arith.addf %692, %693 : vector<8x32xf32>
    %695 = math.tanh %694 : vector<8x32xf32>
    %696 = arith.mulf %691, %695 : vector<8x32xf32>
    %cst_154 = arith.constant dense<0.000000e+00> : vector<8x640xf32>
    %697 = tpu.matmul %696, %543, %cst_154 {dimension_numbers = #tpu.dot_dimension_numbers<[1], [0], [0], [1], [0, 0, 1, 1], [], []>} : vector<8x32xf32>, vector<32x640xf32>, vector<8x640xf32> -> vector<8x640xf32>
    %698 = vector.extract_strided_slice %697 {offsets = [0, 512], sizes = [8, 48], strides = [1, 1]} : vector<8x640xf32> to vector<8x48xf32>
    %699 = arith.addf %698, %549 : vector<8x48xf32>
    %700 = math.tanh %699 : vector<8x48xf32>
    %cst_155 = arith.constant dense<0.000000e+00> : vector<8x32xf32>
    %701 = tpu.matmul %700, %546, %cst_155 {dimension_numbers = #tpu.dot_dimension_numbers<[1], [0], [0], [1], [0, 0, 1, 1], [], []>} : vector<8x48xf32>, vector<48x32xf32>, vector<8x32xf32> -> vector<8x32xf32>
    %702 = arith.addf %701, %552 : vector<8x32xf32>
    %703 = math.tanh %702 : vector<8x32xf32>
    %704 = tpu.concatenate %595, %631, %667, %703 in 0 : vector<8x32xf32>, vector<8x32xf32>, vector<8x32xf32>, vector<8x32xf32> -> vector<32x32xf32>
    %c6_156 = arith.constant 6 : index
    %c0_157 = arith.constant 0 : index
    %705 = vector.load %arg4[%c6_156, %c0_157] : memref<10x512xf32, #tpu.memory_space<vmem>>, vector<1x128xf32>
    %706 = vector.shape_cast %705 : vector<1x128xf32> to vector<1x128xf32>
    %707 = vector.broadcast %706 : vector<1x128xf32> to vector<32x128xf32>
    %cst_158 = arith.constant dense<0.000000e+00> : vector<32x128xf32>
    %708 = tpu.matmul %704, %545, %cst_158 {dimension_numbers = #tpu.dot_dimension_numbers<[1], [0], [0], [1], [0, 0, 1, 1], [], []>} : vector<32x32xf32>, vector<32x128xf32>, vector<32x128xf32> -> vector<32x128xf32>
    %709 = arith.addf %708, %707 : vector<32x128xf32>
    %c0_159 = arith.constant 0 : index
    %c0_160 = arith.constant 0 : index
    %710 = vector.load %arg5[%c0_159, %c0_160] : memref<32x128xf32, #tpu.memory_space<vmem>>, vector<32x128xf32>
    tpu.vector_store %arg5[%c0_159, %c0_160], %709 {strides = array<i32>} : memref<32x128xf32, #tpu.memory_space<vmem>>, vector<32x128xf32>,
    return
  }
}

</mosaic_0001>

<bundles_post_ra>
// kernel: dlow_wrapper_forward.1
= control target key start
LH: loop header
LB: loop body
LE: loop exit
PB: predicated region body
PF: predicated region fallthrough
CT: control target
= control target key end

     0   :  { %v7890_v3 = vmov 0.0   ;;  %vm7892_vm0 = vmmov 0   ;;  %vm508_vm1 = vcmask 261120   ;;  %vm3516_vm2 = vcmask 392192   ;;  %s7893_s21 = smov 32   ;;  %s7894_s22 = smov 96   ;;  %s9398_s1 = inlined_call_operand.vmem [shape: f32[192,896], index: 1, kind: input, shape index: {}]   ;;  %s9399_s0 = inlined_call_operand.vmem [shape: f32[26,128], index: 0, kind: input, shape index: {}]   ;;  %s9400_s4 = inlined_call_operand.vmem [shape: f32[10,512], index: 4, kind: input, shape index: {}]   ;;  %s9401_s3 = inlined_call_operand.vmem [shape: f32[160,256], index: 3, kind: input, shape index: {}]   ;;  %s9402_s2 = inlined_call_operand.vmem [shape: f32[160,640], index: 2, kind: input, shape index: {}]   ;;  %s9403_s5 = inlined_call_operand.vmem [shape: f32[32,128], index: 5, kind: output, shape index: {}]  }
   0x1   :  { %v23_v0 = vld [vmem:[%s9398_s1 + $0x8] sm:$0xff]  ;;  %v30_v1 = vld [vmem:[%s9398_s1 + $0x40] sm:$0xff]  ;;  %v25_v2 = vld [vmem:[%s9398_s1 + $0x18] sm:$0xff]  ;;  %198 = vmatprep.mubr.f32.mxu0 %v7890_v3  ;;  %275 = vmatprep.mubr.f32.mxu1 %v7890_v3  ;;  %s7895_s23 = smov 64   ;;  %s7896_s7 = smov 124   ;;  %vm3703_vm3 = vcmask 1041408  }
   0x2   :  { %v6967_v4 = vpack.c.bf16 %v30_v1, %v23_v0  ;;  %v32_v5 = vld [vmem:[%s9398_s1 + $0x50] sm:$0xff]  ;;  %v22_v6 = vld [vmem:[%s9398_s1] sm:$0xff]  ;;  %v29_v7 = vld [vmem:[%s9398_s1 + $0x38] sm:$0xff]  ;;  %s7898_s10 = smov 122   ;;  %s7899_s11 = smov 120   ;;  %vm3700_vm4 = vcmask 15360  }
   0x3   :  { %v6999_v8 = vpack.c.bf16 %v32_v5, %v25_v2  ;;  %v6969_v9 = vpack.c.bf16 %v29_v7, %v22_v6  ;;  %v24_v10 = vld [vmem:[%s9398_s1 + $0x10] sm:$0xff]  ;;  %v31_v11 = vld [vmem:[%s9398_s1 + $0x48] sm:$0xff]  ;;  %v37_v12 = vld [vmem:[%s9398_s1 + $0x78] sm:$0xff] }
   0x4   :  { %6968 = vmatprep.subr.bf16.mxu0 %v6967_v4  ;;  %v7001_v13 = vpack.c.bf16 %v31_v11, %v24_v10  ;;  %v44_v14 = vld [vmem:[%s9398_s1 + $0xb0] sm:$0xff]  ;;  %v39_v15 = vld [vmem:[%s9398_s1 + $0x88] sm:$0xff]  ;;  %v46_v16 = vld [vmem:[%s9398_s1 + $0xc0] sm:$0xff] }
   0x5   :  { %7000 = vmatprep.subr.bf16.mxu1 %v6999_v8  ;;  %6970 = vmatpush1.bf16.msra.mxu0 %v6969_v9  ;;  %v6971_v17 = vpack.c.bf16 %v44_v14, %v37_v12  ;;  %v7003_v18 = vpack.c.bf16 %v46_v16, %v39_v15  ;;  %v36_v19 = vld [vmem:[%s9398_s1 + $0x70] sm:$0xff]  ;;  %v43_v20 = vld [vmem:[%s9398_s1 + $0xa8] sm:$0xff]  ;;  %v38_v21 = vld [vmem:[%s9398_s1 + $0x80] sm:$0xff] }
   0x6   :  { %7002 = vmatpush1.bf16.msra.mxu1 %v7001_v13  ;;  %v6973_v22 = vpack.c.bf16 %v43_v20, %v36_v19  ;;  %v45_v23 = vld [vmem:[%s9398_s1 + $0xb8] sm:$0xff]  ;;  %v51_v24 = vld [vmem:[%s9398_s1 + $0xe8] sm:$0xff]  ;;  %v58_v25 = vld [vmem:[%s9398_s1 + $0x120] sm:$0xff] }
   0x7   :  { %6972 = vmatprep.subr.bf16.mxu0 %v6971_v17  ;;  %7004 = vmatprep.subr.bf16.mxu1 %v7003_v18  ;;  %v7005_v26 = vpack.c.bf16 %v45_v23, %v38_v21  ;;  %v6975_v27 = vpack.c.bf16 %v58_v25, %v51_v24  ;;  %v53_v28 = vld [vmem:[%s9398_s1 + $0xf8] sm:$0xff]  ;;  %v60_v29 = vld [vmem:[%s9398_s1 + $0x130] sm:$0xff]  ;;  %v50_v30 = vld [vmem:[%s9398_s1 + $0xe0] sm:$0xff] }
   0x8   :  { %v7007_v31 = vpack.c.bf16 %v60_v29, %v53_v28  ;;  %v57_v32 = vld [vmem:[%s9398_s1 + $0x118] sm:$0xff]  ;;  %v52_v33 = vld [vmem:[%s9398_s1 + $0xf0] sm:$0xff]  ;;  %v59_v34 = vld [vmem:[%s9398_s1 + $0x128] sm:$0xff] }
   0x9   :  { %6974 = vmatpush1.bf16.msra.mxu0 %v6973_v22  ;;  %v6977_v35 = vpack.c.bf16 %v57_v32, %v50_v30  ;;  %v65_v36 = vld [vmem:[%s9398_s1 + $0x158] sm:$0xff]  ;;  %v72_v37 = vld [vmem:[%s9398_s1 + $0x190] sm:$0xff]  ;;  %v67_v38 = vld [vmem:[%s9398_s1 + $0x168] sm:$0xff]  ;;  %v7009_v39 = vpack.c.bf16 %v59_v34, %v52_v33 }
   0xa   :  { %7006 = vmatpush1.bf16.msra.mxu1 %v7005_v26  ;;  %6976 = vmatprep.subr.bf16.mxu0 %v6975_v27  ;;  %v6979_v40 = vpack.c.bf16 %v72_v37, %v65_v36  ;;  %v74_v41 = vld [vmem:[%s9398_s1 + $0x1a0] sm:$0xff]  ;;  %v64_v42 = vld [vmem:[%s9398_s1 + $0x150] sm:$0xff]  ;;  %v71_v43 = vld [vmem:[%s9398_s1 + $0x188] sm:$0xff] }
   0xb   :  { %7008 = vmatprep.subr.bf16.mxu1 %v7007_v31  ;;  %v7011_v44 = vpack.c.bf16 %v74_v41, %v67_v38  ;;  %v66_v45 = vld [vmem:[%s9398_s1 + $0x160] sm:$0xff]  ;;  %v73_v46 = vld [vmem:[%s9398_s1 + $0x198] sm:$0xff]  ;;  %v79_v47 = vld [vmem:[%s9398_s1 + $0x1c8] sm:$0xff]  ;;  %v6981_v51 = vpack.c.bf16 %v71_v43, %v64_v42 }
   0xc   :  { %v86_v48 = vld [vmem:[%s9398_s1 + $0x200] sm:$0xff]  ;;  %v81_v49 = vld [vmem:[%s9398_s1 + $0x1d8] sm:$0xff]  ;;  %v88_v50 = vld [vmem:[%s9398_s1 + $0x210] sm:$0xff]  ;;  %v7013_v52 = vpack.c.bf16 %v73_v46, %v66_v45 }
   0xd   :  { %6978 = vmatpush1.bf16.msra.mxu0 %v6977_v35  ;;  %v6983_v53 = vpack.c.bf16 %v86_v48, %v79_v47  ;;  %v78_v54 = vld [vmem:[%s9398_s1 + $0x1c0] sm:$0xff]  ;;  %v85_v55 = vld [vmem:[%s9398_s1 + $0x1f8] sm:$0xff]  ;;  %v80_v56 = vld [vmem:[%s9398_s1 + $0x1d0] sm:$0xff]  ;;  %v7015_v57 = vpack.c.bf16 %v88_v50, %v81_v49 }
   0xe   :  { %7010 = vmatpush1.bf16.msra.mxu1 %v7009_v39  ;;  %6980 = vmatprep.subr.bf16.mxu0 %v6979_v40  ;;  %v87_v58 = vld [vmem:[%s9398_s1 + $0x208] sm:$0xff]  ;;  %v93_v59 = vld [vmem:[%s9398_s1 + $0x238] sm:$0xff]  ;;  %v100_v60 = vld [vmem:[%s9398_s1 + $0x270] sm:$0xff]  ;;  %v6985_v63 = vpack.c.bf16 %v85_v55, %v78_v54 }
   0xf   :  { %7012 = vmatprep.subr.bf16.mxu1 %v7011_v44  ;;  %v95_v61 = vld [vmem:[%s9398_s1 + $0x248] sm:$0xff]  ;;  %v102_v62 = vld [vmem:[%s9398_s1 + $0x280] sm:$0xff]  ;;  %v7017_v0 = vpack.c.bf16 %v87_v58, %v80_v56  ;;  %v6987_v1 = vpack.c.bf16 %v100_v60, %v93_v59  ;;  %v92_v2 = vld [vmem:[%s9398_s1 + $0x230] sm:$0xff] }
  0x10   :  { %v99_v4 = vld [vmem:[%s9398_s1 + $0x268] sm:$0xff]  ;;  %v94_v5 = vld [vmem:[%s9398_s1 + $0x240] sm:$0xff]  ;;  %v7019_v6 = vpack.c.bf16 %v102_v62, %v95_v61  ;;  %v101_v7 = vld [vmem:[%s9398_s1 + $0x278] sm:$0xff] }
  0x11   :  { %6982 = vmatpush1.bf16.msra.mxu0 %v6981_v51  ;;  %v107_v8 = vld [vmem:[%s9398_s1 + $0x2a8] sm:$0xff]  ;;  %v114_v9 = vld [vmem:[%s9398_s1 + $0x2e0] sm:$0xff]  ;;  %v109_v10 = vld [vmem:[%s9398_s1 + $0x2b8] sm:$0xff]  ;;  %v6989_v12 = vpack.c.bf16 %v99_v4, %v92_v2  ;;  %v7021_v13 = vpack.c.bf16 %v101_v7, %v94_v5 }
  0x12   :  { %7014 = vmatpush1.bf16.msra.mxu1 %v7013_v52  ;;  %6984 = vmatprep.subr.bf16.mxu0 %v6983_v53  ;;  %v116_v11 = vld [vmem:[%s9398_s1 + $0x2f0] sm:$0xff]  ;;  %v6991_v14 = vpack.c.bf16 %v114_v9, %v107_v8  ;;  %v106_v15 = vld [vmem:[%s9398_s1 + $0x2a0] sm:$0xff]  ;;  %v113_v16 = vld [vmem:[%s9398_s1 + $0x2d8] sm:$0xff] }
  0x13   :  { %7016 = vmatprep.subr.bf16.mxu1 %v7015_v57  ;;  %v108_v17 = vld [vmem:[%s9398_s1 + $0x2b0] sm:$0xff]  ;;  %v7023_v18 = vpack.c.bf16 %v116_v11, %v109_v10  ;;  %v115_v19 = vld [vmem:[%s9398_s1 + $0x2e8] sm:$0xff]  ;;  %v121_v20 = vld [vmem:[%s9398_s1 + $0x318] sm:$0xff]  ;;  %v6993_v24 = vpack.c.bf16 %v113_v16, %v106_v15 }
  0x14   :  { %v128_v21 = vld [vmem:[%s9398_s1 + $0x350] sm:$0xff]  ;;  %v123_v22 = vld [vmem:[%s9398_s1 + $0x328] sm:$0xff]  ;;  %v130_v23 = vld [vmem:[%s9398_s1 + $0x360] sm:$0xff]  ;;  %v7025_v25 = vpack.c.bf16 %v115_v19, %v108_v17 }
  0x15   :  { %6986 = vmatpush1.bf16.msra.mxu0 %v6985_v63  ;;  %v6995_v26 = vpack.c.bf16 %v128_v21, %v121_v20  ;;  %v120_v27 = vld [vmem:[%s9398_s1 + $0x310] sm:$0xff]  ;;  %v127_v28 = vld [vmem:[%s9398_s1 + $0x348] sm:$0xff]  ;;  %v122_v29 = vld [vmem:[%s9398_s1 + $0x320] sm:$0xff]  ;;  %v7027_v30 = vpack.c.bf16 %v130_v23, %v123_v22 }
  0x16   :  { %7018 = vmatpush1.bf16.msra.mxu1 %v7017_v0  ;;  %6988 = vmatprep.subr.bf16.mxu0 %v6987_v1  ;;  %v129_v31 = vld [vmem:[%s9398_s1 + $0x358] sm:$0xff]  ;;  %v27_v32 = vld [vmem:[%s9398_s1 + $0x28] sm:$0xff]  ;;  %v34_v33 = vld [vmem:[%s9398_s1 + $0x60] sm:$0xff]  ;;  %v6997_v36 = vpack.c.bf16 %v127_v28, %v120_v27 }
  0x17   :  { %7020 = vmatprep.subr.bf16.mxu1 %v7019_v6  ;;  %v28_v34 = vld [vmem:[%s9398_s1 + $0x30] sm:$0xff]  ;;  %v35_v35 = vld [vmem:[%s9398_s1 + $0x68] sm:$0xff]  ;;  %v7029_v37 = vpack.c.bf16 %v129_v31, %v122_v29  ;;  %v7031_v38 = vpack.c.bf16 %v34_v33, %v27_v32  ;;  %v26_v39 = vld [vmem:[%s9398_s1 + $0x20] sm:$0xff] }
  0x18   :  { %v33_v40 = vld [vmem:[%s9398_s1 + $0x58] sm:$0xff]  ;;  %v7063_v41 = vpack.c.bf16 %v35_v35, %v28_v34  ;;  %v48_v43 = vld [vmem:[%s9398_s1 + $0xd0] sm:$0xff]  ;;  %v42_v44 = vld [vmem:[%s9398_s1 + $0xa0] sm:$0xff] }
  0x19   :  { %6990 = vmatpush1.bf16.msra.mxu0 %v6989_v12  ;;  %v41_v42 = vld [vmem:[%s9398_s1 + $0x98] sm:$0xff]  ;;  %v8157_v46 = vld [vmem:[%s9399_s0] sm:$0xff]  ;;  %v7033_v47 = vpack.c.bf16 %v33_v40, %v26_v39  ;;  %v40_v49 = vld [vmem:[%s9398_s1 + $0x90] sm:$0xff] }
  0x1a   :  { %7022 = vmatpush1.bf16.msra.mxu1 %v7021_v13  ;;  %6992 = vmatprep.subr.bf16.mxu0 %v6991_v14  ;;  %v49_v45 = vld [vmem:[%s9398_s1 + $0xd8] sm:$0xff]  ;;  %v7035_v48 = vpack.c.bf16 %v48_v43, %v41_v42  ;;  %v47_v50 = vld [vmem:[%s9398_s1 + $0xc8] sm:$0xff]  ;;  %v62_v53 = vld [vmem:[%s9398_s1 + $0x140] sm:$0xff] }
  0x1b   :  { %7024 = vmatprep.subr.bf16.mxu1 %v7023_v18  ;;  %v7067_v51 = vpack.c.bf16 %v49_v45, %v42_v44  ;;  %v55_v52 = vld [vmem:[%s9398_s1 + $0x108] sm:$0xff]  ;;  %v56_v54 = vld [vmem:[%s9398_s1 + $0x110] sm:$0xff]  ;;  %v7037_v56 = vpack.c.bf16 %v47_v50, %v40_v49  ;;  %v54_v59 = vld [vmem:[%s9398_s1 + $0x100] sm:$0xff] }
  0x1c   :  { %v63_v55 = vld [vmem:[%s9398_s1 + $0x148] sm:$0xff]  ;;  %v7039_v58 = vpack.c.bf16 %v62_v53, %v55_v52  ;;  %v61_v60 = vld [vmem:[%s9398_s1 + $0x138] sm:$0xff]  ;;  %v76_v63 = vld [vmem:[%s9398_s1 + $0x1b0] sm:$0xff] }
  0x1d   :  { %6994 = vmatpush1.bf16.msra.mxu0 %v6993_v24  ;;  %v8182_v57 = vld [vmem:[%s9399_s0 + $0x8] sm:$0xff]  ;;  %v7071_v61 = vpack.c.bf16 %v63_v55, %v56_v54  ;;  %v69_v62 = vld [vmem:[%s9398_s1 + $0x178] sm:$0xff]  ;;  %v70_v0 = vld [vmem:[%s9398_s1 + $0x180] sm:$0xff]  ;;  %v7041_v2 = vpack.c.bf16 %v61_v60, %v54_v59 }
  0x1e   :  { %7026 = vmatpush1.bf16.msra.mxu1 %v7025_v25  ;;  %6996 = vmatprep.subr.bf16.mxu0 %v6995_v26  ;;  %v77_v1 = vld [vmem:[%s9398_s1 + $0x1b8] sm:$0xff]  ;;  %v7043_v4 = vpack.c.bf16 %v76_v63, %v69_v62  ;;  %v68_v5 = vld [vmem:[%s9398_s1 + $0x170] sm:$0xff]  ;;  %v75_v6 = vld [vmem:[%s9398_s1 + $0x1a8] sm:$0xff] }
  0x1f   :  { %7028 = vmatprep.subr.bf16.mxu1 %v7027_v30  ;;  %v7075_v7 = vpack.c.bf16 %v77_v1, %v70_v0  ;;  %v83_v8 = vld [vmem:[%s9398_s1 + $0x1e8] sm:$0xff]  ;;  %v90_v9 = vld [vmem:[%s9398_s1 + $0x220] sm:$0xff]  ;;  %v84_v10 = vld [vmem:[%s9398_s1 + $0x1f0] sm:$0xff]  ;;  %v7045_v12 = vpack.c.bf16 %v75_v6, %v68_v5 }
  0x20   :  { %v91_v11 = vld [vmem:[%s9398_s1 + $0x228] sm:$0xff]  ;;  %v7047_v13 = vpack.c.bf16 %v90_v9, %v83_v8  ;;  %v82_v14 = vld [vmem:[%s9398_s1 + $0x1e0] sm:$0xff]  ;;  %v89_v15 = vld [vmem:[%s9398_s1 + $0x218] sm:$0xff] }
  0x21   :  { %6998 = vmatpush1.bf16.msra.mxu0 %v6997_v36  ;;  %v7079_v16 = vpack.c.bf16 %v91_v11, %v84_v10  ;;  %v97_v17 = vld [vmem:[%s9398_s1 + $0x258] sm:$0xff]  ;;  %v104_v18 = vld [vmem:[%s9398_s1 + $0x290] sm:$0xff]  ;;  %v98_v19 = vld [vmem:[%s9398_s1 + $0x260] sm:$0xff]  ;;  %v7049_v21 = vpack.c.bf16 %v89_v15, %v82_v14 }
  0x22   :  { %7030 = vmatpush1.bf16.msra.mxu1 %v7029_v37  ;;  %7032 = vmatprep.subr.bf16.mxu0 %v7031_v38  ;;  %v105_v20 = vld [vmem:[%s9398_s1 + $0x298] sm:$0xff]  ;;  %v7051_v22 = vpack.c.bf16 %v104_v18, %v97_v17  ;;  %v96_v23 = vld [vmem:[%s9398_s1 + $0x250] sm:$0xff]  ;;  %v103_v24 = vld [vmem:[%s9398_s1 + $0x288] sm:$0xff] }
  0x23   :  { %7064 = vmatprep.subr.bf16.mxu1 %v7063_v41  ;;  %v7083_v25 = vpack.c.bf16 %v105_v20, %v98_v19  ;;  %v111_v26 = vld [vmem:[%s9398_s1 + $0x2c8] sm:$0xff]  ;;  %v118_v27 = vld [vmem:[%s9398_s1 + $0x300] sm:$0xff]  ;;  %v112_v28 = vld [vmem:[%s9398_s1 + $0x2d0] sm:$0xff]  ;;  %v7053_v30 = vpack.c.bf16 %v103_v24, %v96_v23 }
  0x24   :  { %199 = vmatmul.mubr.f32.vlgmr.msra.gmra.mrb[0].mxu0 %v8157_v46  ;;  %v119_v29 = vld [vmem:[%s9398_s1 + $0x308] sm:$0xff]  ;;  %v7055_v31 = vpack.c.bf16 %v118_v27, %v111_v26  ;;  %v110_v32 = vld [vmem:[%s9398_s1 + $0x2c0] sm:$0xff]  ;;  %v117_v33 = vld [vmem:[%s9398_s1 + $0x2f8] sm:$0xff] }
  0x25   :  { %276 = vmatmul.mubr.f32.vlgmr.msra.gmra.mrb[0].mxu1 %v8157_v46  ;;  %7034 = vmatpush1.bf16.msra.mxu0 %v7033_v47  ;;  %v7087_v34 = vpack.c.bf16 %v119_v29, %v112_v28  ;;  %v125_v35 = vld [vmem:[%s9398_s1 + $0x338] sm:$0xff]  ;;  %v132_v36 = vld [vmem:[%s9398_s1 + $0x370] sm:$0xff]  ;;  %v126_v37 = vld [vmem:[%s9398_s1 + $0x340] sm:$0xff]  ;;  %v7057_v39 = vpack.c.bf16 %v117_v33, %v110_v32  ;;  %v486_v33 = vlaneseq }
  0x26   :  { %7066 = vmatpush3.bf16.msra.mxu1 %v7063_v41  ;;  %7036 = vmatprep.subr.bf16.mxu0 %v7035_v48  ;;  %v133_v38 = vld [vmem:[%s9398_s1 + $0x378] sm:$0xff]  ;;  %v7059_v40 = vpack.c.bf16 %v132_v36, %v125_v35  ;;  %v124_v41 = vld [vmem:[%s9398_s1 + $0x330] sm:$0xff]  ;;  %v131_v42 = vld [vmem:[%s9398_s1 + $0x368] sm:$0xff] }
  0x27   :  { %7068 = vmatprep.subr.bf16.mxu1 %v7067_v51  ;;  %204 = vmatprep.mubr.f32.mxu0 %v7890_v3  ;;  %v7091_v43 = vpack.c.bf16 %v133_v38, %v126_v37  ;;  %v457_v44 = vld [vmem:[%s9398_s1 + $0x388] sm:$0xff]  ;;  %v460_v45 = vld [vmem:[%s9398_s1 + $0x3c0] sm:$0xff]  ;;  %v7061_v47 = vpack.c.bf16 %v131_v42, %v124_v41  ;;  %v459_v50 = vld [vmem:[%s9398_s1 + $0x3b8] sm:$0xff] }
  0x28   :  { %205 = vmatmul.mubr.f32.gmra.mrb[2].mxu0 %v8182_v57  ;;  %281 = vmatprep.mubr.f32.mxu1 %v7890_v3  ;;  %v8292_v48 = vpack.c.bf16 %v460_v45, %v457_v44  ;;  %v456_v49 = vld [vmem:[%s9398_s1 + $0x380] sm:$0xff]  ;;  %v461_v52 = vld [vmem:[%s9398_s1 + $0x3c8] sm:$0xff]  ;;  %v463_v53 = vld [vmem:[%s9398_s1 + $0x3f8] sm:$0xff] }
  0x29   :  { %7038 = vmatpush1.bf16.msra.mxu0 %v7037_v56  ;;  %282 = vmatmul.mubr.f32.gmra.mrb[2].mxu1 %v8182_v57  ;;  %v466_v54 = vld [vmem:[%s9398_s1 + $0x430] sm:$0xff]  ;;  %v8312_v55 = vpack.c.bf16 %v459_v50, %v456_v49  ;;  %v465_v59 = vld [vmem:[%s9398_s1 + $0x428] sm:$0xff]  ;;  %v464_v60 = vld [vmem:[%s9398_s1 + $0x400] sm:$0xff] }
  0x2a   :  { %7070 = vmatpush3.bf16.msra.mxu1 %v7067_v51  ;;  %7040 = vmatprep.subr.bf16.mxu0 %v7039_v58  ;;  %v458_v51 = vld [vmem:[%s9398_s1 + $0x390] sm:$0xff]  ;;  %v8327_v62 = vpack.c.bf16 %v466_v54, %v463_v53  ;;  %v467_v63 = vld [vmem:[%s9398_s1 + $0x438] sm:$0xff]  ;;  %v469_v0 = vld [vmem:[%s9398_s1 + $0x468] sm:$0xff] }
  0x2b   :  { %7072 = vmatprep.subr.bf16.mxu1 %v7071_v61  ;;  %352 = vmatprep.mubr.f32.mxu0 %v7890_v3  ;;  %v8315_v56 = vpack.c.bf16 %v461_v52, %v458_v51  ;;  %v462_v58 = vld [vmem:[%s9398_s1 + $0x3f0] sm:$0xff]  ;;  %v473_v1 = vld [vmem:[%s9398_s1 + $0x4a0] sm:$0xff]  ;;  %v8351_v6 = vpack.c.bf16 %v467_v63, %v464_v60  ;;  %v472_v8 = vld [vmem:[%s9398_s1 + $0x498] sm:$0xff] }
  0x2c   :  { %6712 = vmatprep.mubr.f32.mxu1 %v8157_v46  ;;  %v8347_v5 = vpack.c.bf16 %v465_v59, %v462_v58  ;;  %v470_v9 = vld [vmem:[%s9398_s1 + $0x470] sm:$0xff]  ;;  %v474_v11 = vld [vmem:[%s9398_s1 + $0x4a8] sm:$0xff]  ;;  %v483_v15 = vld [vmem:[%s9398_s1 + $0x520] sm:$0xff] }
  0x2d   :  { %7042 = vmatpush1.bf16.msra.mxu0 %v7041_v2  ;;  %v471_v2 = vld [vmem:[%s9398_s1 + $0x478] sm:$0xff]  ;;  %v479_v14 = vld [vmem:[%s9398_s1 + $0x4e8] sm:$0xff]  ;;  %v476_v18 = vld [vmem:[%s9398_s1 + $0x4d0] sm:$0xff] }
  0x2e   :  { %7074 = vmatpush3.bf16.msra.mxu1 %v7071_v61  ;;  %7044 = vmatprep.subr.bf16.mxu0 %v7043_v4  ;;  %v7891_v61 = vmov 0.0|0.0   ;;  %v475_v4 = vld [vmem:[%s9398_s1 + $0x4b0] sm:$0xff]  ;;  %v480_v19 = vld [vmem:[%s9398_s1 + $0x508] sm:$0xff]  ;;  %v8403_v20 = vpack.c.bf16 %v483_v15, %v479_v14 }
  0x2f   :  { %7076 = vmatprep.subr.bf16.mxu1 %v7075_v7  ;;  %v8366_v10 = vpack.c.bf16 %v475_v4, %v471_v2  ;;  %v8414_v23 = vpack.c.bf16 %v480_v19, %v476_v18 }
  0x31   :  { %7046 = vmatpush1.bf16.msra.mxu0 %v7045_v12  ;;  %v477_v12 = vld [vmem:[%s9398_s1 + $0x4d8] sm:$0xff] }
  0x32   :  { %7078 = vmatpush3.bf16.msra.mxu1 %v7075_v7  ;;  %7048 = vmatprep.subr.bf16.mxu0 %v7047_v13  ;;  %v468_v7 = vld [vmem:[%s9398_s1 + $0x460] sm:$0xff]  ;;  %v481_v13 = vld [vmem:[%s9398_s1 + $0x510] sm:$0xff] }
  0x33   :  { %7080 = vmatprep.subr.bf16.mxu1 %v7079_v16  ;;  %v8394_v17 = vpack.c.bf16 %v481_v13, %v477_v12 }
  0x35   :  { %7050 = vmatpush1.bf16.msra.mxu0 %v7049_v21  ;;  %v478_v21 = vld [vmem:[%s9398_s1 + $0x4e0] sm:$0xff] }
  0x36   :  { %7082 = vmatpush3.bf16.msra.mxu1 %v7079_v16  ;;  %7052 = vmatprep.subr.bf16.mxu0 %v7051_v22  ;;  %v8388_v16 = vpack.c.bf16 %v472_v8, %v468_v7  ;;  %v482_v22 = vld [vmem:[%s9398_s1 + $0x518] sm:$0xff] }
  0x37   :  { %7084 = vmatprep.subr.bf16.mxu1 %v7083_v25  ;;  %v8418_v24 = vpack.c.bf16 %v482_v22, %v478_v21 }
  0x39   :  { %7054 = vmatpush1.bf16.msra.mxu0 %v7053_v30 }
  0x3a   :  { %7086 = vmatpush3.bf16.msra.mxu1 %v7083_v25  ;;  %7056 = vmatprep.subr.bf16.mxu0 %v7055_v31 }
  0x3b   :  { %7088 = vmatprep.subr.bf16.mxu1 %v7087_v34 }
  0x3d   :  { %7058 = vmatpush1.bf16.msra.mxu0 %v7057_v39  ;;  %v484_v39 = vld [vmem:[%s9400_s4] ss:$8 sm:$0x7] }
  0x3e   :  { %7090 = vmatpush3.bf16.msra.mxu1 %v7087_v34  ;;  %7060 = vmatprep.subr.bf16.mxu0 %v7059_v40  ;;  %v8440_v34 = vshrl.u32 %v486_v33, 7 }
  0x3f   :  { %7092 = vmatprep.subr.bf16.mxu1 %v7091_v43 }
  0x40   :  { %v8443_v37 = vsub.s32 0, %v8440_v34  ;;  %v8449_v40 = vsub.s32 1, %v8440_v34  ;;  %v496_v22 = vsub.s32 2, %v8440_v34 }
  0x41   :  { %7062 = vmatpush1.bf16.msra.mxu0 %v7061_v47 }
  0x42   :  { %7094 = vmatpush3.bf16.msra.mxu1 %v7091_v43  ;;  %7096 = vmatprep.subr.bf16.mxu0 %v8292_v48  ;;  %v8452_v44 = vrot.slane %v484_v39, %v8443_v37  ;;  %v8455_v45 = vrot.slane %v484_v39, %v8449_v40 }
  0x43   :  { %7103 = vmatprep.subr.bf16.mxu1 %v7891_v61 }
  0x44   :  { %353 = vmatmul.mubr.f32.vlgmr.msra.gmra.mrb[4].mxu0 %v8157_v46  ;;  %v8353_v46 = vpack.c.bf16 %v473_v1, %v469_v0 }
  0x45   :  { %6713 = vmatmul.mubr.f32.vlgmr.msra.gmra.mrb[4].mxu1 %v8182_v57  ;;  %7098 = vmatpush1.bf16.msra.mxu0 %v8312_v55 }
  0x46   :  { %7105 = vmatpush3.bf16.msra.mxu1 %v8315_v56  ;;  %358 = vmatprep.mubr.f32.mxu0 %v7890_v3 }
  0x47   :  { %7100 = vmatprep.subr.bf16.mxu0 %v8327_v62  ;;  %7106 = vmatprep.subr.bf16.mxu1 %v7891_v61 }
  0x48   :  { %359 = vmatmul.mubr.f32.gmra.mrb[6].mxu0 %v8182_v57  ;;  %6723 = vmatprep.mubr.msk.f32.mxu1 %vm7892_vm0, %v7890_v3  ;;  %v8392_v57 = vpack.c.bf16 %v474_v11, %v470_v9 }
  0x49   :  { %7102 = vmatpush1.bf16.msra.mxu0 %v8347_v5  ;;  %576 = vmatprep.mubr.f32.mxu0 %v7890_v3 }
  0x4a   :  { %7108 = vmatpush3.bf16.msra.mxu1 %v8351_v6  ;;  %7110 = vmatprep.subr.bf16.mxu0 %v8353_v46 }
  0x4b   :  { %7118 = vmatprep.subr.bf16.mxu1 %v8366_v10 }
  0x4c   :  { %577 = vmatmul.mubr.f32.vlgmr.msra.gmra.mrb[8].mxu0 %v7890_v3 }
  0x4d   :  { %6724 = vmatmul.mubr.f32.vlgmr.msra.gmra.mrb[6].mxu1 %v7890_v3  ;;  %7112 = vmatpush1.bf16.msra.mxu0 %v8388_v16 }
  0x4e   :  { %7120 = vmatpush1.bf16.msra.mxu1 %v8392_v57  ;;  %7114 = vmatprep.subr.bf16.mxu0 %v8394_v17 }
  0x4f   :  { %7122 = vmatprep.subr.bf16.mxu1 %v8403_v20  ;;  %738 = vmatprep.mubr.f32.mxu0 %v7890_v3 }
  0x50   :  { %809 = vmatprep.mubr.f32.mxu1 %v7890_v3 }
  0x51   :  { %7116 = vmatpush1.bf16.msra.mxu0 %v8414_v23 }
  0x52   :  { %7124 = vmatpush1.bf16.msra.mxu1 %v8418_v24  ;;  %7126 = vmatprep.subr.bf16.mxu0 %v8292_v48 }
  0x53   :  { %7133 = vmatprep.subr.bf16.mxu1 %v7891_v61 }
  0x54   :  { %739 = vmatmul.mubr.f32.vlgmr.msra.gmra.mrb[10].mxu0 %v7890_v3 }
  0x55   :  { %810 = vmatmul.mubr.f32.vlgmr.msra.gmra.mrb[8].mxu1 %v7890_v3  ;;  %7128 = vmatpush1.bf16.msra.mxu0 %v8312_v55 }
  0x56   :  { %7135 = vmatpush3.bf16.msra.mxu1 %v8315_v56  ;;  %7130 = vmatprep.subr.bf16.mxu0 %v8327_v62 }
  0x57   :  { %7136 = vmatprep.subr.bf16.mxu1 %v7891_v61  ;;  %918 = vmatprep.mubr.f32.mxu0 %v7890_v3 }
  0x58   :  { %6734 = vmatprep.mubr.msk.f32.mxu1 %vm7892_vm0, %v7890_v3 }
  0x59   :  { %7132 = vmatpush1.bf16.msra.mxu0 %v8347_v5 }
  0x5a   :  { %7138 = vmatpush3.bf16.msra.mxu1 %v8351_v6  ;;  %7140 = vmatprep.subr.bf16.mxu0 %v8353_v46 }
  0x5b   :  { %7148 = vmatprep.subr.bf16.mxu1 %v8366_v10 }
  0xf7   :  { %v200_v25 = vpop.f32.mrb[0].mxu0 }
  0xf8   :  { %440 = vst [vmem:[#allocation2] sm:$0xff] %v200_v25  ;;  %v202_v26 = vpop.f32.mrb[1].mxu0  ;;  %v277_v27 = vpop.f32.mrb[0].mxu1 }
  0xf9   :  { %441 = vst [vmem:[#allocation2 + $0x8] sm:$0xff] %v202_v26  ;;  %442 = vst [vmem:[#allocation2 + $0x10] sm:$0xff] %v277_v27  ;;  %v279_v28 = vpop.f32.mrb[1].mxu1 }
  0xfa   :  { %443 = vst [vmem:[#allocation2 + $0x18] sm:$0xff] %v279_v28 }
  0xfb   :  { %v206_v29 = vpop.f32.mrb[2].mxu0 }
  0xfc   :  { %447 = vst [vmem:[#allocation2 + $0x38] sm:$0xff] %v206_v29  ;;  %v208_v30 = vpop.f32.mrb[3].mxu0  ;;  %v283_v31 = vpop.f32.mrb[2].mxu1 }
  0xfd   :  { %448 = vst [vmem:[#allocation2 + $0x40] sm:$0xff] %v208_v30  ;;  %449 = vst [vmem:[#allocation2 + $0x48] sm:$0xff] %v283_v31  ;;  %v285_v32 = vpop.f32.mrb[3].mxu1  ;;  %v8462_v30 = vrot.slane %v484_v39, %v496_v22 }
  0xfe   :  { %450 = vst [vmem:[#allocation2 + $0x50] sm:$0xff] %v285_v32 }
  0xff   :  { %v501_v52 = vld [vmem:[#allocation2] sm:$0x3] }
 0x100   :  { %v502_v59 = vld [vmem:[#allocation2 + $0x8] sm:$0x3] }
 0x101   :  { %v504_v1 = vld [vmem:[#allocation2 + $0x18] sm:$0x3] }
 0x117   :  { %v354_v35 = vpop.f32.mrb[4].mxu0 }
 0x118   :  { %444 = vst [vmem:[#allocation2 + $0x20] sm:$0xff] %v354_v35  ;;  %v356_v36 = vpop.f32.mrb[5].mxu0  ;;  %v6714_v38 = vpop.f32.mrb[4].mxu1 }
 0x119   :  { %445 = vst [vmem:[#allocation2 + $0x28] sm:$0xff] %v356_v36  ;;  %453 = vst [vmem:[#allocation2 + $0x68] sm:$0xff] %v6714_v38  ;;  %v431_v41 = vpop.f32.mrb[5].mxu1 }
 0x11a   :  { %446 = vst [vmem:[#allocation2 + $0x30] sm:$0xff] %v431_v41 }
 0x11b   :  { %v360_v42 = vpop.f32.mrb[6].mxu0 }
 0x11c   :  { %451 = vst [vmem:[#allocation2 + $0x58] sm:$0xff] %v360_v42  ;;  %v362_v43 = vpop.f32.mrb[7].mxu0  ;;  %v503_v42 = vld [vmem:[#allocation2 + $0x10] sm:$0x3] }
 0x11d   :  { %452 = vst [vmem:[#allocation2 + $0x60] sm:$0xff] %v362_v43 }
 0x11f   :  { %v578_v47 = vpop.f32.mrb[8].mxu0  ;;  %v505_v8 = vld [vmem:[#allocation2 + $0x20] sm:$0x3] }
 0x120   :  { %v579_v49 = vadd.f32 %v578_v47, %v8452_v44  ;;  %v580_v50 = vpop.f32.mrb[9].mxu0  ;;  %v649_v51 = vpop.f32.mrb[6].mxu1  ;;  %v506_v26 = vld [vmem:[#allocation2 + $0x28] sm:$0x3] }
 0x121   :  { %v581_v53 = vadd.f32 %v580_v50, %v8455_v45  ;;  %v6725_v54 = vpop.f32.mrb[7].mxu1  ;;  %v507_v15 = vld [vmem:[#allocation2 + $0x30] sm:$0x3]  ;;  %v650_v36 = vadd.f32 %v649_v51, %v8462_v30 }
 0x122   :  { %v653_v58 = vadd.f32 %v579_v49, %v501_v52 }
 0x123   :  { %v660_v60 = vadd.f32 %v581_v53, %v502_v59 }
 0x124   :  { %v6413_v63 = vmul.f32 -1.442695, %v653_v58 }
 0x125   :  { %v6414_v0 = vmul.f32 -1.442695, %v660_v60 }
 0x126   :  { %7598 = vpow2.f32 %v6413_v63 }
 0x127   :  { %v740_v2 = vpop.f32.mrb[10].mxu0  ;;  %7600 = vpow2.f32 %v6414_v0 }
 0x128   :  { %v816_v4 = vadd.f32 %v740_v2, %v504_v1  ;;  %v811_v7 = vpop.f32.mrb[8].mxu1  ;;  %v742_v9 = vpop.f32.mrb[11].mxu0 }
 0x129   :  { %v817_v11 = vadd.f32 %v742_v9, %v505_v8  ;;  %v813_v12 = vpop.f32.mrb[9].mxu1  ;;  %v818_v27 = vadd.f32 %v811_v7, %v506_v26 }
 0x12a   :  { %v6415_v13 = vmul.f32 -1.442695, %v816_v4  ;;  %v819_v18 = vadd.f32 %v813_v12, %v507_v15 }
 0x12b   :  { %v6416_v14 = vmul.f32 -1.442695, %v817_v11 }
 0x12c   :  { %7602 = vpow2.f32 %v6415_v13  ;;  %v6417_v25 = vmul.f32 -1.442695, %v819_v18  ;;  %v844_v18 = vld [vmem:[#allocation2] sm:$0xc] }
 0x12d   :  { %7604 = vpow2.f32 %v6416_v14 }
 0x130   :  { %v7599_v19 = vpop.eup %7598 }
 0x131   :  { %v657_v21 = vadd.f32 1.0, %v7599_v19  ;;  %v7601_v28 = vpop.eup %7600 }
 0x132   :  { %v664_v35 = vadd.f32 1.0, %v7601_v28 }
 0x133   :  { %7606 = vrcp.f32 %v657_v21 }
 0x134   :  { %7608 = vpow2.f32 %v6417_v25  ;;  %v845_v25 = vld [vmem:[#allocation2 + $0x8] sm:$0xc] }
 0x135   :  { %7610 = vtanh.f32 %v818_v27 }
 0x136   :  { %v7603_v29 = vpop.eup %7602 }
 0x137   :  { %v7605_v31 = vpop.eup %7604  ;;  %v823_v32 = vadd.f32 1.0, %v7603_v29 }
 0x138   :  { %v829_v33 = vadd.f32 1.0, %v7605_v31 }
 0x139   :  { %7612 = vrcp.f32 %v823_v32 }
 0x13a   :  { %7614 = vrcp.f32 %v829_v33 }
 0x13b   :  { %7616 = vrcp.f32 %v664_v35 }
 0x13d   :  { %v7607_v38 = vpop.eup %7606 }
 0x13e   :  { %v667_v41 = vmul.f32 %v7607_v38, %v650_v36  ;;  %v7609_v43 = vpop.eup %7608  ;;  %v847_v36 = vld [vmem:[#allocation2 + $0x18] sm:$0xc] }
 0x13f   :  { %v7611_v49 = vpop.eup %7610  ;;  %v836_v50 = vadd.f32 1.0, %v7609_v43 }
 0x140   :  { %v668_v47 = vadd.f32 %v667_v41, %v503_v42  ;;  %v848_v42 = vld [vmem:[#allocation2 + $0x20] sm:$0xc] }
 0x142   :  { %7618 = vtanh.f32 %v668_v47 }
 0x143   :  { %v7613_v39 = vpop.eup %7612  ;;  %7620 = vrcp.f32 %v836_v50  ;;  %v850_v50 = vld [vmem:[#allocation2 + $0x30] sm:$0xc] }
 0x144   :  { %v7615_v52 = vpop.eup %7614  ;;  %v840_v53 = vmul.f32 %v7613_v39, %v7611_v49 }
 0x145   :  { %v839_v54 = vmul.f32 0.0, %v7615_v52  ;;  %v7617_v59 = vpop.eup %7616 }
 0x146   :  { %v670_v51 = vsub.f32 1.0, %v7617_v59  ;;  %v672_v0 = vmul.f32 0.0, %v7617_v59 }
 0x147   :  { %v8465_v58 = vadd.f32 %v840_v53, %v839_v54 }
 0x149   :  { %7622 = vtanh.f32 %v8465_v58 }
 0x14c   :  { %v7619_v60 = vpop.eup %7618 }
 0x14d   :  { %v671_v63 = vmul.f32 %v7619_v60, %v670_v51  ;;  %v7621_v2 = vpop.eup %7620 }
 0x14f   :  { %v8468_v1 = vadd.f32 %v672_v0, %v671_v63  ;;  %v849_v63 = vld [vmem:[#allocation2 + $0x28] sm:$0xc] }
 0x151   :  { %6418 = vmatmul.mubr.msk.f32.vlgmr.msra.gmra.mrb[12].mxu0 %vm508_vm1, %v8468_v1  ;;  %6735 = vmatmul.mubr.msk.f32.vlgmr.msra.gmra.mrb[10].mxu1 %vm508_vm1, %v8468_v1 }
 0x152   :  { %7142 = vmatpush1.bf16.msra.mxu0 %v8388_v16  ;;  %7150 = vmatpush1.bf16.msra.mxu1 %v8392_v57 }
 0x153   :  { %v7623_v4 = vpop.eup %7622  ;;  %7144 = vmatprep.subr.bf16.mxu0 %v8394_v17  ;;  %7152 = vmatprep.subr.bf16.mxu1 %v8403_v20 }
 0x154   :  { %1094 = vmatprep.mubr.f32.mxu0 %v7890_v3  ;;  %1165 = vmatprep.mubr.f32.mxu1 %v7890_v3  ;;  %v843_v7 = vmul.f32 %v7623_v4, %v7621_v2 }
 0x156   :  { %7146 = vmatpush1.bf16.msra.mxu0 %v8414_v23  ;;  %7154 = vmatpush1.bf16.msra.mxu1 %v8418_v24 }
 0x157   :  { %7156 = vmatprep.subr.bf16.mxu0 %v8292_v48  ;;  %7163 = vmatprep.subr.bf16.mxu1 %v7891_v61 }
 0x159   :  { %6422 = vmatmul.mubr.msk.f32.vlgmr.msra.gmra.mrb[14].mxu0 %vm508_vm1, %v843_v7  ;;  %6423 = vmatmul.mubr.msk.f32.vlgmr.msra.gmra.mrb[12].mxu1 %vm508_vm1, %v843_v7 }
 0x15a   :  { %7158 = vmatpush1.bf16.msra.mxu0 %v8312_v55  ;;  %7165 = vmatpush3.bf16.msra.mxu1 %v8315_v56 }
 0x15b   :  { %7160 = vmatprep.subr.bf16.mxu0 %v8327_v62  ;;  %7166 = vmatprep.subr.bf16.mxu1 %v7891_v61 }
 0x15c   :  { %1290 = vmatprep.mubr.f32.mxu0 %v7890_v3  ;;  %6745 = vmatprep.mubr.msk.f32.mxu1 %vm7892_vm0, %v7890_v3 }
 0x15e   :  { %7162 = vmatpush1.bf16.msra.mxu0 %v8347_v5  ;;  %7168 = vmatpush3.bf16.msra.mxu1 %v8351_v6 }
 0x15f   :  { %7170 = vmatprep.subr.bf16.mxu0 %v8353_v46  ;;  %7178 = vmatprep.subr.bf16.mxu1 %v8366_v10 }
 0x224   :  { %v920_v8 = vpop.f32.mrb[12].mxu0  ;;  %v991_v9 = vpop.f32.mrb[10].mxu1 }
 0x225   :  { %v921_v11 = vadd.f32 %v920_v8, %v8452_v44  ;;  %v922_v12 = vpop.f32.mrb[13].mxu0  ;;  %v6736_v13 = vpop.f32.mrb[11].mxu1 }
 0x226   :  { %v923_v14 = vadd.f32 %v922_v12, %v8455_v45 }
 0x227   :  { %v996_v15 = vrot.slane %v921_v11, 6  ;;  %v992_v11 = vadd.f32 %v991_v9, %v8462_v30 }
 0x228   :  { %v1006_v19 = vrot.slane %v923_v14, 6 }
 0x229   :  { %v998_v21 = vadd.f32 %v996_v15, %v844_v18  ;;  %v1016_v13 = vrot.slane %v992_v11, 6  ;;  %v1023_v15 = vrot.slane %v8468_v1, 6 }
 0x22a   :  { %v1008_v26 = vadd.f32 %v1006_v19, %v845_v25 }
 0x22b   :  { %v6420_v27 = vmul.f32 -1.442695, %v998_v21  ;;  %v846_v21 = vld [vmem:[#allocation2 + $0x10] sm:$0xc] }
 0x22c   :  { %v6421_v28 = vmul.f32 -1.442695, %v1008_v26  ;;  %v1096_v29 = vpop.f32.mrb[14].mxu0  ;;  %v1167_v31 = vpop.f32.mrb[12].mxu1 }
 0x22d   :  { %7624 = vpow2.f32 %v6420_v27  ;;  %v1176_v32 = vrot.slane %v1096_v29, 6  ;;  %v1098_v33 = vpop.f32.mrb[15].mxu0  ;;  %v1169_v35 = vpop.f32.mrb[13].mxu1  ;;  %v1178_v54 = vrot.slane %v1167_v31, 6  ;;  %v1208_v31 = vrot.slane %v8465_v58, 6 }
 0x22e   :  { %7626 = vpow2.f32 %v6421_v28  ;;  %v1177_v38 = vrot.slane %v1098_v33, 6  ;;  %v1179_v39 = vrot.slane %v1169_v35, 6 }
 0x22f   :  { %v1184_v41 = vadd.f32 %v1176_v32, %v847_v36  ;;  %v1186_v2 = vadd.f32 %v1178_v54, %v849_v63  ;;  %v1215_v63 = vld [vmem:[#allocation2] sm:$0x30] }
 0x230   :  { %v1185_v43 = vadd.f32 %v1177_v38, %v848_v42  ;;  %v1187_v52 = vadd.f32 %v1179_v39, %v850_v50 }
 0x231   :  { %v6424_v47 = vmul.f32 -1.442695, %v1184_v41 }
 0x232   :  { %v6425_v49 = vmul.f32 -1.442695, %v1185_v43  ;;  %v6426_v0 = vmul.f32 -1.442695, %v1187_v52 }
 0x233   :  { %7628 = vpow2.f32 %v6424_v47 }
 0x234   :  { %7630 = vpow2.f32 %v6425_v49 }
 0x237   :  { %v7625_v53 = vpop.eup %7624 }
 0x238   :  { %v7627_v59 = vpop.eup %7626  ;;  %v1002_v51 = vadd.f32 1.0, %v7625_v53 }
 0x239   :  { %v1012_v60 = vadd.f32 1.0, %v7627_v59 }
 0x23a   :  { %7632 = vrcp.f32 %v1002_v51 }
 0x23b   :  { %7634 = vrcp.f32 %v1012_v60 }
 0x23c   :  { %7636 = vpow2.f32 %v6426_v0 }
 0x23d   :  { %v7629_v4 = vpop.eup %7628  ;;  %7638 = vtanh.f32 %v1186_v2 }
 0x23e   :  { %v7631_v7 = vpop.eup %7630  ;;  %v1191_v8 = vadd.f32 1.0, %v7629_v4  ;;  %v1216_v4 = vld [vmem:[#allocation2 + $0x8] sm:$0x30] }
 0x23f   :  { %v1197_v12 = vadd.f32 1.0, %v7631_v7 }
 0x240   :  { %7640 = vrcp.f32 %v1191_v8 }
 0x241   :  { %7642 = vrcp.f32 %v1197_v12 }
 0x244   :  { %v7633_v14 = vpop.eup %7632 }
 0x245   :  { %v7635_v18 = vpop.eup %7634  ;;  %v1018_v19 = vmul.f32 %v7633_v14, %v1016_v13 }
 0x246   :  { %v1025_v25 = vmul.f32 %v7635_v18, %v1023_v15  ;;  %v7637_v27 = vpop.eup %7636  ;;  %v1021_v1 = vsub.f32 1.0, %v7635_v18 }
 0x247   :  { %v1019_v26 = vadd.f32 %v1018_v19, %v846_v21  ;;  %v7639_v28 = vpop.eup %7638  ;;  %v1204_v33 = vadd.f32 1.0, %v7637_v27  ;;  %v1218_v19 = vld [vmem:[#allocation2 + $0x18] sm:$0x30] }
 0x249   :  { %7644 = vtanh.f32 %v1019_v26  ;;  %v1219_v26 = vld [vmem:[#allocation2 + $0x20] sm:$0x30] }
 0x24a   :  { %v7641_v29 = vpop.eup %7640  ;;  %7646 = vrcp.f32 %v1204_v33 }
 0x24b   :  { %v7643_v9 = vpop.eup %7642  ;;  %v1211_v32 = vmul.f32 %v7641_v29, %v7639_v28 }
 0x24c   :  { %v1210_v35 = vmul.f32 %v7643_v9, %v1208_v31  ;;  %v1221_v9 = vld [vmem:[#allocation2 + $0x30] sm:$0x30] }
 0x24e   :  { %v8502_v36 = vadd.f32 %v1211_v32, %v1210_v35 }
 0x250   :  { %7648 = vtanh.f32 %v8502_v36 }
 0x253   :  { %v7645_v38 = vpop.eup %7644 }
 0x254   :  { %v1022_v41 = vmul.f32 %v7645_v38, %v1021_v1  ;;  %v7647_v47 = vpop.eup %7646 }
 0x256   :  { %v8505_v42 = vadd.f32 %v1025_v25, %v1022_v41 }
 0x258   :  { %v1223_v43 = vrot.slane %v8505_v42, 2 }
 0x25a   :  { %v7649_v49 = vpop.eup %7648  ;;  %6427 = vmatmul.mubr.msk.f32.vlgmr.msra.gmra.mrb[16].mxu0 %vm508_vm1, %v1223_v43  ;;  %6746 = vmatmul.mubr.msk.f32.vlgmr.msra.gmra.mrb[14].mxu1 %vm508_vm1, %v1223_v43  ;;  %v1220_v43 = vld [vmem:[#allocation2 + $0x28] sm:$0x30] }
 0x25b   :  { %7172 = vmatpush1.bf16.msra.mxu0 %v8388_v16  ;;  %7180 = vmatpush1.bf16.msra.mxu1 %v8392_v57  ;;  %v1214_v58 = vmul.f32 %v7649_v49, %v7647_v47 }
 0x25c   :  { %7174 = vmatprep.subr.bf16.mxu0 %v8394_v17  ;;  %7182 = vmatprep.subr.bf16.mxu1 %v8403_v20 }
 0x25d   :  { %1467 = vmatprep.mubr.f32.mxu0 %v7890_v3  ;;  %1538 = vmatprep.mubr.f32.mxu1 %v7890_v3  ;;  %v1400_v39 = vrot.slane %v1214_v58, 2 }
 0x25f   :  { %7176 = vmatpush1.bf16.msra.mxu0 %v8414_v23  ;;  %7184 = vmatpush1.bf16.msra.mxu1 %v8418_v24 }
 0x260   :  { %7186 = vmatprep.subr.bf16.mxu0 %v8292_v48  ;;  %7193 = vmatprep.subr.bf16.mxu1 %v7891_v61 }
 0x262   :  { %6431 = vmatmul.mubr.msk.f32.vlgmr.msra.gmra.mrb[18].mxu0 %vm508_vm1, %v1400_v39  ;;  %6432 = vmatmul.mubr.msk.f32.vlgmr.msra.gmra.mrb[16].mxu1 %vm508_vm1, %v1400_v39 }
 0x263   :  { %7188 = vmatpush1.bf16.msra.mxu0 %v8312_v55  ;;  %7195 = vmatpush3.bf16.msra.mxu1 %v8315_v56 }
 0x264   :  { %7190 = vmatprep.subr.bf16.mxu0 %v8327_v62  ;;  %7196 = vmatprep.subr.bf16.mxu1 %v7891_v61 }
 0x265   :  { %1663 = vmatprep.mubr.f32.mxu0 %v7890_v3  ;;  %6756 = vmatprep.mubr.msk.f32.mxu1 %vm7892_vm0, %v7890_v3 }
 0x267   :  { %7192 = vmatpush1.bf16.msra.mxu0 %v8347_v5  ;;  %7198 = vmatpush3.bf16.msra.mxu1 %v8351_v6 }
 0x268   :  { %7200 = vmatprep.subr.bf16.mxu0 %v8353_v46  ;;  %7208 = vmatprep.subr.bf16.mxu1 %v8366_v10 }
 0x32d   :  { %v1292_v50 = vpop.f32.mrb[16].mxu0  ;;  %v1363_v52 = vpop.f32.mrb[14].mxu1 }
 0x32e   :  { %v1293_v53 = vadd.f32 %v1292_v50, %v8452_v44  ;;  %v1294_v54 = vpop.f32.mrb[17].mxu0  ;;  %v6747_v59 = vpop.f32.mrb[15].mxu1 }
 0x32f   :  { %v1295_v51 = vadd.f32 %v1294_v54, %v8455_v45 }
 0x330   :  { %v1368_v60 = vrot.slane %v1293_v53, 4  ;;  %v1364_v53 = vadd.f32 %v1363_v52, %v8462_v30 }
 0x331   :  { %v1378_v0 = vrot.slane %v1295_v51, 4 }
 0x332   :  { %v1370_v2 = vadd.f32 %v1368_v60, %v1215_v63  ;;  %v1388_v59 = vrot.slane %v1364_v53, 4  ;;  %v1395_v60 = vrot.slane %v8505_v42, 6 }
 0x333   :  { %v1380_v7 = vadd.f32 %v1378_v0, %v1216_v4 }
 0x334   :  { %v6429_v8 = vmul.f32 -1.442695, %v1370_v2  ;;  %v1217_v2 = vld [vmem:[#allocation2 + $0x10] sm:$0x30] }
 0x335   :  { %v6430_v11 = vmul.f32 -1.442695, %v1380_v7  ;;  %v1469_v12 = vpop.f32.mrb[18].mxu0  ;;  %v1540_v13 = vpop.f32.mrb[16].mxu1 }
 0x336   :  { %7650 = vpow2.f32 %v6429_v8  ;;  %v1549_v14 = vrot.slane %v1469_v12, 4  ;;  %v1471_v15 = vpop.f32.mrb[19].mxu0  ;;  %v1542_v18 = vpop.f32.mrb[17].mxu1  ;;  %v1551_v35 = vrot.slane %v1540_v13, 4  ;;  %v1581_v13 = vrot.slane %v8502_v36, 6 }
 0x337   :  { %7652 = vpow2.f32 %v6430_v11  ;;  %v1550_v21 = vrot.slane %v1471_v15, 4  ;;  %v1552_v31 = vrot.slane %v1542_v18, 4 }
 0x338   :  { %v1557_v25 = vadd.f32 %v1549_v14, %v1218_v19  ;;  %v1559_v49 = vadd.f32 %v1551_v35, %v1220_v43  ;;  %v1588_v43 = vld [vmem:[#allocation2] sm:$0xc0] }
 0x339   :  { %v1558_v27 = vadd.f32 %v1550_v21, %v1219_v26  ;;  %v1560_v32 = vadd.f32 %v1552_v31, %v1221_v9 }
 0x33a   :  { %v6433_v28 = vmul.f32 -1.442695, %v1557_v25 }
 0x33b   :  { %v6434_v29 = vmul.f32 -1.442695, %v1558_v27  ;;  %v6435_v47 = vmul.f32 -1.442695, %v1560_v32 }
 0x33c   :  { %7654 = vpow2.f32 %v6433_v28 }
 0x33d   :  { %7656 = vpow2.f32 %v6434_v29 }
 0x340   :  { %v7651_v33 = vpop.eup %7650 }
 0x341   :  { %v7653_v1 = vpop.eup %7652  ;;  %v1374_v38 = vadd.f32 1.0, %v7651_v33 }
 0x342   :  { %v1384_v41 = vadd.f32 1.0, %v7653_v1 }
 0x343   :  { %7658 = vrcp.f32 %v1374_v38 }
 0x344   :  { %7660 = vrcp.f32 %v1384_v41 }
 0x345   :  { %7662 = vpow2.f32 %v6435_v47 }
 0x346   :  { %v7655_v58 = vpop.eup %7654  ;;  %7664 = vtanh.f32 %v1559_v49 }
 0x347   :  { %v7657_v39 = vpop.eup %7656  ;;  %v1564_v50 = vadd.f32 1.0, %v7655_v58  ;;  %v1589_v58 = vld [vmem:[#allocation2 + $0x8] sm:$0xc0] }
 0x348   :  { %v1570_v54 = vadd.f32 1.0, %v7657_v39 }
 0x349   :  { %7666 = vrcp.f32 %v1564_v50 }
 0x34a   :  { %7668 = vrcp.f32 %v1570_v54 }
 0x34d   :  { %v7659_v51 = vpop.eup %7658 }
 0x34e   :  { %v7661_v63 = vpop.eup %7660  ;;  %v1390_v0 = vmul.f32 %v7659_v51, %v1388_v59 }
 0x34f   :  { %v1397_v4 = vmul.f32 %v7661_v63, %v1395_v60  ;;  %v7663_v8 = vpop.eup %7662  ;;  %v1393_v42 = vsub.f32 1.0, %v7661_v63 }
 0x350   :  { %v1391_v7 = vadd.f32 %v1390_v0, %v1217_v2  ;;  %v7665_v11 = vpop.eup %7664  ;;  %v1577_v15 = vadd.f32 1.0, %v7663_v8  ;;  %v1591_v0 = vld [vmem:[#allocation2 + $0x18] sm:$0xc0] }
 0x352   :  { %7670 = vtanh.f32 %v1391_v7  ;;  %v1592_v7 = vld [vmem:[#allocation2 + $0x20] sm:$0xc0] }
 0x353   :  { %v7667_v12 = vpop.eup %7666  ;;  %7672 = vrcp.f32 %v1577_v15 }
 0x354   :  { %v7669_v52 = vpop.eup %7668  ;;  %v1584_v14 = vmul.f32 %v7667_v12, %v7665_v11 }
 0x355   :  { %v1583_v18 = vmul.f32 %v7669_v52, %v1581_v13  ;;  %v1594_v52 = vld [vmem:[#allocation2 + $0x30] sm:$0xc0] }
 0x357   :  { %v8538_v19 = vadd.f32 %v1584_v14, %v1583_v18 }
 0x359   :  { %7674 = vtanh.f32 %v8538_v19 }
 0x35c   :  { %v7671_v21 = vpop.eup %7670 }
 0x35d   :  { %v1394_v25 = vmul.f32 %v7671_v21, %v1393_v42  ;;  %v7673_v28 = vpop.eup %7672 }
 0x35f   :  { %v8541_v26 = vadd.f32 %v1397_v4, %v1394_v25 }
 0x361   :  { %v1596_v27 = vrot.slane %v8541_v26, 4 }
 0x363   :  { %v7675_v29 = vpop.eup %7674  ;;  %6436 = vmatmul.mubr.msk.f32.vlgmr.msra.gmra.mrb[20].mxu0 %vm508_vm1, %v1596_v27  ;;  %6757 = vmatmul.mubr.msk.f32.vlgmr.msra.gmra.mrb[18].mxu1 %vm508_vm1, %v1596_v27  ;;  %v1593_v27 = vld [vmem:[#allocation2 + $0x28] sm:$0xc0] }
 0x364   :  { %7202 = vmatpush1.bf16.msra.mxu0 %v8388_v16  ;;  %7210 = vmatpush1.bf16.msra.mxu1 %v8392_v57  ;;  %v1587_v36 = vmul.f32 %v7675_v29, %v7673_v28 }
 0x365   :  { %7204 = vmatprep.subr.bf16.mxu0 %v8394_v17  ;;  %7212 = vmatprep.subr.bf16.mxu1 %v8403_v20 }
 0x366   :  { %1840 = vmatprep.mubr.f32.mxu0 %v7890_v3  ;;  %1911 = vmatprep.mubr.f32.mxu1 %v7890_v3  ;;  %v1773_v31 = vrot.slane %v1587_v36, 4 }
 0x368   :  { %7206 = vmatpush1.bf16.msra.mxu0 %v8414_v23  ;;  %7214 = vmatpush1.bf16.msra.mxu1 %v8418_v24 }
 0x369   :  { %7216 = vmatprep.subr.bf16.mxu0 %v8292_v48  ;;  %7223 = vmatprep.subr.bf16.mxu1 %v7891_v61 }
 0x36b   :  { %6440 = vmatmul.mubr.msk.f32.vlgmr.msra.gmra.mrb[22].mxu0 %vm508_vm1, %v1773_v31  ;;  %6441 = vmatmul.mubr.msk.f32.vlgmr.msra.gmra.mrb[20].mxu1 %vm508_vm1, %v1773_v31 }
 0x36c   :  { %7218 = vmatpush1.bf16.msra.mxu0 %v8312_v55  ;;  %7225 = vmatpush3.bf16.msra.mxu1 %v8315_v56 }
 0x36d   :  { %7220 = vmatprep.subr.bf16.mxu0 %v8327_v62  ;;  %7226 = vmatprep.subr.bf16.mxu1 %v7891_v61 }
 0x36e   :  { %2036 = vmatprep.mubr.f32.mxu0 %v7890_v3  ;;  %6767 = vmatprep.mubr.msk.f32.mxu1 %vm7892_vm0, %v7890_v3 }
 0x370   :  { %7222 = vmatpush1.bf16.msra.mxu0 %v8347_v5  ;;  %7228 = vmatpush3.bf16.msra.mxu1 %v8351_v6 }
 0x371   :  { %7230 = vmatprep.subr.bf16.mxu0 %v8353_v46  ;;  %7238 = vmatprep.subr.bf16.mxu1 %v8366_v10 }
 0x436   :  { %v1665_v9 = vpop.f32.mrb[20].mxu0  ;;  %v1736_v32 = vpop.f32.mrb[18].mxu1 }
 0x437   :  { %v1666_v33 = vadd.f32 %v1665_v9, %v8452_v44  ;;  %v1667_v35 = vpop.f32.mrb[21].mxu0  ;;  %v6758_v1 = vpop.f32.mrb[19].mxu1 }
 0x438   :  { %v1668_v38 = vadd.f32 %v1667_v35, %v8455_v45 }
 0x439   :  { %v1741_v41 = vrot.slane %v1666_v33, 2  ;;  %v1737_v33 = vadd.f32 %v1736_v32, %v8462_v30 }
 0x43a   :  { %v1751_v47 = vrot.slane %v1668_v38, 2 }
 0x43b   :  { %v1743_v49 = vadd.f32 %v1741_v41, %v1588_v43  ;;  %v1761_v1 = vrot.slane %v1737_v33, 2  ;;  %v1768_v41 = vrot.slane %v8541_v26, 6 }
 0x43c   :  { %v1753_v39 = vadd.f32 %v1751_v47, %v1589_v58 }
 0x43d   :  { %v6438_v50 = vmul.f32 -1.442695, %v1743_v49  ;;  %v1590_v49 = vld [vmem:[#allocation2 + $0x10] sm:$0xc0] }
 0x43e   :  { %v6439_v53 = vmul.f32 -1.442695, %v1753_v39  ;;  %v1842_v54 = vpop.f32.mrb[22].mxu0  ;;  %v1913_v59 = vpop.f32.mrb[20].mxu1 }
 0x43f   :  { %7676 = vpow2.f32 %v6438_v50  ;;  %v1922_v51 = vrot.slane %v1842_v54, 2  ;;  %v1844_v60 = vpop.f32.mrb[23].mxu0  ;;  %v1915_v63 = vpop.f32.mrb[21].mxu1  ;;  %v1924_v18 = vrot.slane %v1913_v59, 2  ;;  %v1954_v59 = vrot.slane %v8538_v19, 6 }
 0x440   :  { %7678 = vpow2.f32 %v6439_v53  ;;  %v1923_v2 = vrot.slane %v1844_v60, 2  ;;  %v1925_v13 = vrot.slane %v1915_v63, 2 }
 0x441   :  { %v1930_v4 = vadd.f32 %v1922_v51, %v1591_v0  ;;  %v1932_v29 = vadd.f32 %v1924_v18, %v1593_v27 }
 0x442   :  { %v1931_v8 = vadd.f32 %v1923_v2, %v1592_v7  ;;  %v1933_v14 = vadd.f32 %v1925_v13, %v1594_v52 }
 0x443   :  { %v6442_v11 = vmul.f32 -1.442695, %v1930_v4 }
 0x444   :  { %v6443_v12 = vmul.f32 -1.442695, %v1931_v8  ;;  %v6444_v28 = vmul.f32 -1.442695, %v1933_v14 }
 0x445   :  { %7680 = vpow2.f32 %v6442_v11 }
 0x446   :  { %7682 = vpow2.f32 %v6443_v12 }
 0x449   :  { %v7677_v15 = vpop.eup %7676 }
 0x44a   :  { %v7679_v42 = vpop.eup %7678  ;;  %v1747_v21 = vadd.f32 1.0, %v7677_v15 }
 0x44b   :  { %v1757_v25 = vadd.f32 1.0, %v7679_v42 }
 0x44c   :  { %7684 = vrcp.f32 %v1747_v21  ;;  %v1961_v21 = vld [vmem:[#allocation2 + $0x38] sm:$0x3] }
 0x44d   :  { %7686 = vrcp.f32 %v1757_v25 }
 0x44e   :  { %7688 = vpow2.f32 %v6444_v28  ;;  %v1962_v28 = vld [vmem:[#allocation2 + $0x40] sm:$0x3] }
 0x44f   :  { %v7681_v36 = vpop.eup %7680  ;;  %7690 = vtanh.f32 %v1932_v29 }
 0x450   :  { %v7683_v31 = vpop.eup %7682  ;;  %v1937_v9 = vadd.f32 1.0, %v7681_v36 }
 0x451   :  { %v1943_v35 = vadd.f32 1.0, %v7683_v31 }
 0x452   :  { %7692 = vrcp.f32 %v1937_v9  ;;  %v1964_v9 = vld [vmem:[#allocation2 + $0x50] sm:$0x3] }
 0x453   :  { %7694 = vrcp.f32 %v1943_v35 }
 0x456   :  { %v7685_v38 = vpop.eup %7684 }
 0x457   :  { %v7687_v43 = vpop.eup %7686  ;;  %v1763_v47 = vmul.f32 %v7685_v38, %v1761_v1  ;;  %v1965_v38 = vld [vmem:[#allocation2 + $0x58] sm:$0x3] }
 0x458   :  { %v1770_v58 = vmul.f32 %v7687_v43, %v1768_v41  ;;  %v7689_v50 = vpop.eup %7688  ;;  %v1766_v26 = vsub.f32 1.0, %v7687_v43 }
 0x459   :  { %v1764_v39 = vadd.f32 %v1763_v47, %v1590_v49  ;;  %v7691_v53 = vpop.eup %7690  ;;  %v1950_v60 = vadd.f32 1.0, %v7689_v50 }
 0x45b   :  { %7696 = vtanh.f32 %v1764_v39  ;;  %v1967_v39 = vld [vmem:[#allocation2 + $0x68] sm:$0x3] }
 0x45c   :  { %v7693_v54 = vpop.eup %7692  ;;  %7698 = vrcp.f32 %v1950_v60 }
 0x45d   :  { %v7695_v32 = vpop.eup %7694  ;;  %v1957_v51 = vmul.f32 %v7693_v54, %v7691_v53 }
 0x45e   :  { %v1956_v63 = vmul.f32 %v7695_v32, %v1954_v59  ;;  %v1966_v59 = vld [vmem:[#allocation2 + $0x60] sm:$0x3] }
 0x460   :  { %v8574_v0 = vadd.f32 %v1957_v51, %v1956_v63 }
 0x462   :  { %7700 = vtanh.f32 %v8574_v0 }
 0x465   :  { %v7697_v2 = vpop.eup %7696 }
 0x466   :  { %v1767_v4 = vmul.f32 %v7697_v2, %v1766_v26  ;;  %v7699_v11 = vpop.eup %7698 }
 0x468   :  { %v1771_v7 = vadd.f32 %v1770_v58, %v1767_v4 }
 0x46a   :  { %v8577_v8 = vrot.slane %v1771_v7, 6 }
 0x46c   :  { %v7701_v12 = vpop.eup %7700  ;;  %6445 = vmatmul.mubr.msk.f32.vlgmr.msra.gmra.mrb[24].mxu0 %vm508_vm1, %v8577_v8  ;;  %6768 = vmatmul.mubr.msk.f32.vlgmr.msra.gmra.mrb[22].mxu1 %vm508_vm1, %v8577_v8 }
 0x46d   :  { %7232 = vmatpush1.bf16.msra.mxu0 %v8388_v16  ;;  %7240 = vmatpush1.bf16.msra.mxu1 %v8392_v57  ;;  %v1960_v19 = vmul.f32 %v7701_v12, %v7699_v11 }
 0x46e   :  { %7234 = vmatprep.subr.bf16.mxu0 %v8394_v17  ;;  %7242 = vmatprep.subr.bf16.mxu1 %v8403_v20 }
 0x46f   :  { %2203 = vmatprep.mubr.f32.mxu0 %v7890_v3  ;;  %2274 = vmatprep.mubr.f32.mxu1 %v7890_v3  ;;  %v2136_v13 = vrot.slane %v1960_v19, 6 }
 0x471   :  { %7236 = vmatpush1.bf16.msra.mxu0 %v8414_v23  ;;  %7244 = vmatpush1.bf16.msra.mxu1 %v8418_v24 }
 0x472   :  { %7246 = vmatprep.subr.bf16.mxu0 %v8292_v48  ;;  %7253 = vmatprep.subr.bf16.mxu1 %v7891_v61 }
 0x474   :  { %6449 = vmatmul.mubr.msk.f32.vlgmr.msra.gmra.mrb[26].mxu0 %vm508_vm1, %v2136_v13  ;;  %6450 = vmatmul.mubr.msk.f32.vlgmr.msra.gmra.mrb[24].mxu1 %vm508_vm1, %v2136_v13  ;;  %v1963_v13 = vld [vmem:[#allocation2 + $0x48] sm:$0x3] }
 0x475   :  { %7248 = vmatpush1.bf16.msra.mxu0 %v8312_v55  ;;  %7255 = vmatpush3.bf16.msra.mxu1 %v8315_v56 }
 0x476   :  { %7250 = vmatprep.subr.bf16.mxu0 %v8327_v62  ;;  %7256 = vmatprep.subr.bf16.mxu1 %v7891_v61 }
 0x477   :  { %2386 = vmatprep.mubr.f32.mxu0 %v7890_v3  ;;  %6778 = vmatprep.mubr.msk.f32.mxu1 %vm7892_vm0, %v7890_v3 }
 0x479   :  { %7252 = vmatpush1.bf16.msra.mxu0 %v8347_v5  ;;  %7258 = vmatpush3.bf16.msra.mxu1 %v8351_v6 }
 0x47a   :  { %7260 = vmatprep.subr.bf16.mxu0 %v8353_v46  ;;  %7268 = vmatprep.subr.bf16.mxu1 %v8366_v10 }
 0x53f   :  { %v2038_v52 = vpop.f32.mrb[24].mxu0  ;;  %v2109_v14 = vpop.f32.mrb[22].mxu1 }
 0x540   :  { %v2039_v15 = vadd.f32 %v2038_v52, %v8452_v44  ;;  %v2040_v18 = vpop.f32.mrb[25].mxu0  ;;  %v6769_v42 = vpop.f32.mrb[23].mxu1  ;;  %v2110_v11 = vadd.f32 %v2109_v14, %v8462_v30 }
 0x541   :  { %v2041_v25 = vadd.f32 %v2040_v18, %v8455_v45 }
 0x542   :  { %v2113_v27 = vadd.f32 %v2039_v15, %v1961_v21  ;;  %v2305_v21 = vrot.slane %v8574_v0, 6 }
 0x543   :  { %v2120_v29 = vadd.f32 %v2041_v25, %v1962_v28 }
 0x544   :  { %v6447_v36 = vmul.f32 -1.442695, %v2113_v27 }
 0x545   :  { %v6448_v31 = vmul.f32 -1.442695, %v2120_v29 }
 0x546   :  { %7702 = vpow2.f32 %v6447_v36 }
 0x547   :  { %v2205_v33 = vpop.f32.mrb[26].mxu0  ;;  %v2276_v35 = vpop.f32.mrb[24].mxu1  ;;  %7704 = vpow2.f32 %v6448_v31 }
 0x548   :  { %v2281_v1 = vadd.f32 %v2205_v33, %v1964_v9  ;;  %v2207_v41 = vpop.f32.mrb[27].mxu0  ;;  %v2278_v43 = vpop.f32.mrb[25].mxu1  ;;  %v2283_v51 = vadd.f32 %v2276_v35, %v1966_v59 }
 0x549   :  { %v2282_v47 = vadd.f32 %v2207_v41, %v1965_v38  ;;  %v2284_v50 = vadd.f32 %v2278_v43, %v1967_v39 }
 0x54a   :  { %v6451_v49 = vmul.f32 -1.442695, %v2281_v1 }
 0x54b   :  { %v6452_v58 = vmul.f32 -1.442695, %v2282_v47  ;;  %v6453_v32 = vmul.f32 -1.442695, %v2284_v50 }
 0x54c   :  { %7706 = vpow2.f32 %v6451_v49 }
 0x54d   :  { %7708 = vpow2.f32 %v6452_v58 }
 0x550   :  { %v7703_v53 = vpop.eup %7702 }
 0x551   :  { %v2117_v54 = vadd.f32 1.0, %v7703_v53  ;;  %v7705_v60 = vpop.eup %7704  ;;  %v2312_v53 = vld [vmem:[#allocation2 + $0x38] sm:$0xc] }
 0x552   :  { %v2124_v7 = vadd.f32 1.0, %v7705_v60 }
 0x553   :  { %7710 = vrcp.f32 %v2117_v54 }
 0x554   :  { %7712 = vpow2.f32 %v6453_v32  ;;  %v2313_v32 = vld [vmem:[#allocation2 + $0x40] sm:$0xc] }
 0x555   :  { %7714 = vtanh.f32 %v2283_v51 }
 0x556   :  { %v7707_v63 = vpop.eup %7706 }
 0x557   :  { %v7709_v26 = vpop.eup %7708  ;;  %v2288_v2 = vadd.f32 1.0, %v7707_v63 }
 0x558   :  { %v2294_v4 = vadd.f32 1.0, %v7709_v26 }
 0x559   :  { %7716 = vrcp.f32 %v2288_v2 }
 0x55a   :  { %7718 = vrcp.f32 %v2294_v4 }
 0x55b   :  { %7720 = vrcp.f32 %v2124_v7 }
 0x55d   :  { %v7711_v12 = vpop.eup %7710 }
 0x55e   :  { %v2127_v19 = vmul.f32 %v7711_v12, %v2110_v11  ;;  %v7713_v15 = vpop.eup %7712  ;;  %v2315_v12 = vld [vmem:[#allocation2 + $0x50] sm:$0xc] }
 0x55f   :  { %v7715_v18 = vpop.eup %7714  ;;  %v2301_v28 = vadd.f32 1.0, %v7713_v15 }
 0x560   :  { %v2128_v52 = vadd.f32 %v2127_v19, %v1963_v13 }
 0x562   :  { %7722 = vtanh.f32 %v2128_v52  ;;  %v2316_v52 = vld [vmem:[#allocation2 + $0x58] sm:$0xc] }
 0x563   :  { %v7717_v42 = vpop.eup %7716  ;;  %7724 = vrcp.f32 %v2301_v28 }
 0x564   :  { %v7719_v25 = vpop.eup %7718  ;;  %v2308_v27 = vmul.f32 %v7717_v42, %v7715_v18 }
 0x565   :  { %v2307_v29 = vmul.f32 %v7719_v25, %v2305_v21  ;;  %v7721_v31 = vpop.eup %7720  ;;  %v2318_v25 = vld [vmem:[#allocation2 + $0x68] sm:$0xc] }
 0x566   :  { %v2130_v14 = vsub.f32 1.0, %v7721_v31  ;;  %v2133_v35 = vmul.f32 %v7721_v31, %v8577_v8 }
 0x567   :  { %v8610_v36 = vadd.f32 %v2308_v27, %v2307_v29 }
 0x569   :  { %7726 = vtanh.f32 %v8610_v36 }
 0x56c   :  { %v7723_v9 = vpop.eup %7722 }
 0x56d   :  { %v2131_v33 = vmul.f32 %v7723_v9, %v2130_v14  ;;  %v7725_v0 = vpop.eup %7724 }
 0x56f   :  { %v8614_v1 = vadd.f32 %v2133_v35, %v2131_v33  ;;  %v2317_v33 = vld [vmem:[#allocation2 + $0x60] sm:$0xc] }
 0x571   :  { %6454 = vmatmul.mubr.msk.f32.vlgmr.msra.gmra.mrb[28].mxu0 %vm508_vm1, %v8614_v1  ;;  %6779 = vmatmul.mubr.msk.f32.vlgmr.msra.gmra.mrb[26].mxu1 %vm508_vm1, %v8614_v1 }
 0x572   :  { %7262 = vmatpush1.bf16.msra.mxu0 %v8388_v16  ;;  %7270 = vmatpush1.bf16.msra.mxu1 %v8392_v57 }
 0x573   :  { %v7727_v38 = vpop.eup %7726  ;;  %7264 = vmatprep.subr.bf16.mxu0 %v8394_v17  ;;  %7272 = vmatprep.subr.bf16.mxu1 %v8403_v20 }
 0x574   :  { %2562 = vmatprep.mubr.f32.mxu0 %v7890_v3  ;;  %2633 = vmatprep.mubr.f32.mxu1 %v7890_v3  ;;  %v2311_v8 = vmul.f32 %v7727_v38, %v7725_v0 }
 0x576   :  { %7266 = vmatpush1.bf16.msra.mxu0 %v8414_v23  ;;  %7274 = vmatpush1.bf16.msra.mxu1 %v8418_v24 }
 0x577   :  { %7276 = vmatprep.subr.bf16.mxu0 %v8292_v48  ;;  %7283 = vmatprep.subr.bf16.mxu1 %v7891_v61 }
 0x579   :  { %6458 = vmatmul.mubr.msk.f32.vlgmr.msra.gmra.mrb[30].mxu0 %vm508_vm1, %v2311_v8  ;;  %6459 = vmatmul.mubr.msk.f32.vlgmr.msra.gmra.mrb[28].mxu1 %vm508_vm1, %v2311_v8 }
 0x57a   :  { %7278 = vmatpush1.bf16.msra.mxu0 %v8312_v55  ;;  %7285 = vmatpush3.bf16.msra.mxu1 %v8315_v56 }
 0x57b   :  { %7280 = vmatprep.subr.bf16.mxu0 %v8327_v62  ;;  %7286 = vmatprep.subr.bf16.mxu1 %v7891_v61 }
 0x57c   :  { %2758 = vmatprep.mubr.f32.mxu0 %v7890_v3  ;;  %6789 = vmatprep.mubr.msk.f32.mxu1 %vm7892_vm0, %v7890_v3 }
 0x57e   :  { %7282 = vmatpush1.bf16.msra.mxu0 %v8347_v5  ;;  %7288 = vmatpush3.bf16.msra.mxu1 %v8351_v6 }
 0x57f   :  { %7290 = vmatprep.subr.bf16.mxu0 %v8353_v46  ;;  %7298 = vmatprep.subr.bf16.mxu1 %v8366_v10 }
 0x644   :  { %v2388_v41 = vpop.f32.mrb[28].mxu0  ;;  %v2459_v43 = vpop.f32.mrb[26].mxu1 }
 0x645   :  { %v2389_v47 = vadd.f32 %v2388_v41, %v8452_v44  ;;  %v2390_v49 = vpop.f32.mrb[29].mxu0  ;;  %v6780_v58 = vpop.f32.mrb[27].mxu1 }
 0x646   :  { %v2391_v39 = vadd.f32 %v2390_v49, %v8455_v45 }
 0x647   :  { %v2464_v50 = vrot.slane %v2389_v47, 6  ;;  %v2460_v47 = vadd.f32 %v2459_v43, %v8462_v30 }
 0x648   :  { %v2474_v54 = vrot.slane %v2391_v39, 6 }
 0x649   :  { %v2466_v59 = vadd.f32 %v2464_v50, %v2312_v53  ;;  %v2484_v58 = vrot.slane %v2460_v47, 6  ;;  %v2491_v50 = vrot.slane %v8614_v1, 6 }
 0x64a   :  { %v2476_v51 = vadd.f32 %v2474_v54, %v2313_v32 }
 0x64b   :  { %v6456_v60 = vmul.f32 -1.442695, %v2466_v59  ;;  %v2314_v59 = vld [vmem:[#allocation2 + $0x48] sm:$0xc] }
 0x64c   :  { %v6457_v63 = vmul.f32 -1.442695, %v2476_v51  ;;  %v2564_v26 = vpop.f32.mrb[30].mxu0  ;;  %v2635_v2 = vpop.f32.mrb[28].mxu1 }
 0x64d   :  { %7728 = vpow2.f32 %v6456_v60  ;;  %v2644_v4 = vrot.slane %v2564_v26, 6  ;;  %v2566_v7 = vpop.f32.mrb[31].mxu0  ;;  %v2637_v11 = vpop.f32.mrb[29].mxu1  ;;  %v2646_v29 = vrot.slane %v2635_v2, 6  ;;  %v2676_v2 = vrot.slane %v8610_v36, 6 }
 0x64e   :  { %7730 = vpow2.f32 %v6457_v63  ;;  %v2645_v19 = vrot.slane %v2566_v7, 6  ;;  %v2647_v21 = vrot.slane %v2637_v11, 6 }
 0x64f   :  { %v2652_v13 = vadd.f32 %v2644_v4, %v2315_v12  ;;  %v2654_v0 = vadd.f32 %v2646_v29, %v2317_v33  ;;  %v2683_v29 = vld [vmem:[#allocation2 + $0x38] sm:$0x30] }
 0x650   :  { %v2653_v15 = vadd.f32 %v2645_v19, %v2316_v52  ;;  %v2655_v27 = vadd.f32 %v2647_v21, %v2318_v25 }
 0x651   :  { %v6460_v18 = vmul.f32 -1.442695, %v2652_v13 }
 0x652   :  { %v6461_v42 = vmul.f32 -1.442695, %v2653_v15  ;;  %v6462_v35 = vmul.f32 -1.442695, %v2655_v27 }
 0x653   :  { %7732 = vpow2.f32 %v6460_v18 }
 0x654   :  { %7734 = vpow2.f32 %v6461_v42 }
 0x657   :  { %v7729_v28 = vpop.eup %7728 }
 0x658   :  { %v7731_v31 = vpop.eup %7730  ;;  %v2470_v14 = vadd.f32 1.0, %v7729_v28 }
 0x659   :  { %v2480_v9 = vadd.f32 1.0, %v7731_v31 }
 0x65a   :  { %7736 = vrcp.f32 %v2470_v14 }
 0x65b   :  { %7738 = vrcp.f32 %v2480_v9  ;;  %v2684_v9 = vld [vmem:[#allocation2 + $0x40] sm:$0x30] }
 0x65c   :  { %7740 = vpow2.f32 %v6462_v35 }
 0x65d   :  { %v7733_v38 = vpop.eup %7732  ;;  %7742 = vtanh.f32 %v2654_v0 }
 0x65e   :  { %v7735_v8 = vpop.eup %7734  ;;  %v2659_v41 = vadd.f32 1.0, %v7733_v38 }
 0x65f   :  { %v2665_v49 = vadd.f32 1.0, %v7735_v8  ;;  %v2686_v8 = vld [vmem:[#allocation2 + $0x50] sm:$0x30] }
 0x660   :  { %7744 = vrcp.f32 %v2659_v41 }
 0x661   :  { %7746 = vrcp.f32 %v2665_v49  ;;  %v2687_v49 = vld [vmem:[#allocation2 + $0x58] sm:$0x30] }
 0x664   :  { %v7737_v39 = vpop.eup %7736 }
 0x665   :  { %v7739_v53 = vpop.eup %7738  ;;  %v2486_v54 = vmul.f32 %v7737_v39, %v2484_v58 }
 0x666   :  { %v2493_v32 = vmul.f32 %v7739_v53, %v2491_v50  ;;  %v7741_v60 = vpop.eup %7740  ;;  %v2489_v1 = vsub.f32 1.0, %v7739_v53 }
 0x667   :  { %v2487_v51 = vadd.f32 %v2486_v54, %v2314_v59  ;;  %v7743_v63 = vpop.eup %7742  ;;  %v2672_v7 = vadd.f32 1.0, %v7741_v60  ;;  %v2689_v54 = vld [vmem:[#allocation2 + $0x68] sm:$0x30] }
 0x669   :  { %7748 = vtanh.f32 %v2487_v51 }
 0x66a   :  { %v7745_v26 = vpop.eup %7744  ;;  %7750 = vrcp.f32 %v2672_v7 }
 0x66b   :  { %v7747_v43 = vpop.eup %7746  ;;  %v2679_v4 = vmul.f32 %v7745_v26, %v7743_v63 }
 0x66c   :  { %v2678_v11 = vmul.f32 %v7747_v43, %v2676_v2  ;;  %v2688_v2 = vld [vmem:[#allocation2 + $0x60] sm:$0x30] }
 0x66e   :  { %v8648_v12 = vadd.f32 %v2679_v4, %v2678_v11 }
 0x670   :  { %7752 = vtanh.f32 %v8648_v12 }
 0x673   :  { %v7749_v19 = vpop.eup %7748 }
 0x674   :  { %v2490_v13 = vmul.f32 %v7749_v19, %v2489_v1  ;;  %v7751_v18 = vpop.eup %7750 }
 0x676   :  { %v8651_v52 = vadd.f32 %v2493_v32, %v2490_v13 }
 0x678   :  { %v2691_v15 = vrot.slane %v8651_v52, 2 }
 0x67a   :  { %v7753_v42 = vpop.eup %7752  ;;  %6463 = vmatmul.mubr.msk.f32.vlgmr.msra.gmra.mrb[32].mxu0 %vm508_vm1, %v2691_v15  ;;  %6790 = vmatmul.mubr.msk.f32.vlgmr.msra.gmra.mrb[30].mxu1 %vm508_vm1, %v2691_v15 }
 0x67b   :  { %7292 = vmatpush1.bf16.msra.mxu0 %v8388_v16  ;;  %7300 = vmatpush1.bf16.msra.mxu1 %v8392_v57  ;;  %v2682_v36 = vmul.f32 %v7753_v42, %v7751_v18  ;;  %v2863_v42 = vrot.slane %v8651_v52, 6 }
 0x67c   :  { %7294 = vmatprep.subr.bf16.mxu0 %v8394_v17  ;;  %7302 = vmatprep.subr.bf16.mxu1 %v8403_v20 }
 0x67d   :  { %2935 = vmatprep.mubr.f32.mxu0 %v7890_v3  ;;  %3006 = vmatprep.mubr.f32.mxu1 %v7890_v3  ;;  %v2868_v21 = vrot.slane %v2682_v36, 2 }
 0x67f   :  { %7296 = vmatpush1.bf16.msra.mxu0 %v8414_v23  ;;  %7304 = vmatpush1.bf16.msra.mxu1 %v8418_v24 }
 0x680   :  { %7306 = vmatprep.subr.bf16.mxu0 %v8292_v48  ;;  %7313 = vmatprep.subr.bf16.mxu1 %v7891_v61 }
 0x682   :  { %6467 = vmatmul.mubr.msk.f32.vlgmr.msra.gmra.mrb[34].mxu0 %vm508_vm1, %v2868_v21  ;;  %6468 = vmatmul.mubr.msk.f32.vlgmr.msra.gmra.mrb[32].mxu1 %vm508_vm1, %v2868_v21 }
 0x683   :  { %7308 = vmatpush1.bf16.msra.mxu0 %v8312_v55  ;;  %7315 = vmatpush3.bf16.msra.mxu1 %v8315_v56 }
 0x684   :  { %7310 = vmatprep.subr.bf16.mxu0 %v8327_v62  ;;  %7316 = vmatprep.subr.bf16.mxu1 %v7891_v61 }
 0x685   :  { %3131 = vmatprep.mubr.f32.mxu0 %v7890_v3  ;;  %6800 = vmatprep.mubr.msk.f32.mxu1 %vm7892_vm0, %v7890_v3 }
 0x687   :  { %7312 = vmatpush1.bf16.msra.mxu0 %v8347_v5  ;;  %7318 = vmatpush3.bf16.msra.mxu1 %v8351_v6 }
 0x688   :  { %7320 = vmatprep.subr.bf16.mxu0 %v8353_v46  ;;  %7328 = vmatprep.subr.bf16.mxu1 %v8366_v10 }
 0x74d   :  { %v2760_v48 = vpop.f32.mrb[32].mxu0  ;;  %v2831_v55 = vpop.f32.mrb[30].mxu1 }
 0x74e   :  { %v2761_v56 = vadd.f32 %v2760_v48, %v8452_v44  ;;  %v2762_v62 = vpop.f32.mrb[33].mxu0  ;;  %v6791_v25 = vpop.f32.mrb[31].mxu1  ;;  %v2832_v19 = vadd.f32 %v2831_v55, %v8462_v30  ;;  %v2685_v48 = vld [vmem:[#allocation2 + $0x48] sm:$0x30] }
 0x74f   :  { %v2763_v27 = vadd.f32 %v2762_v62, %v8455_v45 }
 0x750   :  { %v2836_v28 = vrot.slane %v2761_v56, 4  ;;  %v2856_v15 = vrot.slane %v2832_v19, 4  ;;  %v3060_v19 = vld [vmem:[#allocation2 + $0x58] sm:$0xc0] }
 0x751   :  { %v2846_v31 = vrot.slane %v2763_v27, 4 }
 0x752   :  { %v2838_v14 = vadd.f32 %v2836_v28, %v2683_v29  ;;  %v3049_v29 = vrot.slane %v8648_v12, 6 }
 0x753   :  { %v2848_v5 = vadd.f32 %v2846_v31, %v2684_v9 }
 0x754   :  { %v6465_v33 = vmul.f32 -1.442695, %v2838_v14 }
 0x755   :  { %v6466_v6 = vmul.f32 -1.442695, %v2848_v5  ;;  %v2937_v35 = vpop.f32.mrb[34].mxu0  ;;  %v3008_v46 = vpop.f32.mrb[32].mxu1 }
 0x756   :  { %7754 = vpow2.f32 %v6465_v33  ;;  %v3017_v10 = vrot.slane %v2937_v35, 4  ;;  %v2939_v0 = vpop.f32.mrb[35].mxu0  ;;  %v3010_v38 = vpop.f32.mrb[33].mxu1  ;;  %v3019_v51 = vrot.slane %v3008_v46, 4 }
 0x757   :  { %7756 = vpow2.f32 %v6466_v6  ;;  %v3018_v41 = vrot.slane %v2939_v0, 4  ;;  %v3020_v53 = vrot.slane %v3010_v38, 4 }
 0x758   :  { %v3025_v47 = vadd.f32 %v3017_v10, %v2686_v8  ;;  %v3027_v4 = vadd.f32 %v3019_v51, %v2688_v2 }
 0x759   :  { %v3026_v58 = vadd.f32 %v3018_v41, %v2687_v49  ;;  %v3028_v59 = vadd.f32 %v3020_v53, %v2689_v54  ;;  %v3056_v53 = vld [vmem:[#allocation2 + $0x38] sm:$0xc0] }
 0x75a   :  { %v6469_v39 = vmul.f32 -1.442695, %v3025_v47 }
 0x75b   :  { %v6470_v50 = vmul.f32 -1.442695, %v3026_v58  ;;  %v6471_v43 = vmul.f32 -1.442695, %v3028_v59 }
 0x75c   :  { %7758 = vpow2.f32 %v6469_v39 }
 0x75d   :  { %7760 = vpow2.f32 %v6470_v50 }
 0x760   :  { %v7755_v32 = vpop.eup %7754 }
 0x761   :  { %v7757_v60 = vpop.eup %7756  ;;  %v2842_v63 = vadd.f32 1.0, %v7755_v32  ;;  %v3057_v32 = vld [vmem:[#allocation2 + $0x40] sm:$0xc0] }
 0x762   :  { %v2852_v26 = vadd.f32 1.0, %v7757_v60 }
 0x763   :  { %7762 = vrcp.f32 %v2842_v63 }
 0x764   :  { %7764 = vrcp.f32 %v2852_v26 }
 0x765   :  { %7766 = vpow2.f32 %v6471_v43 }
 0x766   :  { %v7759_v7 = vpop.eup %7758  ;;  %7768 = vtanh.f32 %v3027_v4 }
 0x767   :  { %v7761_v11 = vpop.eup %7760  ;;  %v3032_v1 = vadd.f32 1.0, %v7759_v7 }
 0x768   :  { %v3038_v13 = vadd.f32 1.0, %v7761_v11 }
 0x769   :  { %7770 = vrcp.f32 %v3032_v1 }
 0x76a   :  { %7772 = vrcp.f32 %v3038_v13 }
 0x76d   :  { %v7763_v18 = vpop.eup %7762 }
 0x76e   :  { %v7765_v36 = vpop.eup %7764  ;;  %v2858_v21 = vmul.f32 %v7763_v18, %v2856_v15 }
 0x76f   :  { %v2865_v56 = vmul.f32 %v7765_v36, %v2863_v42  ;;  %v7767_v25 = vpop.eup %7766  ;;  %v2861_v52 = vsub.f32 1.0, %v7765_v36  ;;  %v3062_v42 = vld [vmem:[#allocation2 + $0x68] sm:$0xc0] }
 0x770   :  { %v2859_v62 = vadd.f32 %v2858_v21, %v2685_v48  ;;  %v7769_v27 = vpop.eup %7768  ;;  %v3045_v14 = vadd.f32 1.0, %v7767_v25 }
 0x772   :  { %7774 = vtanh.f32 %v2859_v62 }
 0x773   :  { %v7771_v28 = vpop.eup %7770  ;;  %7776 = vrcp.f32 %v3045_v14 }
 0x774   :  { %v7773_v55 = vpop.eup %7772  ;;  %v3052_v31 = vmul.f32 %v7771_v28, %v7769_v27  ;;  %v3061_v27 = vld [vmem:[#allocation2 + $0x60] sm:$0xc0] }
 0x775   :  { %v3051_v9 = vmul.f32 %v7773_v55, %v3049_v29 }
 0x777   :  { %v8684_v5 = vadd.f32 %v3052_v31, %v3051_v9 }
 0x779   :  { %7778 = vtanh.f32 %v8684_v5 }
 0x77c   :  { %v7775_v33 = vpop.eup %7774 }
 0x77d   :  { %v2862_v6 = vmul.f32 %v7775_v33, %v2861_v52  ;;  %v7777_v10 = vpop.eup %7776 }
 0x77f   :  { %v8687_v35 = vadd.f32 %v2865_v56, %v2862_v6 }
 0x781   :  { %v3064_v46 = vrot.slane %v8687_v35, 4 }
 0x783   :  { %v7779_v0 = vpop.eup %7778  ;;  %6472 = vmatmul.mubr.msk.f32.vlgmr.msra.gmra.mrb[36].mxu0 %vm508_vm1, %v3064_v46  ;;  %6801 = vmatmul.mubr.msk.f32.vlgmr.msra.gmra.mrb[34].mxu1 %vm508_vm1, %v3064_v46  ;;  %v3236_v46 = vrot.slane %v8687_v35, 6 }
 0x784   :  { %7322 = vmatpush1.bf16.msra.mxu0 %v8388_v16  ;;  %7330 = vmatpush1.bf16.msra.mxu1 %v8392_v57  ;;  %v3055_v12 = vmul.f32 %v7779_v0, %v7777_v10  ;;  %v3429_v16 = vld [vmem:[%s9401_s3] sm:$0xff]  ;;  %v3430_v57 = vld [vmem:[%s9401_s3 + $0x10] sm:$0xff] }
 0x785   :  { %7324 = vmatprep.subr.bf16.mxu0 %v8394_v17  ;;  %7332 = vmatprep.subr.bf16.mxu1 %v8403_v20  ;;  %v3431_v17 = vld [vmem:[%s9401_s3 + $0x20] sm:$0xff]  ;;  %v7336_v20 = vpack.c.bf16 %v3430_v57, %v3429_v16 }
 0x786   :  { %3308 = vmatprep.mubr.f32.mxu0 %v7890_v3  ;;  %3379 = vmatprep.mubr.f32.mxu1 %v7890_v3  ;;  %v3241_v38 = vrot.slane %v3055_v12, 4  ;;  %v3058_v12 = vld [vmem:[#allocation2 + $0x48] sm:$0xc0] }
 0x788   :  { %7326 = vmatpush1.bf16.msra.mxu0 %v8414_v23  ;;  %7334 = vmatpush1.bf16.msra.mxu1 %v8418_v24  ;;  %v3432_v23 = vld [vmem:[%s9401_s3 + $0x30] sm:$0xff] }
 0x789   :  { %7335 = vmatprep.subr.bf16.mxu0 %v7891_v61  ;;  %7341 = vmatprep.subr.bf16.mxu1 %v7891_v61  ;;  %v7339_v24 = vpack.c.bf16 %v3432_v23, %v3431_v17  ;;  %v3422_v23 = vrot.slane %v8684_v5, 6  ;;  %v3509_v5 = vld [vmem:[%s9401_s3 + $0x40] sm:$0xff] }
 0x78b   :  { %6476 = vmatmul.mubr.msk.f32.vlgmr.msra.gmra.mrb[38].mxu0 %vm508_vm1, %v3241_v38  ;;  %6477 = vmatmul.mubr.msk.f32.vlgmr.msra.gmra.mrb[36].mxu1 %vm508_vm1, %v3241_v38 }
 0x78c   :  { %6811 = vmatprep.mubr.msk.f32.mxu0 %vm7892_vm0, %v7890_v3  ;;  %6826 = vmatprep.mubr.msk.f32.mxu1 %vm7892_vm0, %v7890_v3 }
 0x78d   :  { %7337 = vmatpush3.bf16.msra.mxu0 %v7336_v20 }
 0x78e   :  { %7338 = vmatprep.subr.bf16.mxu0 %v7891_v61 }
 0x791   :  { %7340 = vmatpush3.bf16.msra.mxu0 %v7339_v24 }
 0x856   :  { %v3133_v8 = vpop.f32.mrb[36].mxu0  ;;  %v3204_v41 = vpop.f32.mrb[34].mxu1 }
 0x857   :  { %v3134_v47 = vadd.f32 %v3133_v8, %v8452_v44  ;;  %v3135_v49 = vpop.f32.mrb[37].mxu0  ;;  %v6802_v58 = vpop.f32.mrb[35].mxu1  ;;  %v3059_v44 = vld [vmem:[#allocation2 + $0x50] sm:$0xc0]  ;;  %v3205_v9 = vadd.f32 %v3204_v41, %v8462_v30 }
 0x858   :  { %v3136_v39 = vadd.f32 %v3135_v49, %v8455_v45 }
 0x859   :  { %v3209_v50 = vrot.slane %v3134_v47, 2  ;;  %v3229_v33 = vrot.slane %v3205_v9, 2 }
 0x85a   :  { %v3219_v54 = vrot.slane %v3136_v39, 2 }
 0x85b   :  { %v3211_v59 = vadd.f32 %v3209_v50, %v3056_v53 }
 0x85c   :  { %v3221_v51 = vadd.f32 %v3219_v54, %v3057_v32  ;;  %v3510_v32 = vld [vmem:[%s9401_s3 + $0x50] sm:$0xff] }
 0x85d   :  { %v6474_v60 = vmul.f32 -1.442695, %v3211_v59 }
 0x85e   :  { %v6475_v63 = vmul.f32 -1.442695, %v3221_v51  ;;  %v3310_v26 = vpop.f32.mrb[38].mxu0  ;;  %v3381_v2 = vpop.f32.mrb[36].mxu1  ;;  %v3511_v51 = vld [vmem:[%s9401_s3 + $0x60] sm:$0xff] }
 0x85f   :  { %7780 = vpow2.f32 %v6474_v60  ;;  %v3390_v43 = vrot.slane %v3310_v26, 2  ;;  %v3312_v4 = vpop.f32.mrb[39].mxu0  ;;  %v3383_v7 = vpop.f32.mrb[37].mxu1  ;;  %v3392_v48 = vrot.slane %v3381_v2, 2  ;;  %v7342_v60 = vpack.c.bf16 %v3510_v32, %v3509_v5  ;;  %v3513_v2 = vld [vmem:[%s9401_s3 + $0x80] sm:$0xff] }
 0x860   :  { %7782 = vpow2.f32 %v6475_v63  ;;  %v3391_v11 = vrot.slane %v3312_v4, 2  ;;  %v3393_v18 = vrot.slane %v3383_v7, 2  ;;  %v3512_v63 = vld [vmem:[%s9401_s3 + $0x70] sm:$0xff]  ;;  %v3433_v7 = vld [vmem:[%s9400_s4 + $0x1] ss:$0 sm:$0xff] }
 0x861   :  { %v3398_v1 = vadd.f32 %v3390_v43, %v3059_v44  ;;  %v3400_v29 = vadd.f32 %v3392_v48, %v3061_v27  ;;  %7343 = vmatpush3.bf16.msra.mxu1 %v7342_v60  ;;  %v7345_v26 = vpack.c.bf16 %v3512_v63, %v3511_v51  ;;  %v3514_v43 = vld [vmem:[%s9401_s3 + $0x90] sm:$0xff]  ;;  %v4024_v27 = vld [vmem:[%s9402_s2 + $0x8] sm:$0xff] }
 0x862   :  { %v3399_v45 = vadd.f32 %v3391_v11, %v3060_v19  ;;  %v3401_v36 = vadd.f32 %v3393_v18, %v3062_v42  ;;  %7344 = vmatprep.subr.bf16.mxu1 %v7891_v61  ;;  %v7348_v4 = vpack.c.bf16 %v3514_v43, %v3513_v2  ;;  %v3593_v42 = vld [vmem:[%s9401_s3 + $0xb0] sm:$0xff]  ;;  %v6483_v32 = vld [vmem:[%s9400_s4 + $0x3] ss:$8 sm:$0x3] }
 0x863   :  { %v6478_v13 = vmul.f32 -1.442695, %v3398_v1  ;;  %v3605_v51 = vrot.slane %v6483_v32, %v8443_v37  ;;  %v3609_v60 = vrot.slane %v6483_v32, %v8449_v40  ;;  %v4550_v32 = vld [vmem:[%s9400_s4 + $0x20] sm:$0x3] }
 0x864   :  { %v6479_v15 = vmul.f32 -1.442695, %v3399_v45  ;;  %v6480_v28 = vmul.f32 -1.442695, %v3401_v36  ;;  %v3592_v45 = vld [vmem:[%s9401_s3 + $0xa8] sm:$0xff] }
 0x865   :  { %7784 = vpow2.f32 %v6478_v13  ;;  %7346 = vmatpush3.bf16.msra.mxu1 %v7345_v26  ;;  %v3594_v13 = vld [vmem:[%s9401_s3 + $0xb8] sm:$0xff]  ;;  %v3596_v36 = vld [vmem:[%s9401_s3 + $0xc8] sm:$0xff] }
 0x866   :  { %7786 = vpow2.f32 %v6479_v15  ;;  %7347 = vmatprep.subr.bf16.mxu1 %v7891_v61  ;;  %v3591_v15 = vld [vmem:[%s9401_s3 + $0xa0] sm:$0xff]  ;;  %v7350_v18 = vpack.c.bf16 %v3594_v13, %v3592_v45 }
 0x867   :  { %v7352_v48 = vpack.c.bf16 %v3593_v42, %v3591_v15 }
 0x868   :  { %7351 = vmatprep.subr.bf16.mxu0 %v7350_v18 }
 0x869   :  { %v7781_v21 = vpop.eup %7780  ;;  %7349 = vmatpush3.bf16.msra.mxu1 %v7348_v4 }
 0x86a   :  { %v7783_v56 = vpop.eup %7782  ;;  %v3215_v62 = vadd.f32 1.0, %v7781_v21  ;;  %6829 = vmatprep.subr.mxu1 %v7890_v3  ;;  %v3598_v21 = vld [vmem:[%s9401_s3 + $0xd8] sm:$0xff] }
 0x86b   :  { %v3225_v25 = vadd.f32 1.0, %v7783_v56  ;;  %v7354_v56 = vpack.c.bf16 %v3598_v21, %v3596_v36 }
 0x86c   :  { %7788 = vrcp.f32 %v3215_v62  ;;  %v3595_v62 = vld [vmem:[%s9401_s3 + $0xc0] sm:$0xff] }
 0x86d   :  { %7790 = vrcp.f32 %v3225_v25  ;;  %v3597_v25 = vld [vmem:[%s9401_s3 + $0xd0] sm:$0xff] }
 0x86e   :  { %7792 = vpow2.f32 %v6480_v28  ;;  %v4028_v28 = vld [vmem:[%s9402_s2 + $0x30] sm:$0xff] }
 0x86f   :  { %v7785_v55 = vpop.eup %7784  ;;  %7794 = vtanh.f32 %v3400_v29  ;;  %v7356_v29 = vpack.c.bf16 %v3597_v25, %v3595_v62  ;;  %v4046_v62 = vld [vmem:[%s9402_s2 + $0xe0] sm:$0xff]  ;;  %v4041_v25 = vld [vmem:[%s9402_s2 + $0xb0] sm:$0xff] }
 0x870   :  { %v7787_v31 = vpop.eup %7786  ;;  %v3405_v14 = vadd.f32 1.0, %v7785_v55  ;;  %v7358_v55 = vpack.c.bf16 %v4028_v28, %v4024_v27  ;;  %v4045_v28 = vld [vmem:[%s9402_s2 + $0xd8] sm:$0xff] }
 0x871   :  { %v3411_v52 = vadd.f32 1.0, %v7787_v31  ;;  %v454_v31 = vld [vmem:[%s9399_s0 + $0x10] sm:$0x3] }
 0x872   :  { %7796 = vrcp.f32 %v3405_v14  ;;  %3689 = vrot.lane.b32.xlu0 %v454_v31, %s7893_s21  ;;  %3938 = vrot.lane.b32.xlu1 %v454_v31, %s7894_s22  ;;  %v3515_v14 = vld [vmem:[%s9400_s4 + $0x2] ss:$0 sm:$0xff] }
 0x873   :  { %7798 = vrcp.f32 %v3411_v52 }
 0x876   :  { %v7789_v6 = vpop.eup %7788  ;;  %3853 = vrot.lane.b32.xlu0 %v454_v31, %s7895_s23 }
 0x877   :  { %v7791_v10 = vpop.eup %7790  ;;  %v3231_v0 = vmul.f32 %v7789_v6, %v3229_v33  ;;  %v4023_v6 = vld [vmem:[%s9402_s2] sm:$0xff] }
 0x878   :  { %v3238_v38 = vmul.f32 %v7791_v10, %v3236_v46  ;;  %v7793_v57 = vpop.eup %7792  ;;  %v3234_v49 = vsub.f32 1.0, %v7791_v10  ;;  %v4027_v46 = vld [vmem:[%s9402_s2 + $0x28] sm:$0xff]  ;;  %v4032_v10 = vld [vmem:[%s9402_s2 + $0x58] sm:$0xff] }
 0x879   :  { %v3232_v16 = vadd.f32 %v3231_v0, %v3058_v12  ;;  %v7795_v17 = vpop.eup %7794  ;;  %v3418_v8 = vadd.f32 1.0, %v7793_v57  ;;  %v4036_v0 = vld [vmem:[%s9402_s2 + $0x80] sm:$0xff]  ;;  %v7360_v12 = vpack.c.bf16 %v4027_v46, %v4023_v6  ;;  %v4035_v57 = vld [vmem:[%s9402_s2 + $0x78] sm:$0xff] }
 0x87b   :  { %7800 = vtanh.f32 %v3232_v16  ;;  %v4031_v16 = vld [vmem:[%s9402_s2 + $0x50] sm:$0xff] }
 0x87c   :  { %v7797_v20 = vpop.eup %7796  ;;  %7802 = vrcp.f32 %v3418_v8  ;;  %v4025_v8 = vld [vmem:[%s9402_s2 + $0x10] sm:$0xff] }
 0x87d   :  { %v7799_v30 = vpop.eup %7798  ;;  %v3425_v24 = vmul.f32 %v7797_v20, %v7795_v17  ;;  %v4026_v20 = vld [vmem:[%s9402_s2 + $0x18] sm:$0xff] }
 0x87e   :  { %v3424_v41 = vmul.f32 %v7799_v30, %v3422_v23  ;;  %v4030_v23 = vld [vmem:[%s9402_s2 + $0x40] sm:$0xff]  ;;  %v7364_v30 = vpack.c.bf16 %v4035_v57, %v4031_v16 }
 0x880   :  { %v3426_v47 = vadd.f32 %v3425_v24, %v3424_v41  ;;  %v7366_v24 = vpack.c.bf16 %v4030_v23, %v4026_v20  ;;  %v4029_v41 = vld [vmem:[%s9402_s2 + $0x38] sm:$0xff]  ;;  %v4039_v20 = vld [vmem:[%s9402_s2 + $0xa0] sm:$0xff]  ;;  %v4043_v23 = vld [vmem:[%s9402_s2 + $0xc8] sm:$0xff] }
 0x882   :  { %7804 = vtanh.f32 %v3426_v47  ;;  %v4034_v47 = vld [vmem:[%s9402_s2 + $0x68] sm:$0xff] }
 0x885   :  { %v7801_v35 = vpop.eup %7800 }
 0x886   :  { %v3235_v58 = vmul.f32 %v7801_v35, %v3234_v49  ;;  %v7803_v53 = vpop.eup %7802  ;;  %v4038_v49 = vld [vmem:[%s9402_s2 + $0x90] sm:$0xff]  ;;  %v7368_v35 = vpack.c.bf16 %v4029_v41, %v4025_v8  ;;  %v7376_v41 = vpack.c.bf16 %v4043_v23, %v4039_v20 }
 0x888   :  { %v3239_v39 = vadd.f32 %v3238_v38, %v3235_v58  ;;  %v7362_v38 = vpack.c.bf16 %v4036_v0, %v4032_v10 }
 0x88a   :  { %v3435_v50 = vrot.slane %v3239_v39, 6  ;;  %v7370_v39 = vpack.c.bf16 %v4038_v49, %v4034_v47  ;;  %v4047_v49 = vld [vmem:[%s9402_s2 + $0xf0] sm:$0xff] }
 0x88c   :  { %v7805_v54 = vpop.eup %7804  ;;  %6812 = vmatmul.mubr.msk.f32.vlgmr.msra.gmra.mrb[40].mxu0 %vm508_vm1, %v3435_v50  ;;  %v4033_v50 = vld [vmem:[%s9402_s2 + $0x60] sm:$0xff] }
 0x88d   :  { %3679 = vmatprep.mubr.f32.mxu0 %v7890_v3  ;;  %v8728_v59 = vmul.f32 %v7805_v54, %v7803_v53  ;;  %7353 = vmatpush1.bf16.msra.mxu0 %v7352_v48  ;;  %v4037_v53 = vld [vmem:[%s9402_s2 + $0x88] sm:$0xff] }
 0x88e   :  { %7355 = vmatprep.subr.bf16.mxu0 %v7354_v56  ;;  %v7372_v54 = vpack.c.bf16 %v4037_v53, %v4033_v50  ;;  %v4042_v56 = vld [vmem:[%s9402_s2 + $0xb8] sm:$0xff]  ;;  %v4552_v53 = vld [vmem:[%s9400_s4 + $0x30] sm:$0x3] }
 0x88f   :  { %v4104_v58 = vrot.slane %v8728_v59, 6  ;;  %v8848_v59 = vld [vmem:[%s9399_s0 + $0x12] sm:$0xff]  ;;  %s7897_s0 = smov 126   ;;  %v7382_v27 = vpack.c.bf16 %v4046_v62, %v4042_v56  ;;  %v4072_v62 = vld [vmem:[%s9402_s2 + $0x1c8] sm:$0xff] }
 0x890   :  { %3695 = vrot.lane.b32.xlu0 %v8848_v59, %s7896_s7 }
 0x891   :  { %7357 = vmatpush1.bf16.msra.mxu0 %v7356_v29  ;;  %v4050_v29 = vld [vmem:[%s9402_s2 + $0x108] sm:$0xff] }
 0x892   :  { %7359 = vmatprep.subr.bf16.mxu0 %v7358_v55  ;;  %v4054_v55 = vld [vmem:[%s9402_s2 + $0x130] sm:$0xff] }
 0x8e4   :  { %v3690_v5 = vpop.permute.xlu0 %3689  ;;  %v3939_v63 = vpop.permute.xlu1 %3938 }
 0x8e8   :  { %v3854_v2 = vpop.permute.xlu0 %3853 }
 0x902   :  { %v3696_v46 = vpop.permute.xlu0 %3695 }
 0x95f   :  { %v3504_v44 = vpop.f32.mrb[40].mxu0 }
 0x960   :  { %v3505_v11 = vadd.f32 %v3504_v44, %v3433_v7  ;;  %v6813_v1 = vpop.f32.mrb[41].mxu0 }
 0x962   :  { %7806 = vtanh.f32 %v3505_v11 }
 0x96c   :  { %v7807_v19 = vpop.eup %7806 }
 0x96d   :  { %6827 = vmatmul.mubr.msk.f32.vlgmr.msra.gmra.mrb[38].mxu1 %vm3516_vm2, %v7807_v19 }
 0x96e   :  { %6831 = vmatprep.mubr.msk.f32.mxu1 %vm7892_vm0, %v7890_v3 }
 0xa40   :  { %v3586_v9 = vpop.f32.mrb[38].mxu1 }
 0xa41   :  { %v3587_v52 = vadd.f32 %v3586_v9, %v3515_v14  ;;  %v6828_v33 = vpop.f32.mrb[39].mxu1  ;;  %v7386_v14 = vpack.c.bf16 %v4054_v55, %v4050_v29  ;;  %v4049_v9 = vld [vmem:[%s9402_s2 + $0x100] sm:$0xff] }
 0xa43   :  { %7808 = vtanh.f32 %v3587_v52  ;;  %v4053_v52 = vld [vmem:[%s9402_s2 + $0x128] sm:$0xff] }
 0xa44   :  { %v7388_v33 = vpack.c.bf16 %v4053_v52, %v4049_v9 }
 0xa4d   :  { %v7809_v17 = vpop.eup %7808 }
 0xa4e   :  { %6484 = vmatmul.mubr.msk.f32.vlgmr.msra.gmra.mrb[42].mxu0 %vm508_vm1, %v7809_v17 }
 0xa4f   :  { %7361 = vmatpush1.bf16.msra.mxu0 %v7360_v12  ;;  %4171 = vmatprep.mubr.f32.mxu0 %v7890_v3  ;;  %v4040_v12 = vld [vmem:[%s9402_s2 + $0xa8] sm:$0xff] }
 0xa50   :  { %7363 = vmatprep.subr.bf16.mxu0 %v7362_v38  ;;  %v4044_v38 = vld [vmem:[%s9402_s2 + $0xd0] sm:$0xff] }
 0xa51   :  { %v7374_v57 = vpack.c.bf16 %v4044_v38, %v4040_v12 }
 0xa53   :  { %7365 = vmatpush1.bf16.msra.mxu0 %v7364_v30  ;;  %v4048_v30 = vld [vmem:[%s9402_s2 + $0xf8] sm:$0xff] }
 0xa54   :  { %7367 = vmatprep.subr.bf16.mxu0 %v7366_v24  ;;  %v4052_v24 = vld [vmem:[%s9402_s2 + $0x120] sm:$0xff] }
 0xa55   :  { %v7378_v47 = vpack.c.bf16 %v4052_v24, %v4048_v30 }
 0xa56   :  { %6493 = vmatmul.mubr.msk.f32.vlgmr.msra.gmra.mrb[44].mxu0 %vm508_vm1, %v4104_v58 }
 0xa57   :  { %7369 = vmatpush1.bf16.msra.mxu0 %v7368_v35  ;;  %4242 = vmatprep.mubr.f32.mxu0 %v7890_v3  ;;  %v4051_v35 = vld [vmem:[%s9402_s2 + $0x118] sm:$0xff] }
 0xa58   :  { %7371 = vmatprep.subr.bf16.mxu0 %v7370_v39  ;;  %v4553_v39 = vld [vmem:[%s9400_s4 + $0x38] sm:$0x3] }
 0xa5b   :  { %7373 = vmatpush1.bf16.msra.mxu0 %v7372_v54 }
 0xa5c   :  { %7383 = vmatprep.subr.bf16.mxu0 %v7382_v27 }
 0xa5e   :  { %6494 = vmatmul.mubr.msk.f32.vlgmr.msra.gmra.mrb[46].mxu0 %vm508_vm1, %v4104_v58  ;;  %v7380_v58 = vpack.c.bf16 %v4051_v35, %v4047_v49 }
 0xa5f   :  { %4387 = vmatprep.mubr.f32.mxu0 %v7890_v3 }
 0xb21   :  { %v3681_v26 = vpop.f32.mrb[42].mxu0 }
 0xb22   :  { %v3682_v43 = vadd.f32 %v3681_v26, %v3605_v51  ;;  %v3683_v4 = vpop.f32.mrb[43].mxu0  ;;  %v4056_v51 = vld [vmem:[%s9402_s2 + $0x148] sm:$0xff] }
 0xb23   :  { %v3684_v7 = vadd.f32 %v3683_v4, %v3609_v60  ;;  %v4061_v60 = vld [vmem:[%s9402_s2 + $0x170] sm:$0xff] }
 0xb24   :  { %v3686_v44 = vmul.f32 %v3682_v43, %v454_v31  ;;  %v3941_v11 = vmul.f32 %v3939_v63, %v3682_v43  ;;  %v3856_v1 = vmul.f32 %v3854_v2, %v3682_v43  ;;  %v3692_v19 = vmul.f32 %v3690_v5, %v3682_v43  ;;  %v4551_v5 = vld [vmem:[%s9400_s4 + $0x28] sm:$0x3]  ;;  %v4055_v63 = vld [vmem:[%s9402_s2 + $0x140] sm:$0xff]  ;;  %v4058_v2 = vld [vmem:[%s9402_s2 + $0x158] sm:$0xff] }
 0xb25   :  { %v7384_v31 = vpack.c.bf16 %v4045_v28, %v4041_v25  ;;  %v8985_v26 = vpack.c.bf16 %v4061_v60, %v4056_v51  ;;  %v4063_v43 = vld [vmem:[%s9402_s2 + $0x180] sm:$0xff] }
 0xb26   :  { %v3687_v45 = vadd.f32 %v3686_v44, %v3684_v7  ;;  %v3942_v13 = vadd.f32 %v3941_v11, %v3684_v7  ;;  %v3857_v15 = vadd.f32 %v3856_v1, %v3684_v7  ;;  %v3693_v18 = vadd.f32 %v3692_v19, %v3684_v7  ;;  %v4057_v44 = vld [vmem:[%s9402_s2 + $0x150] sm:$0xff]  ;;  %v4062_v11 = vld [vmem:[%s9402_s2 + $0x178] sm:$0xff] }
 0xb27   :  { %7385 = vmatpush1.bf16.msra.mxu0 %v7384_v31  ;;  %v8998_v7 = vpack.c.bf16 %v4063_v43, %v4058_v2  ;;  %v4066_v1 = vld [vmem:[%s9402_s2 + $0x198] sm:$0xff]  ;;  %v9010_v19 = vpack.c.bf16 %v4062_v11, %v4057_v44  ;;  %v4095_v44 = vld [vmem:[%s9401_s3 + $0xe0] sm:$0xff]  ;;  %v4096_v11 = vld [vmem:[%s9401_s3 + $0xf0] sm:$0xff] }
 0xb28   :  { %3861 = vrot.lane.b32.xlu0 %v3857_v15, %s7895_s23  ;;  %3698 = vrot.lane.b32.xlu1 %v3693_v18, %s7894_s22  ;;  %v4070_v15 = vld [vmem:[%s9402_s2 + $0x1b8] sm:$0xff] }
 0xb29   :  { %v8858_v42 = vpop.f32.mrb[44].mxu0  ;;  %7387 = vmatprep.subr.bf16.mxu0 %v7386_v14  ;;  %v4074_v2 = vld [vmem:[%s9402_s2 + $0x1d8] sm:$0xff] }
 0xb2a   :  { %v8860_v36 = vpop.f32.mrb[45].mxu0 }
 0xb2b   :  { %7389 = vmatpush1.bf16.msra.mxu0 %v7388_v33 }
 0xb2c   :  { %3946 = vrot.lane.b32.xlu0 %v3942_v13, %s7893_s21  ;;  %3776 = vrot.lane.b32.xlu1 %v8848_v59, %s7897_s0  ;;  %v4065_v13 = vld [vmem:[%s9402_s2 + $0x190] sm:$0xff] }
 0xb2d   :  { %6506 = vmatprep.subr.msk.mxu0 %vm3703_vm3, %v4553_v39 }
 0xb30   :  { %3858 = vrot.lane.b32.xlu1 %v8848_v59, %s7898_s10 }
 0xb31   :  { %v8865_v21 = vpop.f32.mrb[46].mxu0 }
 0xb32   :  { %v8867_v48 = vpop.f32.mrb[47].mxu0 }
 0xb34   :  { %3943 = vrot.lane.b32.xlu1 %v8848_v59, %s7899_s11 }
 0xb9a   :  { %v3699_v6 = vpop.permute.xlu1 %3698  ;;  %v3862_v0 = vpop.permute.xlu0 %3861 }
 0xb9b   :  { %6830 = vmatpush3.msk.msra.mxu1 %vm3703_vm3, %v3699_v6 }
 0xb9c   :  { %6832 = vmatmul.mubr.msk.f32.vlgmr.msra.gmra.mrb[40].mxu1 %vm3700_vm4, %v3696_v46  ;;  %6834 = vmatprep.subr.mxu1 %v7890_v3 }
 0xb9d   :  { %6835 = vmatpush3.msk.msra.mxu1 %vm3703_vm3, %v3687_v45  ;;  %6836 = vmatprep.mubr.msk.f32.mxu1 %vm7892_vm0, %v7890_v3  ;;  %v4071_v45 = vld [vmem:[%s9402_s2 + $0x1c0] sm:$0xff] }
 0xb9e   :  { %6839 = vmatprep.subr.mxu1 %v7890_v3  ;;  %v3777_v10 = vpop.permute.xlu1 %3776  ;;  %v3947_v17 = vpop.permute.xlu0 %3946  ;;  %v9023_v18 = vpack.c.bf16 %v4071_v45, %v4066_v1  ;;  %v4097_v1 = vld [vmem:[%s9401_s3 + $0x100] sm:$0xff]  ;;  %v9101_v45 = vpack.c.bf16 %v4096_v11, %v4095_v44 }
 0xb9f   :  { %v6509_v44 = vld [vmem:[%s9400_s4 + $0x7] ss:$8 sm:$0xf] }
 0xba0   :  { %v4718_v11 = vrot.slane %v6509_v44, %v8443_v37 }
 0xba2   :  { %v3859_v16 = vpop.permute.xlu1 %3858 }
 0xba4   :  { %6837 = vmatmul.mubr.msk.f32.vlgmr.msra.gmra.mrb[40].mxu1 %vm3700_vm4, %v3777_v10 }
 0xba5   :  { %6840 = vmatpush3.msk.msra.mxu1 %vm3703_vm3, %v3862_v0  ;;  %6841 = vmatprep.mubr.msk.f32.mxu1 %vm7892_vm0, %v7890_v3 }
 0xba6   :  { %6844 = vmatprep.subr.mxu1 %v7890_v3  ;;  %v3944_v8 = vpop.permute.xlu1 %3943 }
 0xbac   :  { %6842 = vmatmul.mubr.msk.f32.vlgmr.msra.gmra.mrb[40].mxu1 %vm3700_vm4, %v3859_v16 }
 0xbad   :  { %6845 = vmatpush3.msk.msra.mxu1 %vm3703_vm3, %v3947_v17  ;;  %6846 = vmatprep.mubr.msk.f32.mxu1 %vm7892_vm0, %v7890_v3 }
 0xbae   :  { %7375 = vmatprep.subr.bf16.mxu1 %v7374_v57 }
 0xbb4   :  { %6847 = vmatmul.mubr.msk.f32.vlgmr.msra.gmra.mrb[40].mxu1 %vm3700_vm4, %v3944_v8 }
 0xbb5   :  { %7377 = vmatpush1.bf16.msra.mxu1 %v7376_v41  ;;  %4316 = vmatprep.mubr.f32.mxu1 %v7890_v3 }
 0xbb6   :  { %7379 = vmatprep.subr.bf16.mxu1 %v7378_v47 }
 0xbb9   :  { %7381 = vmatpush1.bf16.msra.mxu1 %v7380_v58 }
 0xbba   :  { %6497 = vmatprep.subr.msk.mxu1 %vm3703_vm3, %v8860_v36  ;;  %v4068_v36 = vld [vmem:[%s9402_s2 + $0x1a8] sm:$0xff] }
 0xc87   :  { %v4018_v50 = vpop.f32.mrb[40].mxu1 }
 0xc88   :  { %v6848_v54 = vpop.f32.mrb[41].mxu1  ;;  %6495 = vmatmul.mubr.msk.f32.vlgmr.msra.gmra.mrb[42].mxu1 %vm508_vm1, %v4018_v50  ;;  %6496 = vmatmul.mubr.msk.f32.vlgmr.msra.gmra.mrb[48].mxu0 %vm508_vm1, %v4018_v50 }
 0xc89   :  { %6498 = vmatpush1.msk.msra.mxu1 %vm3703_vm3, %v8858_v42  ;;  %4472 = vmatprep.mubr.f32.mxu1 %v7890_v3  ;;  %v9025_v42 = vpack.c.bf16 %v4070_v15, %v4065_v13  ;;  %v4059_v54 = vld [vmem:[%s9402_s2 + $0x160] sm:$0xff]  ;;  %v4098_v13 = vld [vmem:[%s9401_s3 + $0x110] sm:$0xff] }
 0xc8a   :  { %6500 = vmatprep.subr.msk.mxu1 %vm3703_vm3, %v8867_v48  ;;  %6507 = vmatpush1.msk.msra.mxu0 %vm3703_vm3, %v4552_v53  ;;  %v4067_v48 = vld [vmem:[%s9402_s2 + $0x1a0] sm:$0xff]  ;;  %v9107_v15 = vpack.c.bf16 %v4098_v13, %v4097_v1  ;;  %v4722_v1 = vrot.slane %v6509_v44, %v8449_v40  ;;  %v4729_v13 = vsub.s32 3, %v8440_v34 }
 0xc8b   :  { %4701 = vmatprep.mubr.f32.mxu0 %v7890_v3  ;;  %7399 = vmatprep.subr.bf16.mxu0 %v8998_v7  ;;  %v9043_v25 = vpack.c.bf16 %v4072_v62, %v4067_v48  ;;  %v9124_v62 = vld [vmem:[%s9400_s4 + $0x4] ss:$0 sm:$0xff] }
 0xc8c   :  { %6508 = vmatmul.mubr.msk.f32.vlgmr.msra.gmra.mrb[50].mxu0 %vm3700_vm4, %v8848_v59 }
 0xc8d   :  { %4901 = vmatprep.mubr.f32.mxu0 %v7890_v3  ;;  %7401 = vmatpush1.bf16.msra.mxu0 %v9010_v19 }
 0xc90   :  { %6499 = vmatmul.mubr.msk.f32.vlgmr.msra.gmra.mrb[42].mxu1 %vm3700_vm4, %v8848_v59 }
 0xc91   :  { %6501 = vmatpush1.msk.msra.mxu1 %vm3703_vm3, %v8865_v21  ;;  %4543 = vmatprep.mubr.f32.mxu1 %v7890_v3  ;;  %v4073_v21 = vld [vmem:[%s9402_s2 + $0x1d0] sm:$0xff] }
 0xc92   :  { %6503 = vmatprep.subr.msk.mxu1 %vm3703_vm3, %v4551_v5  ;;  %v9037_v56 = vpack.c.bf16 %v4073_v21, %v4068_v36  ;;  %v4064_v5 = vld [vmem:[%s9402_s2 + $0x188] sm:$0xff]  ;;  %v4099_v36 = vld [vmem:[%s9401_s3 + $0x120] sm:$0xff]  ;;  %v4100_v21 = vld [vmem:[%s9401_s3 + $0x130] sm:$0xff] }
 0xc93   :  { %v9071_v60 = vpack.c.bf16 %v4064_v5, %v4059_v54  ;;  %v9117_v48 = vpack.c.bf16 %v4100_v21, %v4099_v36  ;;  %v4089_v54 = vld [vmem:[%s9402_s2 + $0x268] sm:$0xff] }
 0xc94   :  { %6502 = vmatmul.mubr.msk.f32.vlgmr.msra.gmra.mrb[44].mxu1 %vm3700_vm4, %v8848_v59  ;;  %7403 = vmatprep.subr.bf16.mxu0 %v9037_v56 }
 0xc95   :  { %6504 = vmatpush1.msk.msra.mxu1 %vm3703_vm3, %v4550_v32  ;;  %4630 = vmatprep.mubr.f32.mxu1 %v7890_v3 }
 0xc96   :  { %7391 = vmatprep.subr.bf16.mxu1 %v8985_v26  ;;  %7405 = vmatpush1.bf16.msra.mxu0 %v9043_v25 }
 0xc97   :  { %7412 = vmatprep.subr.bf16.mxu0 %v7891_v61 }
 0xc98   :  { %6505 = vmatmul.mubr.msk.f32.vlgmr.msra.gmra.mrb[46].mxu1 %vm3700_vm4, %v8848_v59  ;;  %v4060_v59 = vld [vmem:[%s9402_s2 + $0x168] sm:$0xff] }
 0xc99   :  { %4830 = vmatprep.mubr.f32.mxu1 %v7890_v3  ;;  %v8996_v4 = vpack.c.bf16 %v4060_v59, %v4055_v63  ;;  %v4069_v59 = vld [vmem:[%s9402_s2 + $0x1b0] sm:$0xff] }
 0xc9a   :  { %v9082_v43 = vpack.c.bf16 %v4074_v2, %v4069_v59 }
 0xc9b   :  { %7393 = vmatpush1.bf16.msra.mxu1 %v8996_v4 }
 0xc9c   :  { %7395 = vmatprep.subr.bf16.mxu1 %v9023_v18 }
 0xc9f   :  { %7397 = vmatpush1.bf16.msra.mxu1 %v9025_v42 }
 0xca0   :  { %7406 = vmatprep.subr.bf16.mxu1 %v7891_v61 }
 0xd5b   :  { %v4389_v27 = vpop.f32.mrb[48].mxu0 }
 0xd5c   :  { %v4391_v28 = vpop.f32.mrb[49].mxu0 }
 0xd5f   :  { %v4703_v29 = vpop.f32.mrb[50].mxu0 }
 0xd60   :  { %v4705_v55 = vpop.f32.mrb[51].mxu0 }
 0xd63   :  { %v9050_v31 = vpop.f32.mrb[42].mxu1 }
 0xd64   :  { %v9052_v14 = vpop.f32.mrb[43].mxu1  ;;  %v9232_v36 = vadd.f32 %v4718_v11, %v9050_v31 }
 0xd65   :  { %v9235_v21 = vadd.f32 %v4722_v1, %v9052_v14 }
 0xd67   :  { %v4545_v9 = vpop.f32.mrb[44].mxu1 }
 0xd68   :  { %v9054_v52 = vadd.f32 %v4545_v9, %v4389_v27  ;;  %v4547_v33 = vpop.f32.mrb[45].mxu1  ;;  %v4076_v9 = vld [vmem:[%s9402_s2 + $0x1e8] sm:$0xff] }
 0xd69   :  { %v9056_v6 = vadd.f32 %v4547_v33, %v4391_v28  ;;  %v4080_v33 = vld [vmem:[%s9402_s2 + $0x210] sm:$0xff] }
 0xd6a   :  { %v4710_v46 = vadd.f32 %v4703_v29, %v9054_v52 }
 0xd6b   :  { %v4711_v10 = vadd.f32 %v4705_v55, %v9056_v6  ;;  %v4632_v0 = vpop.f32.mrb[46].mxu1 }
 0xd6c   :  { %v4708_v12 = vadd.f32 %v4632_v0, %v9050_v31  ;;  %v4634_v38 = vpop.f32.mrb[47].mxu1  ;;  %v4082_v0 = vld [vmem:[%s9402_s2 + $0x220] sm:$0xff]  ;;  %v4726_v31 = vrot.slane %v6509_v44, %v496_v22 }
 0xd6d   :  { %v4709_v16 = vadd.f32 %v4634_v38, %v9052_v14  ;;  %v6512_v20 = vmul.f32 -1.442695, %v4711_v10  ;;  %v9138_v10 = vpack.c.bf16 %v4080_v33, %v4076_v9  ;;  %v4079_v38 = vld [vmem:[%s9402_s2 + $0x208] sm:$0xff]  ;;  %v4730_v33 = vrot.slane %v6509_v44, %v4729_v13 }
 0xd6e   :  { %v6510_v57 = vmul.f32 -1.442695, %v4708_v12  ;;  %v4075_v12 = vld [vmem:[%s9402_s2 + $0x1e0] sm:$0xff] }
 0xd6f   :  { %v6511_v17 = vmul.f32 -1.442695, %v4709_v16  ;;  %v9240_v40 = vadd.f32 %v4730_v33, %v9056_v6 }
 0xd70   :  { %7810 = vpow2.f32 %v6510_v57  ;;  %v9151_v57 = vpack.c.bf16 %v4079_v38, %v4075_v12  ;;  %v9246_v12 = vadd.f32 %v4726_v31, %v9054_v52 }
 0xd71   :  { %7812 = vpow2.f32 %v6511_v17  ;;  %v4077_v17 = vld [vmem:[%s9402_s2 + $0x1f0] sm:$0xff] }
 0xd72   :  { %7814 = vpow2.f32 %v6512_v20  ;;  %v4081_v20 = vld [vmem:[%s9402_s2 + $0x218] sm:$0xff] }
 0xd73   :  { %7816 = vtanh.f32 %v4710_v46  ;;  %v4078_v46 = vld [vmem:[%s9402_s2 + $0x1f8] sm:$0xff] }
 0xd74   :  { %v9149_v16 = vpack.c.bf16 %v4082_v0, %v4078_v46 }
 0xd7a   :  { %v7811_v23 = vpop.eup %7810 }
 0xd7b   :  { %v7813_v30 = vpop.eup %7812  ;;  %v4742_v24 = vadd.f32 1.0, %v7811_v23  ;;  %v4084_v23 = vld [vmem:[%s9402_s2 + $0x238] sm:$0xff] }
 0xd7c   :  { %v4748_v8 = vadd.f32 1.0, %v7813_v30  ;;  %v7815_v41 = vpop.eup %7814  ;;  %v9163_v30 = vpack.c.bf16 %v4081_v20, %v4077_v17 }
 0xd7d   :  { %7818 = vrcp.f32 %v4742_v24  ;;  %v7817_v47 = vpop.eup %7816  ;;  %v4755_v58 = vadd.f32 1.0, %v7815_v41  ;;  %v4088_v24 = vld [vmem:[%s9402_s2 + $0x260] sm:$0xff]  ;;  %v4090_v41 = vld [vmem:[%s9402_s2 + $0x270] sm:$0xff] }
 0xd7e   :  { %7820 = vrcp.f32 %v4748_v8  ;;  %v4086_v8 = vld [vmem:[%s9402_s2 + $0x248] sm:$0xff] }
 0xd7f   :  { %7822 = vrcp.f32 %v4755_v58  ;;  %v4087_v58 = vld [vmem:[%s9402_s2 + $0x258] sm:$0xff] }
 0xd87   :  { %v7819_v49 = vpop.eup %7818 }
 0xd88   :  { %v7821_v35 = vpop.eup %7820  ;;  %v4759_v39 = vmul.f32 %v7819_v49, %v7817_v47  ;;  %v9176_v47 = vpack.c.bf16 %v4088_v24, %v4084_v23  ;;  %v9178_v49 = vpack.c.bf16 %v4090_v41, %v4086_v8 }
 0xd89   :  { %v4758_v50 = vmul.f32 0.0, %v7821_v35  ;;  %v7823_v32 = vpop.eup %7822  ;;  %v4083_v35 = vld [vmem:[%s9402_s2 + $0x230] sm:$0xff] }
 0xd8b   :  { %v9062_v53 = vadd.f32 %v4759_v39, %v4758_v50  ;;  %v4085_v39 = vld [vmem:[%s9402_s2 + $0x240] sm:$0xff]  ;;  %v9190_v50 = vpack.c.bf16 %v4087_v58, %v4083_v35 }
 0xd8c   :  { %v9197_v5 = vpack.c.bf16 %v4089_v54, %v4085_v39 }
 0xd8d   :  { %7824 = vtanh.f32 %v9062_v53 }
 0xd97   :  { %v7825_v51 = vpop.eup %7824 }
 0xd98   :  { %v4762_v63 = vmul.f32 %v7825_v51, %v7823_v32  ;;  %v9206_v32 = vld [vmem:[%s9400_s4 + $0x5] ss:$0 sm:$0xff] }
 0xd9a   :  { %6513 = vmatmul.mubr.msk.f32.vlgmr.msra.gmra.mrb[48].mxu1 %vm508_vm1, %v4762_v63  ;;  %6514 = vmatmul.mubr.msk.f32.vlgmr.msra.gmra.mrb[52].mxu0 %vm508_vm1, %v4762_v63 }
 0xd9b   :  { %7408 = vmatpush3.bf16.msra.mxu1 %v9071_v60  ;;  %6857 = vmatprep.mubr.msk.f32.mxu1 %vm7892_vm0, %v7890_v3 }
 0xd9c   :  { %7409 = vmatprep.subr.bf16.mxu1 %v7891_v61  ;;  %6872 = vmatprep.mubr.msk.f32.mxu0 %vm7892_vm0, %v7890_v3 }
 0xd9d   :  { %7414 = vmatpush3.bf16.msra.mxu0 %v9101_v45 }
 0xd9e   :  { %7415 = vmatprep.subr.bf16.mxu0 %v7891_v61 }
 0xd9f   :  { %7411 = vmatpush3.bf16.msra.mxu1 %v9082_v43 }
 0xda0   :  { %7422 = vmatprep.subr.bf16.mxu1 %v9138_v10 }
 0xda1   :  { %7417 = vmatpush3.bf16.msra.mxu0 %v9107_v15 }
 0xda2   :  { %6858 = vmatmul.mubr.msk.f32.vlgmr.msra.gmra.mrb[50].mxu1 %vm508_vm1, %v4762_v63  ;;  %7418 = vmatprep.subr.bf16.mxu0 %v7891_v61 }
 0xda3   :  { %5125 = vmatprep.mubr.f32.mxu1 %v7890_v3  ;;  %7424 = vmatpush1.bf16.msra.mxu1 %v9151_v57 }
 0xda4   :  { %7426 = vmatprep.subr.bf16.mxu1 %v9176_v47 }
 0xda5   :  { %7420 = vmatpush3.bf16.msra.mxu0 %v9117_v48 }
 0xda6   :  { %7430 = vmatprep.subr.bf16.mxu0 %v9149_v16 }
 0xda7   :  { %7428 = vmatpush1.bf16.msra.mxu1 %v9190_v50 }
 0xda8   :  { %7438 = vmatprep.subr.bf16.mxu1 %v8985_v26 }
 0xe75   :  { %v4974_v27 = vpop.f32.mrb[50].mxu1 }
 0xe76   :  { %v4978_v28 = vadd.f32 %v4974_v27, %v9124_v62  ;;  %v6859_v29 = vpop.f32.mrb[51].mxu1 }
 0xe78   :  { %7826 = vtanh.f32 %v4978_v28 }
 0xe82   :  { %v7827_v55 = vpop.eup %7826 }
 0xe83   :  { %6873 = vmatmul.mubr.msk.f32.vlgmr.msra.gmra.mrb[54].mxu0 %vm3516_vm2, %v7827_v55 }
 0xe84   :  { %5196 = vmatprep.mubr.f32.mxu0 %v7890_v3  ;;  %7432 = vmatpush1.bf16.msra.mxu0 %v9163_v30 }
 0xe85   :  { %7434 = vmatprep.subr.bf16.mxu0 %v9178_v49 }
 0xe88   :  { %7436 = vmatpush1.bf16.msra.mxu0 %v9197_v5 }
 0xe89   :  { %7446 = vmatprep.subr.bf16.mxu0 %v8998_v7 }
 0xf56   :  { %v5049_v51 = vpop.f32.mrb[54].mxu0 }
 0xf57   :  { %v5050_v63 = vadd.f32 %v5049_v51, %v9206_v32  ;;  %v6874_v59 = vpop.f32.mrb[55].mxu0 }
 0xf59   :  { %7828 = vtanh.f32 %v5050_v63 }
 0xf63   :  { %v9209_v2 = vpop.eup %7828 }
 0xf64   :  { %6517 = vmatmul.mubr.msk.f32.vlgmr.msra.gmra.mrb[48].mxu1 %vm508_vm1, %v9209_v2  ;;  %6518 = vmatmul.mubr.msk.f32.vlgmr.msra.gmra.mrb[52].mxu0 %vm508_vm1, %v9209_v2 }
 0xf65   :  { %7440 = vmatpush1.bf16.msra.mxu1 %v8996_v4  ;;  %7448 = vmatpush1.bf16.msra.mxu0 %v9010_v19 }
 0xf66   :  { %7442 = vmatprep.subr.bf16.mxu1 %v9023_v18  ;;  %7450 = vmatprep.subr.bf16.mxu0 %v9037_v56 }
 0xf67   :  { %5298 = vmatprep.mubr.f32.mxu1 %v7890_v3  ;;  %5369 = vmatprep.mubr.f32.mxu0 %v7890_v3 }
 0xf69   :  { %7444 = vmatpush1.bf16.msra.mxu1 %v9025_v42  ;;  %7452 = vmatpush1.bf16.msra.mxu0 %v9043_v25 }
 0xf6a   :  { %7453 = vmatprep.subr.bf16.mxu1 %v7891_v61  ;;  %7459 = vmatprep.subr.bf16.mxu0 %v7891_v61 }
0x1037   :  { %v5127_v27 = vpop.f32.mrb[48].mxu1  ;;  %v5198_v28 = vpop.f32.mrb[52].mxu0 }
0x1038   :  { %v7556_v29 = vadd.f32 %v5127_v27, %v9232_v36  ;;  %v5129_v55 = vpop.f32.mrb[49].mxu1  ;;  %v5200_v9 = vpop.f32.mrb[53].mxu0  ;;  %v7558_v17 = vadd.f32 %v5198_v28, %v9246_v12 }
0x1039   :  { %v7557_v46 = vadd.f32 %v5129_v55, %v9235_v21  ;;  %v7559_v14 = vadd.f32 %v5200_v9, %v9240_v40 }
0x103a   :  { %v6519_v37 = vmul.f32 -1.442695, %v7556_v29 }
0x103b   :  { %v6520_v0 = vmul.f32 -1.442695, %v7557_v46  ;;  %v6521_v38 = vmul.f32 -1.442695, %v7559_v14 }
0x103c   :  { %7830 = vpow2.f32 %v6519_v37 }
0x103d   :  { %7832 = vpow2.f32 %v6520_v0 }
0x103e   :  { %7834 = vpow2.f32 %v6521_v38 }
0x103f   :  { %7836 = vtanh.f32 %v7558_v17 }
0x1046   :  { %v7831_v20 = vpop.eup %7830 }
0x1047   :  { %v7833_v23 = vpop.eup %7832  ;;  %v5210_v24 = vadd.f32 1.0, %v7831_v20 }
0x1048   :  { %v5216_v8 = vadd.f32 1.0, %v7833_v23  ;;  %v7835_v6 = vpop.eup %7834 }
0x1049   :  { %7838 = vrcp.f32 %v5210_v24  ;;  %v7837_v41 = vpop.eup %7836  ;;  %v5223_v58 = vadd.f32 1.0, %v7835_v6 }
0x104a   :  { %7840 = vrcp.f32 %v5216_v8 }
0x104b   :  { %7842 = vrcp.f32 %v5223_v58 }
0x1053   :  { %v7839_v34 = vpop.eup %7838 }
0x1054   :  { %v7841_v22 = vpop.eup %7840  ;;  %v5227_v35 = vmul.f32 %v7839_v34, %v7837_v41 }
0x1055   :  { %v5226_v52 = vmul.f32 %v7841_v22, %v9062_v53  ;;  %v7843_v54 = vpop.eup %7842 }
0x1057   :  { %v9250_v39 = vadd.f32 %v5227_v35, %v5226_v52 }
0x1059   :  { %7844 = vtanh.f32 %v9250_v39 }
0x1063   :  { %v7845_v51 = vpop.eup %7844 }
0x1064   :  { %v5230_v63 = vmul.f32 %v7845_v51, %v7843_v54 }
0x1066   :  { %6522 = vmatmul.mubr.msk.f32.vlgmr.msra.gmra.mrb[52].mxu1 %vm508_vm1, %v5230_v63  ;;  %6523 = vmatmul.mubr.msk.f32.vlgmr.msra.gmra.mrb[56].mxu0 %vm508_vm1, %v5230_v63 }
0x1067   :  { %7455 = vmatpush3.bf16.msra.mxu1 %v9071_v60  ;;  %6883 = vmatprep.mubr.msk.f32.mxu1 %vm7892_vm0, %v7890_v3 }
0x1068   :  { %7456 = vmatprep.subr.bf16.mxu1 %v7891_v61  ;;  %7461 = vmatpush3.bf16.msra.mxu0 %v9101_v45 }
0x1069   :  { %7462 = vmatprep.subr.bf16.mxu0 %v7891_v61  ;;  %6898 = vmatprep.mubr.msk.f32.mxu0 %vm7892_vm0, %v7890_v3 }
0x106b   :  { %7458 = vmatpush3.bf16.msra.mxu1 %v9082_v43 }
0x106c   :  { %7464 = vmatpush3.bf16.msra.mxu0 %v9107_v15  ;;  %7469 = vmatprep.subr.bf16.mxu1 %v9138_v10 }
0x106d   :  { %7465 = vmatprep.subr.bf16.mxu0 %v7891_v61 }
0x106e   :  { %6884 = vmatmul.mubr.msk.f32.vlgmr.msra.gmra.mrb[54].mxu1 %vm508_vm1, %v5230_v63 }
0x106f   :  { %7471 = vmatpush1.bf16.msra.mxu1 %v9151_v57  ;;  %5593 = vmatprep.mubr.f32.mxu1 %v7890_v3 }
0x1070   :  { %7467 = vmatpush3.bf16.msra.mxu0 %v9117_v48  ;;  %7473 = vmatprep.subr.bf16.mxu1 %v9176_v47 }
0x1071   :  { %7477 = vmatprep.subr.bf16.mxu0 %v9149_v16 }
0x1073   :  { %7475 = vmatpush1.bf16.msra.mxu1 %v9190_v50 }
0x1074   :  { %7485 = vmatprep.subr.bf16.mxu1 %v8985_v26 }
0x1141   :  { %v5442_v53 = vpop.f32.mrb[54].mxu1 }
0x1142   :  { %v5446_v59 = vadd.f32 %v5442_v53, %v9124_v62  ;;  %v6885_v44 = vpop.f32.mrb[55].mxu1 }
0x1144   :  { %7846 = vtanh.f32 %v5446_v59 }
0x114e   :  { %v7847_v11 = vpop.eup %7846 }
0x114f   :  { %6899 = vmatmul.mubr.msk.f32.vlgmr.msra.gmra.mrb[58].mxu0 %vm3516_vm2, %v7847_v11 }
0x1150   :  { %7479 = vmatpush1.bf16.msra.mxu0 %v9163_v30  ;;  %5664 = vmatprep.mubr.f32.mxu0 %v7890_v3 }
0x1151   :  { %7481 = vmatprep.subr.bf16.mxu0 %v9178_v49 }
0x1154   :  { %7483 = vmatpush1.bf16.msra.mxu0 %v9197_v5 }
0x1155   :  { %7500 = vmatprep.subr.bf16.mxu0 %v7891_v61 }
0x1222   :  { %v5517_v1 = vpop.f32.mrb[58].mxu0 }
0x1223   :  { %v5518_v26 = vadd.f32 %v5517_v1, %v9206_v32  ;;  %v6900_v13 = vpop.f32.mrb[59].mxu0 }
0x1225   :  { %7848 = vtanh.f32 %v5518_v26 }
0x122f   :  { %v9283_v27 = vpop.eup %7848 }
0x1230   :  { %6526 = vmatmul.mubr.msk.f32.vlgmr.msra.gmra.mrb[52].mxu1 %vm508_vm1, %v9283_v27  ;;  %6527 = vmatmul.mubr.msk.f32.vlgmr.msra.gmra.mrb[56].mxu0 %vm508_vm1, %v9283_v27 }
0x1231   :  { %7487 = vmatpush1.bf16.msra.mxu1 %v8996_v4  ;;  %7502 = vmatpush3.bf16.msra.mxu0 %v9071_v60 }
0x1232   :  { %7489 = vmatprep.subr.bf16.mxu1 %v9023_v18  ;;  %7503 = vmatprep.subr.bf16.mxu0 %v7891_v61 }
0x1233   :  { %5766 = vmatprep.mubr.f32.mxu1 %v7890_v3  ;;  %6909 = vmatprep.mubr.msk.f32.mxu0 %vm7892_vm0, %v7890_v3 }
0x1235   :  { %7491 = vmatpush1.bf16.msra.mxu1 %v9025_v42  ;;  %7505 = vmatpush3.bf16.msra.mxu0 %v9082_v43 }
0x1236   :  { %7493 = vmatprep.subr.bf16.mxu1 %v8998_v7  ;;  %7531 = vmatprep.subr.bf16.mxu0 %v7891_v61 }
0x1303   :  { %v5595_v4 = vpop.f32.mrb[52].mxu1  ;;  %v5666_v28 = vpop.f32.mrb[56].mxu0 }
0x1304   :  { %v7560_v29 = vadd.f32 %v5595_v4, %v9232_v36  ;;  %v5597_v18 = vpop.f32.mrb[53].mxu1  ;;  %v5668_v55 = vpop.f32.mrb[57].mxu0  ;;  %v7562_v0 = vadd.f32 %v5666_v28, %v9246_v12 }
0x1305   :  { %v7561_v9 = vadd.f32 %v5597_v18, %v9235_v21  ;;  %v7563_v42 = vadd.f32 %v5668_v55, %v9240_v40 }
0x1306   :  { %v6528_v33 = vmul.f32 -1.442695, %v7560_v29 }
0x1307   :  { %v6529_v46 = vmul.f32 -1.442695, %v7561_v9  ;;  %v6530_v37 = vmul.f32 -1.442695, %v7563_v42  ;;  %v4091_v9 = vld [vmem:[%s9402_s2 + $0x280] sm:$0xff] }
0x1308   :  { %7850 = vpow2.f32 %v6528_v33  ;;  %v4092_v33 = vld [vmem:[%s9402_s2 + $0x2a8] sm:$0xff] }
0x1309   :  { %7852 = vpow2.f32 %v6529_v46 }
0x130a   :  { %7854 = vpow2.f32 %v6530_v37 }
0x130b   :  { %7856 = vtanh.f32 %v7562_v0 }
0x1312   :  { %v7851_v7 = vpop.eup %7850 }
0x1313   :  { %v7853_v31 = vpop.eup %7852  ;;  %v5678_v14 = vadd.f32 1.0, %v7851_v7 }
0x1314   :  { %v5684_v38 = vadd.f32 1.0, %v7853_v31  ;;  %v7855_v17 = vpop.eup %7854  ;;  %v6316_v31 = vld [vmem:[%s9400_s4 + $0x6] ss:$0 sm:$0xff] }
0x1315   :  { %7858 = vrcp.f32 %v5678_v14  ;;  %v7857_v20 = vpop.eup %7856  ;;  %v5691_v6 = vadd.f32 1.0, %v7855_v17 }
0x1316   :  { %7860 = vrcp.f32 %v5684_v38 }
0x1317   :  { %7862 = vrcp.f32 %v5691_v6 }
0x131f   :  { %v7859_v23 = vpop.eup %7858 }
0x1320   :  { %v7861_v24 = vpop.eup %7860  ;;  %v5695_v8 = vmul.f32 %v7859_v23, %v7857_v20 }
0x1321   :  { %v5694_v41 = vmul.f32 %v7861_v24, %v9250_v39  ;;  %v7863_v22 = vpop.eup %7862 }
0x1323   :  { %v9305_v34 = vadd.f32 %v5695_v8, %v5694_v41 }
0x1325   :  { %7864 = vtanh.f32 %v9305_v34 }
0x132f   :  { %v7865_v35 = vpop.eup %7864 }
0x1330   :  { %v5698_v58 = vmul.f32 %v7865_v35, %v7863_v22 }
0x1332   :  { %6531 = vmatmul.mubr.msk.f32.vlgmr.msra.gmra.mrb[56].mxu1 %vm508_vm1, %v5698_v58  ;;  %6910 = vmatmul.mubr.msk.f32.vlgmr.msra.gmra.mrb[60].mxu0 %vm508_vm1, %v5698_v58 }
0x1333   :  { %7495 = vmatpush1.bf16.msra.mxu1 %v9010_v19  ;;  %5837 = vmatprep.mubr.f32.mxu1 %v7890_v3 }
0x1334   :  { %7497 = vmatprep.subr.bf16.mxu1 %v9037_v56  ;;  %7533 = vmatpush3.bf16.msra.mxu0 %v9071_v60 }
0x1335   :  { %7534 = vmatprep.subr.bf16.mxu0 %v7891_v61  ;;  %6935 = vmatprep.mubr.msk.f32.mxu0 %vm7892_vm0, %v7890_v3 }
0x1337   :  { %7499 = vmatpush1.bf16.msra.mxu1 %v9043_v25 }
0x1338   :  { %7506 = vmatprep.subr.bf16.mxu1 %v7891_v61  ;;  %7536 = vmatpush3.bf16.msra.mxu0 %v9082_v43 }
0x1339   :  { %7537 = vmatprep.subr.bf16.mxu0 %v7891_v61 }
0x133a   :  { %6532 = vmatmul.mubr.msk.f32.vlgmr.msra.gmra.mrb[58].mxu1 %vm508_vm1, %v5698_v58 }
0x133b   :  { %7508 = vmatpush3.bf16.msra.mxu1 %v9101_v45  ;;  %6924 = vmatprep.mubr.msk.f32.mxu1 %vm7892_vm0, %v7890_v3 }
0x133c   :  { %7509 = vmatprep.subr.bf16.mxu1 %v7891_v61 }
0x133f   :  { %7511 = vmatpush3.bf16.msra.mxu1 %v9107_v15 }
0x1340   :  { %7512 = vmatprep.subr.bf16.mxu1 %v7891_v61 }
0x1343   :  { %7514 = vmatpush3.bf16.msra.mxu1 %v9117_v48 }
0x1344   :  { %7516 = vmatprep.subr.bf16.mxu1 %v9138_v10 }
0x1405   :  { %v5910_v19 = vpop.f32.mrb[60].mxu0 }
0x1406   :  { %v5914_v56 = vadd.f32 %v5910_v19, %v9124_v62  ;;  %v6911_v25 = vpop.f32.mrb[61].mxu0 }
0x1408   :  { %7866 = vtanh.f32 %v5914_v56 }
0x1412   :  { %v7867_v60 = vpop.eup %7866 }
0x1413   :  { %6925 = vmatmul.mubr.msk.f32.vlgmr.msra.gmra.mrb[60].mxu1 %vm3516_vm2, %v7867_v60 }
0x1414   :  { %7518 = vmatpush1.bf16.msra.mxu1 %v9151_v57  ;;  %6061 = vmatprep.mubr.f32.mxu1 %v7890_v3 }
0x1415   :  { %7520 = vmatprep.subr.bf16.mxu1 %v9176_v47 }
0x1418   :  { %7522 = vmatpush1.bf16.msra.mxu1 %v9190_v50 }
0x1419   :  { %7524 = vmatprep.subr.bf16.mxu1 %v9149_v16 }
0x14e6   :  { %v5985_v43 = vpop.f32.mrb[60].mxu1 }
0x14e7   :  { %v5986_v10 = vadd.f32 %v5985_v43, %v9206_v32  ;;  %v6926_v52 = vpop.f32.mrb[61].mxu1 }
0x14e9   :  { %7868 = vtanh.f32 %v5986_v10 }
0x14f3   :  { %v9338_v39 = vpop.eup %7868 }
0x14f4   :  { %6535 = vmatmul.mubr.msk.f32.vlgmr.msra.gmra.mrb[56].mxu1 %vm508_vm1, %v9338_v39 }
0x14f5   :  { %7526 = vmatpush1.bf16.msra.mxu1 %v9163_v30  ;;  %6132 = vmatprep.mubr.f32.mxu1 %v7890_v3 }
0x14f6   :  { %7528 = vmatprep.subr.bf16.mxu1 %v9178_v49 }
0x14f9   :  { %7530 = vmatpush1.bf16.msra.mxu1 %v9197_v5 }
0x14fc   :  { %6536 = vmatmul.mubr.msk.f32.vlgmr.msra.gmra.mrb[58].mxu1 %vm508_vm1, %v9338_v39 }
0x15c7   :  { %v6063_v16 = vpop.f32.mrb[56].mxu1 }
0x15c8   :  { %v7564_v57 = vadd.f32 %v6063_v16, %v9232_v36  ;;  %v6065_v47 = vpop.f32.mrb[57].mxu1 }
0x15c9   :  { %v7565_v50 = vadd.f32 %v6065_v47, %v9235_v21 }
0x15ca   :  { %v6537_v54 = vmul.f32 -1.442695, %v7564_v57 }
0x15cb   :  { %v6538_v51 = vmul.f32 -1.442695, %v7565_v50 }
0x15cc   :  { %7870 = vpow2.f32 %v6537_v54 }
0x15cd   :  { %7872 = vpow2.f32 %v6538_v51 }
0x15cf   :  { %v6134_v30 = vpop.f32.mrb[58].mxu1 }
0x15d0   :  { %v6136_v63 = vpop.f32.mrb[59].mxu1  ;;  %v7566_v5 = vadd.f32 %v6134_v30, %v9246_v12 }
0x15d1   :  { %v7567_v53 = vadd.f32 %v6136_v63, %v9240_v40 }
0x15d3   :  { %v6539_v49 = vmul.f32 -1.442695, %v7567_v53 }
0x15d5   :  { %7874 = vpow2.f32 %v6539_v49 }
0x15d6   :  { %v7871_v59 = vpop.eup %7870  ;;  %7876 = vtanh.f32 %v7566_v5 }
0x15d7   :  { %v7873_v44 = vpop.eup %7872  ;;  %v6146_v11 = vadd.f32 1.0, %v7871_v59 }
0x15d8   :  { %v6152_v1 = vadd.f32 1.0, %v7873_v44 }
0x15d9   :  { %7878 = vrcp.f32 %v6146_v11 }
0x15da   :  { %7880 = vrcp.f32 %v6152_v1 }
0x15df   :  { %v7875_v36 = vpop.eup %7874 }
0x15e0   :  { %v7877_v21 = vpop.eup %7876  ;;  %v6159_v28 = vadd.f32 1.0, %v7875_v36 }
0x15e2   :  { %7882 = vrcp.f32 %v6159_v28 }
0x15e3   :  { %v7879_v26 = vpop.eup %7878 }
0x15e4   :  { %v7881_v13 = vpop.eup %7880  ;;  %v6163_v4 = vmul.f32 %v7879_v26, %v7877_v21 }
0x15e5   :  { %v6162_v29 = vmul.f32 %v7881_v13, %v9305_v34 }
0x15e7   :  { %v6164_v40 = vadd.f32 %v6163_v4, %v6162_v29 }
0x15e9   :  { %7884 = vtanh.f32 %v6164_v40 }
0x15ec   :  { %v7883_v12 = vpop.eup %7882 }
0x15f3   :  { %v7885_v18 = vpop.eup %7884 }
0x15f4   :  { %v6166_v55 = vmul.f32 %v7885_v18, %v7883_v12 }
0x15f6   :  { %6936 = vmatmul.mubr.msk.f32.vlgmr.msra.gmra.mrb[62].mxu0 %vm508_vm1, %v6166_v55 }
0x15f7   :  { %7539 = vmatpush3.bf16.msra.mxu0 %v9101_v45  ;;  %6950 = vmatprep.mubr.msk.f32.mxu0 %vm7892_vm0, %v7890_v3  ;;  %v7546_v45 = vpack.c.bf16 %v4092_v33, %v4091_v9 }
0x15f8   :  { %7540 = vmatprep.subr.bf16.mxu0 %v7891_v61 }
0x15fb   :  { %7542 = vmatpush3.bf16.msra.mxu0 %v9107_v15  ;;  %v4094_v15 = vld [vmem:[%s9402_s2 + $0x2f8] sm:$0xff] }
0x15fc   :  { %7543 = vmatprep.subr.bf16.mxu0 %v7891_v61  ;;  %v4093_v61 = vld [vmem:[%s9402_s2 + $0x2d0] sm:$0xff] }
0x15ff   :  { %7545 = vmatpush3.bf16.msra.mxu0 %v9117_v48  ;;  %v7550_v48 = vpack.c.bf16 %v4094_v15, %v4093_v61 }
0x1600   :  { %7547 = vmatprep.subr.bf16.mxu0 %v7546_v45 }
0x16c9   :  { %v6236_v46 = vpop.f32.mrb[62].mxu0 }
0x16ca   :  { %v6240_v3 = vadd.f32 %v6236_v46, %v9124_v62  ;;  %v6937_v42 = vpop.f32.mrb[63].mxu0 }
0x16cc   :  { %7886 = vtanh.f32 %v6240_v3 }
0x16d6   :  { %v7887_v37 = vpop.eup %7886 }
0x16d7   :  { %6951 = vmatmul.mubr.msk.f32.vlgmr.msra.gmra.mrb[64].mxu0 %vm3516_vm2, %v7887_v37 }
0x16d8   :  { %7549 = vmatpush3.bf16.msra.mxu0 %v7546_v45  ;;  %6961 = vmatprep.mubr.msk.f32.mxu0 %vm508_vm1, %v9209_v2 }
0x16d9   :  { %7551 = vmatprep.subr.bf16.mxu0 %v7550_v48 }
0x16dc   :  { %7553 = vmatpush3.bf16.msra.mxu0 %v7550_v48 }
0x16df   :  { %6962 = vmatmul.mubr.msk.f32.vlgmr.msra.gmra.mrb[66].mxu0 %vm508_vm1, %v9283_v27 }
0x16e0   :  { %6964 = vmatprep.mubr.msk.f32.mxu0 %vm508_vm1, %v9338_v39 }
0x17aa   :  { %v6311_v62 = vpop.f32.mrb[64].mxu0 }
0x17ab   :  { %v6312_v0 = vadd.f32 %v6311_v62, %v9206_v32  ;;  %v6952_v7 = vpop.f32.mrb[65].mxu0 }
0x17ad   :  { %7888 = vtanh.f32 %v6312_v0 }
0x17b2   :  { %v6963_v14 = vpop.f32.mrb[66].mxu0 }
0x17b3   :  { %v6392_v38 = vadd.f32 %v6963_v14, %v6316_v31  ;;  %v6386_v2 = vpop.f32.mrb[67].mxu0 }
0x17b4   :  { %v6387_v17 = vadd.f32 %v6386_v2, %v6316_v31 }
0x17b5   :  { %6406 = vst [vmem:[%s9403_s5 + $0x8] sm:$0xff] %v6392_v38 }
0x17b6   :  { %6405 = vst [vmem:[%s9403_s5] sm:$0xff] %v6387_v17 }
0x17b7   :  { %v7889_v27 = vpop.eup %7888 }
0x17b8   :  { %6965 = vmatmul.mubr.msk.f32.gmra.mrb[68].mxu0 %vm508_vm1, %v7889_v27 }
0x188b   :  { %v6966_v32 = vpop.f32.mrb[68].mxu0 }
0x188c   :  { %v6402_v20 = vadd.f32 %v6966_v32, %v6316_v31  ;;  %v6396_v23 = vpop.f32.mrb[69].mxu0 }
0x188d   :  { %v6397_v24 = vadd.f32 %v6396_v23, %v6316_v31 }
0x188e   :  { %6408 = vst [vmem:[%s9403_s5 + $0x18] sm:$0xff] %v6402_v20 }
0x188f   :  { %6407 = vst [vmem:[%s9403_s5 + $0x10] sm:$0xff] %v6397_v24 }

</bundles_post_ra>
